<compile_context>
chip_gen: v7x
topology: tpu7x:2x2x1
jax: 0.10.0
libtpu: 0.0.40
codegen_flags: <defaults>
</compile_context>

<pallas_src>
import functools

import jax
import jax.numpy as jnp
from jax.experimental import pallas as pl
from jax.experimental.pallas import tpu as pltpu

EPS = 1e-5  # nn.BatchNorm1d default eps


@functools.lru_cache(maxsize=None)
def _cparams():
    try:
        # v5e/v6e: 128 MiB physical, v7x: 64 MiB -> leave 25% headroom.
        limit = min(int(pltpu.get_tpu_info().vmem_capacity_bytes) * 3 // 4, 96 << 20)
    except Exception:
        limit = 48 << 20
    return pltpu.CompilerParams(dimension_semantics=("parallel",),
                                vmem_limit_bytes=limit)


# ----------------------------------------------------------------------------
# In-kernel helpers
# ----------------------------------------------------------------------------
def _bn_scale_shift(stats_ref, gamma_ref, beta_ref, count):
    """Fused BatchNorm finalize: reduce packed per-tile (nb, 2, C) sums."""
    s = jnp.sum(stats_ref[...], axis=0)                       # [2, C]
    mean = s[0:1, :] * (1.0 / count)
    var = jnp.maximum(s[1:2, :] * (1.0 / count) - mean * mean, 0.0)
    scale = gamma_ref[...] * jax.lax.rsqrt(var + EPS)          # [1, C]
    shift = beta_ref[...] - mean * scale
    return scale, shift


def _channel_stats(acc, fold):
    """Packed per-tile [2, C] (sum ; sumsq) for this layer's BatchNorm."""
    s = jnp.sum(acc, axis=0, keepdims=True)
    q = jnp.sum(acc * acc, axis=0, keepdims=True)
    if fold:                                                   # decoder: even+odd phases
        C = s.shape[-1] // 2
        s = s[:, :C] + s[:, C:]
        q = q[:, :C] + q[:, C:]
    return jnp.concatenate([s, q], axis=0)


# ----------------------------------------------------------------------------
# Kernels
# ----------------------------------------------------------------------------
def conv_first_kernel(x_ref, w_ref, out_ref, stat_ref):
    """First encoder Conv1d (C_in=1): pair layout, K=5 im2col, one MXU matmul."""
    Bt, L, _ = x_ref.shape
    H = out_ref.shape[-1]
    x = x_ref[...]                                             # bf16 [Bt, L, 2]
    z = jnp.zeros((Bt, 1, 2), x.dtype)
    xp = jnp.concatenate([z, x, z], axis=1)
    im = jnp.concatenate([xp[:, 0:L, :], xp[:, 1:L + 1, :], xp[:, 2:L + 2, 0:1]],
                         axis=-1)                              # [Bt, L, 5] bf16
    acc = jnp.dot(im.reshape(Bt * L, 5), w_ref[...],
                  preferred_element_type=jnp.float32)
    out_ref[...] = acc.astype(out_ref.dtype).reshape(Bt, L, H)
    stat_ref[...] = _channel_stats(acc, fold=False).reshape(1, 2, H)


def conv_mid_kernel(*refs, apply_norm, pair_norm, fold, zero_last, count):
    """(prev-layer BN+ReLU, fused finalize) -> stride-2 conv / transposed conv
    as 3 accumulating bf16 MXU matmuls -> raw output + packed BN stats."""
    if apply_norm:
        (stats_ref, gamma_ref, beta_ref, x_ref, w0_ref, w1_ref, w2_ref,
         out_ref, ostat_ref) = refs
    else:
        x_ref, w0_ref, w1_ref, w2_ref, out_ref, ostat_ref = refs
    Bt, L, C = x_ref.shape
    N = out_ref.shape[-1]
    x = x_ref[...]                                             # bf16
    if apply_norm:
        scale, shift = _bn_scale_shift(stats_ref, gamma_ref, beta_ref, count)
        if pair_norm:                                          # encoder pair layout: 2x channels
            scale = jnp.concatenate([scale, scale], axis=-1)
            shift = jnp.concatenate([shift, shift], axis=-1)
        x = jnp.maximum(x.astype(jnp.float32) * scale.reshape(1, 1, C)
                        + shift.reshape(1, 1, C), 0.0)
        if zero_last:
            # Re-zero the wrapper's pad position (upper channel half of the last
            # pair row) after normalization -- cheap broadcast mask, no big iotas.
            row = jax.lax.broadcasted_iota(jnp.int32, (1, L, 1), 1)
            lane = jax.lax.broadcasted_iota(jnp.int32, (1, 1, C), 2)
            keep = jnp.logical_not((row == L - 1) & (lane >= C // 2))
            x = x * keep.astype(x.dtype)
        x = x.astype(jnp.bfloat16)                             # cast BEFORE staging
    z = jnp.zeros((Bt, 1, C), x.dtype)
    xp = jnp.concatenate([z, x, z], axis=1)                    # bf16 [Bt, L+2, C]
    C2 = w2_ref.shape[0]
    acc = jnp.dot(xp[:, 0:L, :].reshape(Bt * L, C), w0_ref[...],
                  preferred_element_type=jnp.float32)
    acc = acc + jnp.dot(xp[:, 1:L + 1, :].reshape(Bt * L, C), w1_ref[...],
                        preferred_element_type=jnp.float32)
    acc = acc + jnp.dot(xp[:, 2:L + 2, :C2].reshape(Bt * L, C2), w2_ref[...],
                        preferred_element_type=jnp.float32)
    out_ref[...] = acc.astype(out_ref.dtype).reshape(Bt, L, N)
    ostat_ref[...] = _channel_stats(acc, fold=fold).reshape(ostat_ref.shape)


def conv_last_kernel(stats_ref, gamma_ref, beta_ref, x_ref, w_ref, b_ref, out_ref,
                     *, count):
    """Last ConvTranspose (C_out=1) on the VPU (5 broadcast MACs + 2 lane
    reductions), fused previous BN+ReLU and sigmoid; lane-dense phase output."""
    Bt, L, C = x_ref.shape
    scale, shift = _bn_scale_shift(stats_ref, gamma_ref, beta_ref, count)
    xn = jnp.maximum(x_ref[...].astype(jnp.float32) * scale.reshape(1, 1, C)
                     + shift.reshape(1, 1, C), 0.0)
    z = jnp.zeros((Bt, 1, C), jnp.float32)
    xp = jnp.concatenate([z, xn, z], axis=1)                   # [Bt, L+2, C]
    xm1, x0, xp1 = xp[:, 0:L, :], xp[:, 1:L + 1, :], xp[:, 2:L + 2, :]
    w = w_ref[...]                                             # [5, C] f32 taps
    t0 = w[0:1, :].reshape(1, 1, C)
    t1 = w[1:2, :].reshape(1, 1, C)
    t2 = w[2:3, :].reshape(1, 1, C)
    t3 = w[3:4, :].reshape(1, 1, C)
    t4 = w[4:5, :].reshape(1, 1, C)
    even = jnp.sum(xp1 * t0 + x0 * t2 + xm1 * t4, axis=-1)     # y[2l]   [Bt, L]
    odd = jnp.sum(xp1 * t1 + x0 * t3, axis=-1)                 # y[2l+1] [Bt, L]
    b = b_ref[...]                                             # [1, 1]

    def sig(v):
        return pl.reciprocal(1.0 + jnp.exp(-(v + b)), approx=True)

    out_ref[:, 0:1, :] = sig(even).reshape(Bt, 1, L)
    out_ref[:, 1:2, :] = sig(odd).reshape(Bt, 1, L)


def linear_kernel(*refs, apply_norm, count, reps):
    """y = x @ W + b, optionally preceded by fused BN+ReLU of the flattened
    encoder output (scale/shift replicated in-kernel to the flatten layout)."""
    if apply_norm:
        stats_ref, gamma_ref, beta_ref, x_ref, w_ref, b_ref, out_ref = refs
    else:
        x_ref, w_ref, b_ref, out_ref = refs
    x = x_ref[...]
    if apply_norm:
        scale, shift = _bn_scale_shift(stats_ref, gamma_ref, beta_ref, count)
        scale = jnp.concatenate([scale] * reps, axis=-1)       # [1, reps*C]
        shift = jnp.concatenate([shift] * reps, axis=-1)
        x = jnp.maximum(x.astype(jnp.float32) * scale + shift, 0.0)
    y = jnp.dot(x.astype(jnp.bfloat16), w_ref[...],
                preferred_element_type=jnp.float32) + b_ref[...]
    out_ref[...] = y.astype(out_ref.dtype)


# ----------------------------------------------------------------------------
# pallas_call wrappers (batch-tiled grids)
# ----------------------------------------------------------------------------
def conv_first(x, w, bt):
    B, L, _ = x.shape
    H = w.shape[1]
    nb = B // bt
    return pl.pallas_call(
        conv_first_kernel, grid=(nb,),
        in_specs=[pl.BlockSpec((bt, L, 2), lambda i: (i, 0, 0)),
                  pl.BlockSpec(w.shape, lambda i: (0, 0))],
        out_specs=(pl.BlockSpec((bt, L, H), lambda i: (i, 0, 0)),
                   pl.BlockSpec((1, 2, H), lambda i: (i, 0, 0))),
        out_shape=(jax.ShapeDtypeStruct((B, L, H), jnp.bfloat16),
                   jax.ShapeDtypeStruct((nb, 2, H), jnp.float32)),
        compiler_params=_cparams())(x, w)


def conv_mid(x, w0, w1, w2, bn_in, bt, *, pair_norm, fold, zero_last, count):
    B, L, C = x.shape
    N = w0.shape[1]
    Cs = N // 2 if fold else N
    nb = B // bt
    apply_norm = bn_in is not None
    kern = functools.partial(conv_mid_kernel, apply_norm=apply_norm,
                             pair_norm=pair_norm, fold=fold,
                             zero_last=zero_last, count=count)
    in_specs, args = [], []
    if apply_norm:
        stats, gamma, beta = bn_in
        in_specs += [pl.BlockSpec(stats.shape, lambda i: (0, 0, 0)),
                     pl.BlockSpec(gamma.shape, lambda i: (0, 0)),
                     pl.BlockSpec(beta.shape, lambda i: (0, 0))]
        args += [stats, gamma, beta]
    in_specs += [pl.BlockSpec((bt, L, C), lambda i: (i, 0, 0)),
                 pl.BlockSpec(w0.shape, lambda i: (0, 0)),
                 pl.BlockSpec(w1.shape, lambda i: (0, 0)),
                 pl.BlockSpec(w2.shape, lambda i: (0, 0))]
    args += [x, w0, w1, w2]
    return pl.pallas_call(
        kern, grid=(nb,), in_specs=in_specs,
        out_specs=(pl.BlockSpec((bt, L, N), lambda i: (i, 0, 0)),
                   pl.BlockSpec((1, 2, Cs), lambda i: (i, 0, 0))),
        out_shape=(jax.ShapeDtypeStruct((B, L, N), jnp.bfloat16),
                   jax.ShapeDtypeStruct((nb, 2, Cs), jnp.float32)),
        compiler_params=_cparams())(*args)


def conv_last(x, w_taps, bias, bn_in, bt, count):
    B, L, C = x.shape
    nb = B // bt
    stats, gamma, beta = bn_in
    kern = functools.partial(conv_last_kernel, count=count)
    return pl.pallas_call(
        kern, grid=(nb,),
        in_specs=[pl.BlockSpec(stats.shape, lambda i: (0, 0, 0)),
                  pl.BlockSpec(gamma.shape, lambda i: (0, 0)),
                  pl.BlockSpec(beta.shape, lambda i: (0, 0)),
                  pl.BlockSpec((bt, L, C), lambda i: (i, 0, 0)),
                  pl.BlockSpec(w_taps.shape, lambda i: (0, 0)),
                  pl.BlockSpec(bias.shape, lambda i: (0, 0))],
        out_specs=pl.BlockSpec((bt, 2, L), lambda i: (i, 0, 0)),
        out_shape=jax.ShapeDtypeStruct((B, 2, L), jnp.float32),
        compiler_params=_cparams())(stats, gamma, beta, x, w_taps, bias)


def linear_call(x, w, b, bn_in, bt, *, count=1.0, reps=1, out_dtype=jnp.float32):
    B, In = x.shape
    Out = w.shape[1]
    if B % bt != 0 or (bt % 8 != 0 and bt != B):
        bt = B                     # 2-D block: second-minor must be 8-aligned or full
    nb = B // bt
    apply_norm = bn_in is not None
    kern = functools.partial(linear_kernel, apply_norm=apply_norm,
                             count=count, reps=reps)
    in_specs, args = [], []
    if apply_norm:
        stats, gamma, beta = bn_in
        in_specs += [pl.BlockSpec(stats.shape, lambda i: (0, 0, 0)),
                     pl.BlockSpec(gamma.shape, lambda i: (0, 0)),
                     pl.BlockSpec(beta.shape, lambda i: (0, 0))]
        args += [stats, gamma, beta]
    in_specs += [pl.BlockSpec((bt, In), lambda i: (i, 0)),
                 pl.BlockSpec(w.shape, lambda i: (0, 0)),
                 pl.BlockSpec(b.shape, lambda i: (0, 0))]
    args += [x, w, b]
    return pl.pallas_call(
        kern, grid=(nb,), in_specs=in_specs,
        out_specs=pl.BlockSpec((bt, Out), lambda i: (i, 0)),
        out_shape=jax.ShapeDtypeStruct((B, Out), out_dtype),
        compiler_params=_cparams())(*args)


# ----------------------------------------------------------------------------
# Misc wrapper helpers
# ----------------------------------------------------------------------------
def _pick_bt(B, target):
    divs = [t for t in range(1, min(B, target) + 1) if B % t == 0]
    even = [t for t in divs if (B // t) % 2 == 0]
    if even and even[-1] * 2 >= divs[-1]:
        return even[-1]            # prefer an even grid: v7x has 2 TensorCores
    return divs[-1]


def _linear_interp(x, out_size):
    """F.interpolate(mode='linear', align_corners=False) fix-up (wrapper-side,
    plain XLA) for configs where 8*enc_dim != input_dim (e.g. 504 -> 500)."""
    B, Lin = x.shape
    pos = (jnp.arange(out_size, dtype=jnp.float32) + 0.5) * (Lin / out_size) - 0.5
    pos = jnp.clip(pos, 0.0, Lin - 1)
    lo = jnp.floor(pos).astype(jnp.int32)
    hi = jnp.minimum(lo + 1, Lin - 1)
    w = pos - lo.astype(jnp.float32)
    return x[:, lo] * (1.0 - w) + x[:, hi] * w


# ----------------------------------------------------------------------------
# Parameter init (torch layouts generated, then permuted/packed once at init)
# ----------------------------------------------------------------------------
def init_params(key, input_dim, latent_dim, hidden_dim):
    H = hidden_dim
    E = input_dim
    for _ in range(3):
        E = (E + 1) // 2
    C3 = 4 * H
    flat = C3 * E
    keys = iter(jax.random.split(key, 32))

    def nrm(shape, scale=0.1):
        return scale * jax.random.normal(next(keys), shape, jnp.float32)

    params = {}

    # Encoder layer 1 (Conv1d 1->H): all 5 taps packed as one [5, H] weight.
    # (conv biases before BN are dropped: cancelled by training-mode mean sub)
    wt = nrm((H, 1, 5))
    params["enc1"] = dict(
        w=jnp.transpose(wt, (2, 1, 0)).reshape(5, H).astype(jnp.bfloat16),
        gamma=1.0 + nrm((1, H)), beta=nrm((1, H)))

    # Encoder layers 2-3 (Conv1d Ci->Co, stride 2 via pair layout):
    # three weight blocks per layer -> 3 accumulating matmuls, no lane concat.
    def enc_blocks(ci, co):
        wt = nrm((co, ci, 5))
        t = jnp.transpose(wt, (2, 1, 0))                      # [5, ci, co]
        w0 = jnp.concatenate([t[0], t[1]], axis=0)            # pair row l-1 taps
        w1 = jnp.concatenate([t[2], t[3]], axis=0)            # pair row l   taps
        w2 = t[4]                                             # pair row l+1 (first half)
        return (w0.astype(jnp.bfloat16), w1.astype(jnp.bfloat16),
                w2.astype(jnp.bfloat16))

    for name, ci, co in (("enc2", H, 2 * H), ("enc3", 2 * H, 4 * H)):
        w0, w1, w2 = enc_blocks(ci, co)
        params[name] = dict(w0=w0, w1=w1, w2=w2,
                            gamma=1.0 + nrm((1, co)), beta=nrm((1, co)))

    # fc_encode / fc_decode: permute once so the kernels consume a channel-last
    # flatten (free reshapes, no transposes between pallas_calls).
    wt = nrm((latent_dim, flat))
    w_fe = wt.reshape(latent_dim, C3, E).transpose(0, 2, 1).reshape(latent_dim, flat).T
    params["fc_enc"] = dict(w=w_fe.astype(jnp.bfloat16), b=nrm((1, latent_dim)))

    wt = nrm((flat, latent_dim))
    bvec = nrm((flat,))
    w_fd = wt.T.reshape(latent_dim, C3, E).transpose(0, 2, 1).reshape(latent_dim, flat)
    b_fd = bvec.reshape(C3, E).T.reshape(1, flat)
    params["fc_dec"] = dict(w=w_fd.astype(jnp.bfloat16), b=b_fd)

    # Decoder ConvTranspose1d layers 1-2: phase-split tap blocks [Ci, 2*Co]
    # (even columns: y[2l] = x[l-1]w4 + x[l]w2 + x[l+1]w0;
    #  odd  columns: y[2l+1] =           x[l]w3 + x[l+1]w1).
    def dec_blocks(ci, co):
        wt = nrm((ci, co, 5))
        zeros = jnp.zeros((ci, co), jnp.float32)
        wm1 = jnp.concatenate([wt[:, :, 4], zeros], axis=1)        # slice l-1
        wc = jnp.concatenate([wt[:, :, 2], wt[:, :, 3]], axis=1)   # slice l
        wp1 = jnp.concatenate([wt[:, :, 0], wt[:, :, 1]], axis=1)  # slice l+1
        return (wm1.astype(jnp.bfloat16), wc.astype(jnp.bfloat16),
                wp1.astype(jnp.bfloat16))

    for name, ci, co in (("dec1", 4 * H, 2 * H), ("dec2", 2 * H, H)):
        w0, w1, w2 = dec_blocks(ci, co)
        params[name] = dict(w0=w0, w1=w1, w2=w2,
                            gamma=1.0 + nrm((1, co)), beta=nrm((1, co)))

    # Final ConvTranspose (H -> 1) + sigmoid: VPU tap weights [5, H] (f32) + bias.
    wt = nrm((H, 1, 5))
    params["dec3"] = dict(w=jnp.transpose(wt[:, 0, :], (1, 0)), b=nrm((1, 1)))
    return params, E, flat


# ----------------------------------------------------------------------------
# Forward pass
# ----------------------------------------------------------------------------
def forward(params, x, *, input_dim, hidden_dim, enc_dim, batch_tile=16):
    B = x.shape[0]
    H, E = hidden_dim, enc_dim
    bt = _pick_bt(B, batch_tile)

    # ---------------- encoder ----------------
    h = x.astype(jnp.bfloat16)
    L = input_dim
    if L % 2:
        h = jnp.pad(h, ((0, 0), (0, 1)))                       # raw zero = conv pad
        L += 1
    h = h.reshape(B, L // 2, 2)                                 # free pair reshape
    p1 = params["enc1"]
    h, stats = conv_first(h, p1["w"], bt)
    L //= 2
    bn_prev = (stats, p1["gamma"], p1["beta"])
    count_prev = float(B * L)

    for name in ("enc2", "enc3"):
        p = params[name]
        pad = bool(L % 2)
        if pad:
            h = jnp.pad(h, ((0, 0), (0, 1), (0, 0)))
            L += 1
        C = h.shape[-1]
        h = h.reshape(B, L // 2, 2 * C)                         # free pair reshape
        h, stats = conv_mid(h, p["w0"], p["w1"], p["w2"], bn_prev, bt,
                            pair_norm=True, fold=False, zero_last=pad,
                            count=count_prev)
        L //= 2
        bn_prev = (stats, p["gamma"], p["beta"])
        count_prev = float(B * L)

    flat_in = h.reshape(B, -1)                                  # channel-last flatten, free
    pfe = params["fc_enc"]
    latent = linear_call(flat_in, pfe["w"], pfe["b"], bn_prev, bt,
                         count=count_prev, reps=E, out_dtype=jnp.float32)

    # ---------------- decoder ----------------
    pfd = params["fc_dec"]
    d = linear_call(latent, pfd["w"], pfd["b"], None, bt, out_dtype=jnp.bfloat16)
    h = d.reshape(B, E, 4 * H)                                  # free (weights permuted)
    L = E
    bn_prev = None
    count_prev = 1.0
    for name in ("dec1", "dec2"):
        p = params[name]
        Co = p["w0"].shape[1] // 2
        h, stats = conv_mid(h, p["w0"], p["w1"], p["w2"], bn_prev, bt,
                            pair_norm=False, fold=True, zero_last=False,
                            count=count_prev)
        h = h.reshape(B, 2 * L, Co)                             # free phase interleave
        L *= 2
        bn_prev = (stats, p["gamma"], p["beta"])
        count_prev = float(B * L)

    p3 = params["dec3"]
    out = conv_last(h, p3["w"], p3["b"], bn_prev, bt, count_prev)   # [B, 2, L] f32
    recon = jnp.transpose(out, (0, 2, 1)).reshape(B, 2 * L)         # tiny interleave

    if recon.shape[1] != input_dim:
        # TODO(synk): running-stats (eval-mode) BatchNorm path is not implemented;
        # this interpolate fix-up mirrors F.interpolate(mode='linear').
        recon = _linear_interp(recon, input_dim)
    return recon, latent


# ----------------------------------------------------------------------------
if __name__ == "__main__":
    # Small shapes consistent with the module (defaults are 500/64/128).
    input_dim, latent_dim, hidden_dim, batch = 64, 16, 8, 8

    key = jax.random.PRNGKey(0)
    kp, kx = jax.random.split(key)
    params, enc_dim, flat = init_params(kp, input_dim, latent_dim, hidden_dim)
    x = jax.random.uniform(kx, (batch, input_dim), jnp.float32)

    fwd = jax.jit(functools.partial(forward, input_dim=input_dim,
                                    hidden_dim=hidden_dim, enc_dim=enc_dim,
                                    batch_tile=4))
    recon, latent = fwd(params, x)
    jax.block_until_ready((recon, latent))

    assert recon.shape == (batch, input_dim), recon.shape
    assert latent.shape == (batch, latent_dim), latent.shape
    assert recon.dtype == jnp.float32 and latent.dtype == jnp.float32
    assert bool(jnp.all(jnp.isfinite(recon))) and bool(jnp.all(jnp.isfinite(latent)))
    print("KERNEL_OK")
</pallas_src>

<mosaic_0001>
module attributes {stable_mosaic.version = 11 : i64} {
  func.func @conv_first_kernel(%arg0: i32, %arg1: memref<4x32x2xbf16, #tpu.memory_space<vmem>>, %arg2: memref<5x8xbf16, #tpu.memory_space<vmem>>, %arg3: memref<4x32x8xbf16, #tpu.memory_space<vmem>>, %arg4: memref<1x2x8xf32, #tpu.memory_space<vmem>>) attributes {dimension_semantics = [#tpu.dimension_semantics<parallel>], iteration_bounds = array<i64: 2>, scalar_prefetch = 0 : i64, scratch_operands = 0 : i64, tpu.core_type = #tpu.core_type<tc>, window_params = [{transform_indices = @transform_0, window_bounds = array<i64: 4, 32, 2>}, {pipeline_mode = #tpu.pipeline_mode<synchronous>, transform_indices = @transform_1, window_bounds = array<i64: 5, 8>}, {transform_indices = @transform_2, window_bounds = array<i64: 4, 32, 8>}, {transform_indices = @transform_3, window_bounds = array<i64: 1, 2, 8>}]} {
    %c0 = arith.constant 0 : index
    %c0_0 = arith.constant 0 : index
    %c0_1 = arith.constant 0 : index
    %0 = vector.load %arg1[%c0, %c0_0, %c0_1] : memref<4x32x2xbf16, #tpu.memory_space<vmem>>, vector<4x32x2xbf16>
    %cst = arith.constant 0.000000e+00 : bf16
    %1 = vector.broadcast %cst : bf16 to vector<4x1x2xbf16>
    %2 = tpu.concatenate %1, %0, %1 in 1 : vector<4x1x2xbf16>, vector<4x32x2xbf16>, vector<4x1x2xbf16> -> vector<4x34x2xbf16>
    %3 = vector.extract_strided_slice %2 {offsets = [0, 0, 0], sizes = [4, 32, 2], strides = [1, 1, 1]} : vector<4x34x2xbf16> to vector<4x32x2xbf16>
    %4 = vector.extract_strided_slice %2 {offsets = [0, 1, 0], sizes = [4, 32, 2], strides = [1, 1, 1]} : vector<4x34x2xbf16> to vector<4x32x2xbf16>
    %5 = vector.extract_strided_slice %2 {offsets = [0, 2, 0], sizes = [4, 32, 1], strides = [1, 1, 1]} : vector<4x34x2xbf16> to vector<4x32x1xbf16>
    %6 = tpu.concatenate %3, %4, %5 in 2 : vector<4x32x2xbf16>, vector<4x32x2xbf16>, vector<4x32x1xbf16> -> vector<4x32x5xbf16>
    %7 = vector.shape_cast %6 : vector<4x32x5xbf16> to vector<128x5xbf16>
    %c0_2 = arith.constant 0 : index
    %c0_3 = arith.constant 0 : index
    %8 = vector.load %arg2[%c0_2, %c0_3] : memref<5x8xbf16, #tpu.memory_space<vmem>>, vector<5x8xbf16>
    %cst_4 = arith.constant dense<0.000000e+00> : vector<128x8xf32>
    %9 = tpu.matmul %7, %8, %cst_4 {dimension_numbers = #tpu.dot_dimension_numbers<[1], [0], [0], [1], [0, 0, 1, 1], [], []>} : vector<128x5xbf16>, vector<5x8xbf16>, vector<128x8xf32> -> vector<128x8xf32>
    %10 = arith.truncf %9 : vector<128x8xf32> to vector<128x8xbf16>
    %11 = vector.shape_cast %10 : vector<128x8xbf16> to vector<4x32x8xbf16>
    %c0_5 = arith.constant 0 : index
    %c0_6 = arith.constant 0 : index
    %c0_7 = arith.constant 0 : index
    %12 = vector.load %arg3[%c0_5, %c0_6, %c0_7] : memref<4x32x8xbf16, #tpu.memory_space<vmem>>, vector<4x32x8xbf16>
    tpu.vector_store %arg3[%c0_5, %c0_6, %c0_7], %11 {strides = array<i32>} : memref<4x32x8xbf16, #tpu.memory_space<vmem>>, vector<4x32x8xbf16>,
    %cst_8 = arith.constant dense<0.000000e+00> : vector<8xf32>
    %13 = vector.multi_reduction <add>, %9, %cst_8 [0] : vector<128x8xf32> to vector<8xf32>
    %14 = vector.shape_cast %13 : vector<8xf32> to vector<1x8xf32>
    %15 = arith.mulf %9, %9 : vector<128x8xf32>
    %cst_9 = arith.constant dense<0.000000e+00> : vector<8xf32>
    %16 = vector.multi_reduction <add>, %15, %cst_9 [0] : vector<128x8xf32> to vector<8xf32>
    %17 = vector.shape_cast %16 : vector<8xf32> to vector<1x8xf32>
    %18 = tpu.concatenate %14, %17 in 0 : vector<1x8xf32>, vector<1x8xf32> -> vector<2x8xf32>
    %19 = vector.shape_cast %18 : vector<2x8xf32> to vector<1x2x8xf32>
    %c0_10 = arith.constant 0 : index
    %c0_11 = arith.constant 0 : index
    %c0_12 = arith.constant 0 : index
    %20 = vector.load %arg4[%c0_10, %c0_11, %c0_12] : memref<1x2x8xf32, #tpu.memory_space<vmem>>, vector<1x2x8xf32>
    tpu.vector_store %arg4[%c0_10, %c0_11, %c0_12], %19 {strides = array<i32>} : memref<1x2x8xf32, #tpu.memory_space<vmem>>, vector<1x2x8xf32>,
    return
  }
  func.func @transform_0(%arg0: i32) -> (i32, i32, i32) {
    %c0_i32 = arith.constant 0 : i32
    %c0_i32_0 = arith.constant 0 : i32
    %c0_i32_1 = arith.constant 0 : i32
    return %arg0, %c0_i32, %c0_i32_0 : i32, i32, i32
  }
  func.func @transform_1(%arg0: i32) -> (i32, i32) {
    %c0_i32 = arith.constant 0 : i32
    %c0_i32_0 = arith.constant 0 : i32
    %c0_i32_1 = arith.constant 0 : i32
    return %c0_i32, %c0_i32_0 : i32, i32
  }
  func.func @transform_2(%arg0: i32) -> (i32, i32, i32) {
    %c0_i32 = arith.constant 0 : i32
    %c0_i32_0 = arith.constant 0 : i32
    %c0_i32_1 = arith.constant 0 : i32
    return %arg0, %c0_i32, %c0_i32_0 : i32, i32, i32
  }
  func.func @transform_3(%arg0: i32) -> (i32, i32, i32) {
    %c0_i32 = arith.constant 0 : i32
    %c0_i32_0 = arith.constant 0 : i32
    %c0_i32_1 = arith.constant 0 : i32
    return %arg0, %c0_i32, %c0_i32_0 : i32, i32, i32
  }
}

module attributes {stable_mosaic.version = 11 : i64} {
  func.func @conv_mid_kernel(%arg0: i32, %arg1: memref<2x2x8xf32, #tpu.memory_space<vmem>>, %arg2: memref<1x8xf32, #tpu.memory_space<vmem>>, %arg3: memref<1x8xf32, #tpu.memory_space<vmem>>, %arg4: memref<4x16x16xbf16, #tpu.memory_space<vmem>>, %arg5: memref<16x16xbf16, #tpu.memory_space<vmem>>, %arg6: memref<16x16xbf16, #tpu.memory_space<vmem>>, %arg7: memref<8x16xbf16, #tpu.memory_space<vmem>>, %arg8: memref<4x16x16xbf16, #tpu.memory_space<vmem>>, %arg9: memref<1x2x16xf32, #tpu.memory_space<vmem>>) attributes {dimension_semantics = [#tpu.dimension_semantics<parallel>], iteration_bounds = array<i64: 2>, scalar_prefetch = 0 : i64, scratch_operands = 0 : i64, tpu.core_type = #tpu.core_type<tc>, window_params = [{pipeline_mode = #tpu.pipeline_mode<synchronous>, transform_indices = @transform_0, window_bounds = array<i64: 2, 2, 8>}, {pipeline_mode = #tpu.pipeline_mode<synchronous>, transform_indices = @transform_1, window_bounds = array<i64: 1, 8>}, {pipeline_mode = #tpu.pipeline_mode<synchronous>, transform_indices = @transform_2, window_bounds = array<i64: 1, 8>}, {transform_indices = @transform_3, window_bounds = array<i64: 4, 16, 16>}, {pipeline_mode = #tpu.pipeline_mode<synchronous>, transform_indices = @transform_4, window_bounds = array<i64: 16, 16>}, {pipeline_mode = #tpu.pipeline_mode<synchronous>, transform_indices = @transform_5, window_bounds = array<i64: 16, 16>}, {pipeline_mode = #tpu.pipeline_mode<synchronous>, transform_indices = @transform_6, window_bounds = array<i64: 8, 16>}, {transform_indices = @transform_7, window_bounds = array<i64: 4, 16, 16>}, {transform_indices = @transform_8, window_bounds = array<i64: 1, 2, 16>}]} {
    %c0 = arith.constant 0 : index
    %c0_0 = arith.constant 0 : index
    %c0_1 = arith.constant 0 : index
    %0 = vector.load %arg4[%c0, %c0_0, %c0_1] : memref<4x16x16xbf16, #tpu.memory_space<vmem>>, vector<4x16x16xbf16>
    %c0_2 = arith.constant 0 : index
    %c0_3 = arith.constant 0 : index
    %c0_4 = arith.constant 0 : index
    %1 = vector.load %arg1[%c0_2, %c0_3, %c0_4] : memref<2x2x8xf32, #tpu.memory_space<vmem>>, vector<2x2x8xf32>
    %cst = arith.constant dense<0.000000e+00> : vector<2x8xf32>
    %2 = vector.multi_reduction <add>, %1, %cst [0] : vector<2x2x8xf32> to vector<2x8xf32>
    %3 = vector.extract_strided_slice %2 {offsets = [0, 0], sizes = [1, 8], strides = [1, 1]} : vector<2x8xf32> to vector<1x8xf32>
    %cst_5 = arith.constant 3.906250e-03 : f32
    %4 = vector.broadcast %cst_5 : f32 to vector<1x8xf32>
    %5 = arith.mulf %3, %4 : vector<1x8xf32>
    %6 = vector.extract_strided_slice %2 {offsets = [1, 0], sizes = [1, 8], strides = [1, 1]} : vector<2x8xf32> to vector<1x8xf32>
    %cst_6 = arith.constant 3.906250e-03 : f32
    %7 = vector.broadcast %cst_6 : f32 to vector<1x8xf32>
    %8 = arith.mulf %6, %7 : vector<1x8xf32>
    %9 = arith.mulf %5, %5 : vector<1x8xf32>
    %10 = arith.subf %8, %9 : vector<1x8xf32>
    %cst_7 = arith.constant 0.000000e+00 : f32
    %11 = vector.broadcast %cst_7 : f32 to vector<1x8xf32>
    %12 = arith.maximumf %10, %11 : vector<1x8xf32>
    %c0_8 = arith.constant 0 : index
    %c0_9 = arith.constant 0 : index
    %13 = vector.load %arg2[%c0_8, %c0_9] : memref<1x8xf32, #tpu.memory_space<vmem>>, vector<1x8xf32>
    %cst_10 = arith.constant 9.99999974E-6 : f32
    %14 = vector.broadcast %cst_10 : f32 to vector<1x8xf32>
    %15 = arith.addf %12, %14 : vector<1x8xf32>
    %16 = math.rsqrt %15 : vector<1x8xf32>
    %17 = arith.mulf %13, %16 : vector<1x8xf32>
    %c0_11 = arith.constant 0 : index
    %c0_12 = arith.constant 0 : index
    %18 = vector.load %arg3[%c0_11, %c0_12] : memref<1x8xf32, #tpu.memory_space<vmem>>, vector<1x8xf32>
    %19 = arith.mulf %5, %17 : vector<1x8xf32>
    %20 = arith.subf %18, %19 : vector<1x8xf32>
    %21 = tpu.concatenate %17, %17 in 1 : vector<1x8xf32>, vector<1x8xf32> -> vector<1x16xf32>
    %22 = tpu.concatenate %20, %20 in 1 : vector<1x8xf32>, vector<1x8xf32> -> vector<1x16xf32>
    %23 = arith.extf %0 : vector<4x16x16xbf16> to vector<4x16x16xf32>
    %24 = vector.shape_cast %21 : vector<1x16xf32> to vector<1x1x16xf32>
    %25 = vector.broadcast %24 : vector<1x1x16xf32> to vector<4x16x16xf32>
    %26 = arith.mulf %23, %25 : vector<4x16x16xf32>
    %27 = vector.shape_cast %22 : vector<1x16xf32> to vector<1x1x16xf32>
    %28 = vector.broadcast %27 : vector<1x1x16xf32> to vector<4x16x16xf32>
    %29 = arith.addf %26, %28 : vector<4x16x16xf32>
    %cst_13 = arith.constant 0.000000e+00 : f32
    %30 = vector.broadcast %cst_13 : f32 to vector<4x16x16xf32>
    %31 = arith.maximumf %29, %30 : vector<4x16x16xf32>
    %32 = arith.truncf %31 : vector<4x16x16xf32> to vector<4x16x16xbf16>
    %cst_14 = arith.constant 0.000000e+00 : bf16
    %33 = vector.broadcast %cst_14 : bf16 to vector<4x1x16xbf16>
    %34 = tpu.concatenate %33, %32, %33 in 1 : vector<4x1x16xbf16>, vector<4x16x16xbf16>, vector<4x1x16xbf16> -> vector<4x18x16xbf16>
    %35 = vector.extract_strided_slice %34 {offsets = [0, 0, 0], sizes = [4, 16, 16], strides = [1, 1, 1]} : vector<4x18x16xbf16> to vector<4x16x16xbf16>
    %36 = vector.shape_cast %35 : vector<4x16x16xbf16> to vector<64x16xbf16>
    %c0_15 = arith.constant 0 : index
    %c0_16 = arith.constant 0 : index
    %37 = vector.load %arg5[%c0_15, %c0_16] : memref<16x16xbf16, #tpu.memory_space<vmem>>, vector<16x16xbf16>
    %cst_17 = arith.constant dense<0.000000e+00> : vector<64x16xf32>
    %38 = tpu.matmul %36, %37, %cst_17 {dimension_numbers = #tpu.dot_dimension_numbers<[1], [0], [0], [1], [0, 0, 1, 1], [], []>} : vector<64x16xbf16>, vector<16x16xbf16>, vector<64x16xf32> -> vector<64x16xf32>
    %39 = vector.extract_strided_slice %34 {offsets = [0, 1, 0], sizes = [4, 16, 16], strides = [1, 1, 1]} : vector<4x18x16xbf16> to vector<4x16x16xbf16>
    %40 = vector.shape_cast %39 : vector<4x16x16xbf16> to vector<64x16xbf16>
    %c0_18 = arith.constant 0 : index
    %c0_19 = arith.constant 0 : index
    %41 = vector.load %arg6[%c0_18, %c0_19] : memref<16x16xbf16, #tpu.memory_space<vmem>>, vector<16x16xbf16>
    %cst_20 = arith.constant dense<0.000000e+00> : vector<64x16xf32>
    %42 = tpu.matmul %40, %41, %cst_20 {dimension_numbers = #tpu.dot_dimension_numbers<[1], [0], [0], [1], [0, 0, 1, 1], [], []>} : vector<64x16xbf16>, vector<16x16xbf16>, vector<64x16xf32> -> vector<64x16xf32>
    %43 = arith.addf %38, %42 : vector<64x16xf32>
    %44 = vector.extract_strided_slice %34 {offsets = [0, 2, 0], sizes = [4, 16, 8], strides = [1, 1, 1]} : vector<4x18x16xbf16> to vector<4x16x8xbf16>
    %45 = vector.shape_cast %44 : vector<4x16x8xbf16> to vector<64x8xbf16>
    %c0_21 = arith.constant 0 : index
    %c0_22 = arith.constant 0 : index
    %46 = vector.load %arg7[%c0_21, %c0_22] : memref<8x16xbf16, #tpu.memory_space<vmem>>, vector<8x16xbf16>
    %cst_23 = arith.constant dense<0.000000e+00> : vector<64x16xf32>
    %47 = tpu.matmul %45, %46, %cst_23 {dimension_numbers = #tpu.dot_dimension_numbers<[1], [0], [0], [1], [0, 0, 1, 1], [], []>} : vector<64x8xbf16>, vector<8x16xbf16>, vector<64x16xf32> -> vector<64x16xf32>
    %48 = arith.addf %43, %47 : vector<64x16xf32>
    %49 = arith.truncf %48 : vector<64x16xf32> to vector<64x16xbf16>
    %50 = vector.shape_cast %49 : vector<64x16xbf16> to vector<4x16x16xbf16>
    %c0_24 = arith.constant 0 : index
    %c0_25 = arith.constant 0 : index
    %c0_26 = arith.constant 0 : index
    %51 = vector.load %arg8[%c0_24, %c0_25, %c0_26] : memref<4x16x16xbf16, #tpu.memory_space<vmem>>, vector<4x16x16xbf16>
    tpu.vector_store %arg8[%c0_24, %c0_25, %c0_26], %50 {strides = array<i32>} : memref<4x16x16xbf16, #tpu.memory_space<vmem>>, vector<4x16x16xbf16>,
    %cst_27 = arith.constant dense<0.000000e+00> : vector<16xf32>
    %52 = vector.multi_reduction <add>, %48, %cst_27 [0] : vector<64x16xf32> to vector<16xf32>
    %53 = vector.shape_cast %52 : vector<16xf32> to vector<1x16xf32>
    %54 = arith.mulf %48, %48 : vector<64x16xf32>
    %cst_28 = arith.constant dense<0.000000e+00> : vector<16xf32>
    %55 = vector.multi_reduction <add>, %54, %cst_28 [0] : vector<64x16xf32> to vector<16xf32>
    %56 = vector.shape_cast %55 : vector<16xf32> to vector<1x16xf32>
    %57 = tpu.concatenate %53, %56 in 0 : vector<1x16xf32>, vector<1x16xf32> -> vector<2x16xf32>
    %58 = vector.shape_cast %57 : vector<2x16xf32> to vector<1x2x16xf32>
    %c0_29 = arith.constant 0 : index
    %c0_30 = arith.constant 0 : index
    %c0_31 = arith.constant 0 : index
    %59 = vector.load %arg9[%c0_29, %c0_30, %c0_31] : memref<1x2x16xf32, #tpu.memory_space<vmem>>, vector<1x2x16xf32>
    tpu.vector_store %arg9[%c0_29, %c0_30, %c0_31], %58 {strides = array<i32>} : memref<1x2x16xf32, #tpu.memory_space<vmem>>, vector<1x2x16xf32>,
    return
  }
  func.func @transform_0(%arg0: i32) -> (i32, i32, i32) {
    %c0_i32 = arith.constant 0 : i32
    %c0_i32_0 = arith.constant 0 : i32
    %c0_i32_1 = arith.constant 0 : i32
    %c0_i32_2 = arith.constant 0 : i32
    return %c0_i32, %c0_i32_0, %c0_i32_1 : i32, i32, i32
  }
  func.func @transform_1(%arg0: i32) -> (i32, i32) {
    %c0_i32 = arith.constant 0 : i32
    %c0_i32_0 = arith.constant 0 : i32
    %c0_i32_1 = arith.constant 0 : i32
    return %c0_i32, %c0_i32_0 : i32, i32
  }
  func.func @transform_2(%arg0: i32) -> (i32, i32) {
    %c0_i32 = arith.constant 0 : i32
    %c0_i32_0 = arith.constant 0 : i32
    %c0_i32_1 = arith.constant 0 : i32
    return %c0_i32, %c0_i32_0 : i32, i32
  }
  func.func @transform_3(%arg0: i32) -> (i32, i32, i32) {
    %c0_i32 = arith.constant 0 : i32
    %c0_i32_0 = arith.constant 0 : i32
    %c0_i32_1 = arith.constant 0 : i32
    return %arg0, %c0_i32, %c0_i32_0 : i32, i32, i32
  }
  func.func @transform_4(%arg0: i32) -> (i32, i32) {
    %c0_i32 = arith.constant 0 : i32
    %c0_i32_0 = arith.constant 0 : i32
    %c0_i32_1 = arith.constant 0 : i32
    return %c0_i32, %c0_i32_0 : i32, i32
  }
  func.func @transform_5(%arg0: i32) -> (i32, i32) {
    %c0_i32 = arith.constant 0 : i32
    %c0_i32_0 = arith.constant 0 : i32
    %c0_i32_1 = arith.constant 0 : i32
    return %c0_i32, %c0_i32_0 : i32, i32
  }
  func.func @transform_6(%arg0: i32) -> (i32, i32) {
    %c0_i32 = arith.constant 0 : i32
    %c0_i32_0 = arith.constant 0 : i32
    %c0_i32_1 = arith.constant 0 : i32
    return %c0_i32, %c0_i32_0 : i32, i32
  }
  func.func @transform_7(%arg0: i32) -> (i32, i32, i32) {
    %c0_i32 = arith.constant 0 : i32
    %c0_i32_0 = arith.constant 0 : i32
    %c0_i32_1 = arith.constant 0 : i32
    return %arg0, %c0_i32, %c0_i32_0 : i32, i32, i32
  }
  func.func @transform_8(%arg0: i32) -> (i32, i32, i32) {
    %c0_i32 = arith.constant 0 : i32
    %c0_i32_0 = arith.constant 0 : i32
    %c0_i32_1 = arith.constant 0 : i32
    return %arg0, %c0_i32, %c0_i32_0 : i32, i32, i32
  }
}

module attributes {stable_mosaic.version = 11 : i64} {
  func.func @conv_mid_kernel(%arg0: i32, %arg1: memref<2x2x16xf32, #tpu.memory_space<vmem>>, %arg2: memref<1x16xf32, #tpu.memory_space<vmem>>, %arg3: memref<1x16xf32, #tpu.memory_space<vmem>>, %arg4: memref<4x8x32xbf16, #tpu.memory_space<vmem>>, %arg5: memref<32x32xbf16, #tpu.memory_space<vmem>>, %arg6: memref<32x32xbf16, #tpu.memory_space<vmem>>, %arg7: memref<16x32xbf16, #tpu.memory_space<vmem>>, %arg8: memref<4x8x32xbf16, #tpu.memory_space<vmem>>, %arg9: memref<1x2x32xf32, #tpu.memory_space<vmem>>) attributes {dimension_semantics = [#tpu.dimension_semantics<parallel>], iteration_bounds = array<i64: 2>, scalar_prefetch = 0 : i64, scratch_operands = 0 : i64, tpu.core_type = #tpu.core_type<tc>, window_params = [{pipeline_mode = #tpu.pipeline_mode<synchronous>, transform_indices = @transform_0, window_bounds = array<i64: 2, 2, 16>}, {pipeline_mode = #tpu.pipeline_mode<synchronous>, transform_indices = @transform_1, window_bounds = array<i64: 1, 16>}, {pipeline_mode = #tpu.pipeline_mode<synchronous>, transform_indices = @transform_2, window_bounds = array<i64: 1, 16>}, {transform_indices = @transform_3, window_bounds = array<i64: 4, 8, 32>}, {pipeline_mode = #tpu.pipeline_mode<synchronous>, transform_indices = @transform_4, window_bounds = array<i64: 32, 32>}, {pipeline_mode = #tpu.pipeline_mode<synchronous>, transform_indices = @transform_5, window_bounds = array<i64: 32, 32>}, {pipeline_mode = #tpu.pipeline_mode<synchronous>, transform_indices = @transform_6, window_bounds = array<i64: 16, 32>}, {transform_indices = @transform_7, window_bounds = array<i64: 4, 8, 32>}, {transform_indices = @transform_8, window_bounds = array<i64: 1, 2, 32>}]} {
    %c0 = arith.constant 0 : index
    %c0_0 = arith.constant 0 : index
    %c0_1 = arith.constant 0 : index
    %0 = vector.load %arg4[%c0, %c0_0, %c0_1] : memref<4x8x32xbf16, #tpu.memory_space<vmem>>, vector<4x8x32xbf16>
    %c0_2 = arith.constant 0 : index
    %c0_3 = arith.constant 0 : index
    %c0_4 = arith.constant 0 : index
    %1 = vector.load %arg1[%c0_2, %c0_3, %c0_4] : memref<2x2x16xf32, #tpu.memory_space<vmem>>, vector<2x2x16xf32>
    %cst = arith.constant dense<0.000000e+00> : vector<2x16xf32>
    %2 = vector.multi_reduction <add>, %1, %cst [0] : vector<2x2x16xf32> to vector<2x16xf32>
    %3 = vector.extract_strided_slice %2 {offsets = [0, 0], sizes = [1, 16], strides = [1, 1]} : vector<2x16xf32> to vector<1x16xf32>
    %cst_5 = arith.constant 7.812500e-03 : f32
    %4 = vector.broadcast %cst_5 : f32 to vector<1x16xf32>
    %5 = arith.mulf %3, %4 : vector<1x16xf32>
    %6 = vector.extract_strided_slice %2 {offsets = [1, 0], sizes = [1, 16], strides = [1, 1]} : vector<2x16xf32> to vector<1x16xf32>
    %cst_6 = arith.constant 7.812500e-03 : f32
    %7 = vector.broadcast %cst_6 : f32 to vector<1x16xf32>
    %8 = arith.mulf %6, %7 : vector<1x16xf32>
    %9 = arith.mulf %5, %5 : vector<1x16xf32>
    %10 = arith.subf %8, %9 : vector<1x16xf32>
    %cst_7 = arith.constant 0.000000e+00 : f32
    %11 = vector.broadcast %cst_7 : f32 to vector<1x16xf32>
    %12 = arith.maximumf %10, %11 : vector<1x16xf32>
    %c0_8 = arith.constant 0 : index
    %c0_9 = arith.constant 0 : index
    %13 = vector.load %arg2[%c0_8, %c0_9] : memref<1x16xf32, #tpu.memory_space<vmem>>, vector<1x16xf32>
    %cst_10 = arith.constant 9.99999974E-6 : f32
    %14 = vector.broadcast %cst_10 : f32 to vector<1x16xf32>
    %15 = arith.addf %12, %14 : vector<1x16xf32>
    %16 = math.rsqrt %15 : vector<1x16xf32>
    %17 = arith.mulf %13, %16 : vector<1x16xf32>
    %c0_11 = arith.constant 0 : index
    %c0_12 = arith.constant 0 : index
    %18 = vector.load %arg3[%c0_11, %c0_12] : memref<1x16xf32, #tpu.memory_space<vmem>>, vector<1x16xf32>
    %19 = arith.mulf %5, %17 : vector<1x16xf32>
    %20 = arith.subf %18, %19 : vector<1x16xf32>
    %21 = tpu.concatenate %17, %17 in 1 : vector<1x16xf32>, vector<1x16xf32> -> vector<1x32xf32>
    %22 = tpu.concatenate %20, %20 in 1 : vector<1x16xf32>, vector<1x16xf32> -> vector<1x32xf32>
    %23 = arith.extf %0 : vector<4x8x32xbf16> to vector<4x8x32xf32>
    %24 = vector.shape_cast %21 : vector<1x32xf32> to vector<1x1x32xf32>
    %25 = vector.broadcast %24 : vector<1x1x32xf32> to vector<4x8x32xf32>
    %26 = arith.mulf %23, %25 : vector<4x8x32xf32>
    %27 = vector.shape_cast %22 : vector<1x32xf32> to vector<1x1x32xf32>
    %28 = vector.broadcast %27 : vector<1x1x32xf32> to vector<4x8x32xf32>
    %29 = arith.addf %26, %28 : vector<4x8x32xf32>
    %cst_13 = arith.constant 0.000000e+00 : f32
    %30 = vector.broadcast %cst_13 : f32 to vector<4x8x32xf32>
    %31 = arith.maximumf %29, %30 : vector<4x8x32xf32>
    %32 = arith.truncf %31 : vector<4x8x32xf32> to vector<4x8x32xbf16>
    %cst_14 = arith.constant 0.000000e+00 : bf16
    %33 = vector.broadcast %cst_14 : bf16 to vector<4x1x32xbf16>
    %34 = tpu.concatenate %33, %32, %33 in 1 : vector<4x1x32xbf16>, vector<4x8x32xbf16>, vector<4x1x32xbf16> -> vector<4x10x32xbf16>
    %35 = vector.extract_strided_slice %34 {offsets = [0, 0, 0], sizes = [4, 8, 32], strides = [1, 1, 1]} : vector<4x10x32xbf16> to vector<4x8x32xbf16>
    %36 = vector.shape_cast %35 : vector<4x8x32xbf16> to vector<32x32xbf16>
    %c0_15 = arith.constant 0 : index
    %c0_16 = arith.constant 0 : index
    %37 = vector.load %arg5[%c0_15, %c0_16] : memref<32x32xbf16, #tpu.memory_space<vmem>>, vector<32x32xbf16>
    %cst_17 = arith.constant dense<0.000000e+00> : vector<32x32xf32>
    %38 = tpu.matmul %36, %37, %cst_17 {dimension_numbers = #tpu.dot_dimension_numbers<[1], [0], [0], [1], [0, 0, 1, 1], [], []>} : vector<32x32xbf16>, vector<32x32xbf16>, vector<32x32xf32> -> vector<32x32xf32>
    %39 = vector.extract_strided_slice %34 {offsets = [0, 1, 0], sizes = [4, 8, 32], strides = [1, 1, 1]} : vector<4x10x32xbf16> to vector<4x8x32xbf16>
    %40 = vector.shape_cast %39 : vector<4x8x32xbf16> to vector<32x32xbf16>
    %c0_18 = arith.constant 0 : index
    %c0_19 = arith.constant 0 : index
    %41 = vector.load %arg6[%c0_18, %c0_19] : memref<32x32xbf16, #tpu.memory_space<vmem>>, vector<32x32xbf16>
    %cst_20 = arith.constant dense<0.000000e+00> : vector<32x32xf32>
    %42 = tpu.matmul %40, %41, %cst_20 {dimension_numbers = #tpu.dot_dimension_numbers<[1], [0], [0], [1], [0, 0, 1, 1], [], []>} : vector<32x32xbf16>, vector<32x32xbf16>, vector<32x32xf32> -> vector<32x32xf32>
    %43 = arith.addf %38, %42 : vector<32x32xf32>
    %44 = vector.extract_strided_slice %34 {offsets = [0, 2, 0], sizes = [4, 8, 16], strides = [1, 1, 1]} : vector<4x10x32xbf16> to vector<4x8x16xbf16>
    %45 = vector.shape_cast %44 : vector<4x8x16xbf16> to vector<32x16xbf16>
    %c0_21 = arith.constant 0 : index
    %c0_22 = arith.constant 0 : index
    %46 = vector.load %arg7[%c0_21, %c0_22] : memref<16x32xbf16, #tpu.memory_space<vmem>>, vector<16x32xbf16>
    %cst_23 = arith.constant dense<0.000000e+00> : vector<32x32xf32>
    %47 = tpu.matmul %45, %46, %cst_23 {dimension_numbers = #tpu.dot_dimension_numbers<[1], [0], [0], [1], [0, 0, 1, 1], [], []>} : vector<32x16xbf16>, vector<16x32xbf16>, vector<32x32xf32> -> vector<32x32xf32>
    %48 = arith.addf %43, %47 : vector<32x32xf32>
    %49 = arith.truncf %48 : vector<32x32xf32> to vector<32x32xbf16>
    %50 = vector.shape_cast %49 : vector<32x32xbf16> to vector<4x8x32xbf16>
    %c0_24 = arith.constant 0 : index
    %c0_25 = arith.constant 0 : index
    %c0_26 = arith.constant 0 : index
    %51 = vector.load %arg8[%c0_24, %c0_25, %c0_26] : memref<4x8x32xbf16, #tpu.memory_space<vmem>>, vector<4x8x32xbf16>
    tpu.vector_store %arg8[%c0_24, %c0_25, %c0_26], %50 {strides = array<i32>} : memref<4x8x32xbf16, #tpu.memory_space<vmem>>, vector<4x8x32xbf16>,
    %cst_27 = arith.constant dense<0.000000e+00> : vector<32xf32>
    %52 = vector.multi_reduction <add>, %48, %cst_27 [0] : vector<32x32xf32> to vector<32xf32>
    %53 = vector.shape_cast %52 : vector<32xf32> to vector<1x32xf32>
    %54 = arith.mulf %48, %48 : vector<32x32xf32>
    %cst_28 = arith.constant dense<0.000000e+00> : vector<32xf32>
    %55 = vector.multi_reduction <add>, %54, %cst_28 [0] : vector<32x32xf32> to vector<32xf32>
    %56 = vector.shape_cast %55 : vector<32xf32> to vector<1x32xf32>
    %57 = tpu.concatenate %53, %56 in 0 : vector<1x32xf32>, vector<1x32xf32> -> vector<2x32xf32>
    %58 = vector.shape_cast %57 : vector<2x32xf32> to vector<1x2x32xf32>
    %c0_29 = arith.constant 0 : index
    %c0_30 = arith.constant 0 : index
    %c0_31 = arith.constant 0 : index
    %59 = vector.load %arg9[%c0_29, %c0_30, %c0_31] : memref<1x2x32xf32, #tpu.memory_space<vmem>>, vector<1x2x32xf32>
    tpu.vector_store %arg9[%c0_29, %c0_30, %c0_31], %58 {strides = array<i32>} : memref<1x2x32xf32, #tpu.memory_space<vmem>>, vector<1x2x32xf32>,
    return
  }
  func.func @transform_0(%arg0: i32) -> (i32, i32, i32) {
    %c0_i32 = arith.constant 0 : i32
    %c0_i32_0 = arith.constant 0 : i32
    %c0_i32_1 = arith.constant 0 : i32
    %c0_i32_2 = arith.constant 0 : i32
    return %c0_i32, %c0_i32_0, %c0_i32_1 : i32, i32, i32
  }
  func.func @transform_1(%arg0: i32) -> (i32, i32) {
    %c0_i32 = arith.constant 0 : i32
    %c0_i32_0 = arith.constant 0 : i32
    %c0_i32_1 = arith.constant 0 : i32
    return %c0_i32, %c0_i32_0 : i32, i32
  }
  func.func @transform_2(%arg0: i32) -> (i32, i32) {
    %c0_i32 = arith.constant 0 : i32
    %c0_i32_0 = arith.constant 0 : i32
    %c0_i32_1 = arith.constant 0 : i32
    return %c0_i32, %c0_i32_0 : i32, i32
  }
  func.func @transform_3(%arg0: i32) -> (i32, i32, i32) {
    %c0_i32 = arith.constant 0 : i32
    %c0_i32_0 = arith.constant 0 : i32
    %c0_i32_1 = arith.constant 0 : i32
    return %arg0, %c0_i32, %c0_i32_0 : i32, i32, i32
  }
  func.func @transform_4(%arg0: i32) -> (i32, i32) {
    %c0_i32 = arith.constant 0 : i32
    %c0_i32_0 = arith.constant 0 : i32
    %c0_i32_1 = arith.constant 0 : i32
    return %c0_i32, %c0_i32_0 : i32, i32
  }
  func.func @transform_5(%arg0: i32) -> (i32, i32) {
    %c0_i32 = arith.constant 0 : i32
    %c0_i32_0 = arith.constant 0 : i32
    %c0_i32_1 = arith.constant 0 : i32
    return %c0_i32, %c0_i32_0 : i32, i32
  }
  func.func @transform_6(%arg0: i32) -> (i32, i32) {
    %c0_i32 = arith.constant 0 : i32
    %c0_i32_0 = arith.constant 0 : i32
    %c0_i32_1 = arith.constant 0 : i32
    return %c0_i32, %c0_i32_0 : i32, i32
  }
  func.func @transform_7(%arg0: i32) -> (i32, i32, i32) {
    %c0_i32 = arith.constant 0 : i32
    %c0_i32_0 = arith.constant 0 : i32
    %c0_i32_1 = arith.constant 0 : i32
    return %arg0, %c0_i32, %c0_i32_0 : i32, i32, i32
  }
  func.func @transform_8(%arg0: i32) -> (i32, i32, i32) {
    %c0_i32 = arith.constant 0 : i32
    %c0_i32_0 = arith.constant 0 : i32
    %c0_i32_1 = arith.constant 0 : i32
    return %arg0, %c0_i32, %c0_i32_0 : i32, i32, i32
  }
}

module attributes {stable_mosaic.version = 11 : i64} {
  func.func @linear_kernel(%arg0: i32, %arg1: memref<2x2x32xf32, #tpu.memory_space<vmem>>, %arg2: memref<1x32xf32, #tpu.memory_space<vmem>>, %arg3: memref<1x32xf32, #tpu.memory_space<vmem>>, %arg4: memref<8x256xbf16, #tpu.memory_space<vmem>>, %arg5: memref<256x16xbf16, #tpu.memory_space<vmem>>, %arg6: memref<1x16xf32, #tpu.memory_space<vmem>>, %arg7: memref<8x16xf32, #tpu.memory_space<vmem>>) attributes {dimension_semantics = [#tpu.dimension_semantics<parallel>], iteration_bounds = array<i64: 1>, scalar_prefetch = 0 : i64, scratch_operands = 0 : i64, tpu.core_type = #tpu.core_type<tc>, window_params = [{pipeline_mode = #tpu.pipeline_mode<synchronous>, transform_indices = @transform_0, window_bounds = array<i64: 2, 2, 32>}, {pipeline_mode = #tpu.pipeline_mode<synchronous>, transform_indices = @transform_1, window_bounds = array<i64: 1, 32>}, {pipeline_mode = #tpu.pipeline_mode<synchronous>, transform_indices = @transform_2, window_bounds = array<i64: 1, 32>}, {transform_indices = @transform_3, window_bounds = array<i64: 8, 256>}, {pipeline_mode = #tpu.pipeline_mode<synchronous>, transform_indices = @transform_4, window_bounds = array<i64: 256, 16>}, {pipeline_mode = #tpu.pipeline_mode<synchronous>, transform_indices = @transform_5, window_bounds = array<i64: 1, 16>}, {transform_indices = @transform_6, window_bounds = array<i64: 8, 16>}]} {
    %c0 = arith.constant 0 : index
    %c0_0 = arith.constant 0 : index
    %0 = vector.load %arg4[%c0, %c0_0] : memref<8x256xbf16, #tpu.memory_space<vmem>>, vector<8x256xbf16>
    %c0_1 = arith.constant 0 : index
    %c0_2 = arith.constant 0 : index
    %c0_3 = arith.constant 0 : index
    %1 = vector.load %arg1[%c0_1, %c0_2, %c0_3] : memref<2x2x32xf32, #tpu.memory_space<vmem>>, vector<2x2x32xf32>
    %cst = arith.constant dense<0.000000e+00> : vector<2x32xf32>
    %2 = vector.multi_reduction <add>, %1, %cst [0] : vector<2x2x32xf32> to vector<2x32xf32>
    %3 = vector.extract_strided_slice %2 {offsets = [0, 0], sizes = [1, 32], strides = [1, 1]} : vector<2x32xf32> to vector<1x32xf32>
    %cst_4 = arith.constant 1.562500e-02 : f32
    %4 = vector.broadcast %cst_4 : f32 to vector<1x32xf32>
    %5 = arith.mulf %3, %4 : vector<1x32xf32>
    %6 = vector.extract_strided_slice %2 {offsets = [1, 0], sizes = [1, 32], strides = [1, 1]} : vector<2x32xf32> to vector<1x32xf32>
    %cst_5 = arith.constant 1.562500e-02 : f32
    %7 = vector.broadcast %cst_5 : f32 to vector<1x32xf32>
    %8 = arith.mulf %6, %7 : vector<1x32xf32>
    %9 = arith.mulf %5, %5 : vector<1x32xf32>
    %10 = arith.subf %8, %9 : vector<1x32xf32>
    %cst_6 = arith.constant 0.000000e+00 : f32
    %11 = vector.broadcast %cst_6 : f32 to vector<1x32xf32>
    %12 = arith.maximumf %10, %11 : vector<1x32xf32>
    %c0_7 = arith.constant 0 : index
    %c0_8 = arith.constant 0 : index
    %13 = vector.load %arg2[%c0_7, %c0_8] : memref<1x32xf32, #tpu.memory_space<vmem>>, vector<1x32xf32>
    %cst_9 = arith.constant 9.99999974E-6 : f32
    %14 = vector.broadcast %cst_9 : f32 to vector<1x32xf32>
    %15 = arith.addf %12, %14 : vector<1x32xf32>
    %16 = math.rsqrt %15 : vector<1x32xf32>
    %17 = arith.mulf %13, %16 : vector<1x32xf32>
    %c0_10 = arith.constant 0 : index
    %c0_11 = arith.constant 0 : index
    %18 = vector.load %arg3[%c0_10, %c0_11] : memref<1x32xf32, #tpu.memory_space<vmem>>, vector<1x32xf32>
    %19 = arith.mulf %5, %17 : vector<1x32xf32>
    %20 = arith.subf %18, %19 : vector<1x32xf32>
    %21 = tpu.concatenate %17, %17, %17, %17, %17, %17, %17, %17 in 1 : vector<1x32xf32>, vector<1x32xf32>, vector<1x32xf32>, vector<1x32xf32>, vector<1x32xf32>, vector<1x32xf32>, vector<1x32xf32>, vector<1x32xf32> -> vector<1x256xf32>
    %22 = tpu.concatenate %20, %20, %20, %20, %20, %20, %20, %20 in 1 : vector<1x32xf32>, vector<1x32xf32>, vector<1x32xf32>, vector<1x32xf32>, vector<1x32xf32>, vector<1x32xf32>, vector<1x32xf32>, vector<1x32xf32> -> vector<1x256xf32>
    %23 = arith.extf %0 : vector<8x256xbf16> to vector<8x256xf32>
    %24 = vector.broadcast %21 : vector<1x256xf32> to vector<8x256xf32>
    %25 = arith.mulf %23, %24 : vector<8x256xf32>
    %26 = vector.broadcast %22 : vector<1x256xf32> to vector<8x256xf32>
    %27 = arith.addf %25, %26 : vector<8x256xf32>
    %cst_12 = arith.constant 0.000000e+00 : f32
    %28 = vector.broadcast %cst_12 : f32 to vector<8x256xf32>
    %29 = arith.maximumf %27, %28 : vector<8x256xf32>
    %30 = arith.truncf %29 : vector<8x256xf32> to vector<8x256xbf16>
    %c0_13 = arith.constant 0 : index
    %c0_14 = arith.constant 0 : index
    %31 = vector.load %arg5[%c0_13, %c0_14] : memref<256x16xbf16, #tpu.memory_space<vmem>>, vector<256x16xbf16>
    %cst_15 = arith.constant dense<0.000000e+00> : vector<8x16xf32>
    %32 = tpu.matmul %30, %31, %cst_15 {dimension_numbers = #tpu.dot_dimension_numbers<[1], [0], [0], [1], [0, 0, 1, 1], [], []>} : vector<8x256xbf16>, vector<256x16xbf16>, vector<8x16xf32> -> vector<8x16xf32>
    %c0_16 = arith.constant 0 : index
    %c0_17 = arith.constant 0 : index
    %33 = vector.load %arg6[%c0_16, %c0_17] : memref<1x16xf32, #tpu.memory_space<vmem>>, vector<1x16xf32>
    %34 = vector.broadcast %33 : vector<1x16xf32> to vector<8x16xf32>
    %35 = arith.addf %32, %34 : vector<8x16xf32>
    %c0_18 = arith.constant 0 : index
    %c0_19 = arith.constant 0 : index
    %36 = vector.load %arg7[%c0_18, %c0_19] : memref<8x16xf32, #tpu.memory_space<vmem>>, vector<8x16xf32>
    tpu.vector_store %arg7[%c0_18, %c0_19], %35 {strides = array<i32>} : memref<8x16xf32, #tpu.memory_space<vmem>>, vector<8x16xf32>,
    return
  }
  func.func @transform_0(%arg0: i32) -> (i32, i32, i32) {
    %c0_i32 = arith.constant 0 : i32
    %c0_i32_0 = arith.constant 0 : i32
    %c0_i32_1 = arith.constant 0 : i32
    %c0_i32_2 = arith.constant 0 : i32
    return %c0_i32, %c0_i32_0, %c0_i32_1 : i32, i32, i32
  }
  func.func @transform_1(%arg0: i32) -> (i32, i32) {
    %c0_i32 = arith.constant 0 : i32
    %c0_i32_0 = arith.constant 0 : i32
    %c0_i32_1 = arith.constant 0 : i32
    return %c0_i32, %c0_i32_0 : i32, i32
  }
  func.func @transform_2(%arg0: i32) -> (i32, i32) {
    %c0_i32 = arith.constant 0 : i32
    %c0_i32_0 = arith.constant 0 : i32
    %c0_i32_1 = arith.constant 0 : i32
    return %c0_i32, %c0_i32_0 : i32, i32
  }
  func.func @transform_3(%arg0: i32) -> (i32, i32) {
    %c0_i32 = arith.constant 0 : i32
    %c0_i32_0 = arith.constant 0 : i32
    return %arg0, %c0_i32 : i32, i32
  }
  func.func @transform_4(%arg0: i32) -> (i32, i32) {
    %c0_i32 = arith.constant 0 : i32
    %c0_i32_0 = arith.constant 0 : i32
    %c0_i32_1 = arith.constant 0 : i32
    return %c0_i32, %c0_i32_0 : i32, i32
  }
  func.func @transform_5(%arg0: i32) -> (i32, i32) {
    %c0_i32 = arith.constant 0 : i32
    %c0_i32_0 = arith.constant 0 : i32
    %c0_i32_1 = arith.constant 0 : i32
    return %c0_i32, %c0_i32_0 : i32, i32
  }
  func.func @transform_6(%arg0: i32) -> (i32, i32) {
    %c0_i32 = arith.constant 0 : i32
    %c0_i32_0 = arith.constant 0 : i32
    return %arg0, %c0_i32 : i32, i32
  }
}

module attributes {stable_mosaic.version = 11 : i64} {
  func.func @linear_kernel(%arg0: i32, %arg1: memref<8x16xf32, #tpu.memory_space<vmem>>, %arg2: memref<16x256xbf16, #tpu.memory_space<vmem>>, %arg3: memref<1x256xf32, #tpu.memory_space<vmem>>, %arg4: memref<8x256xbf16, #tpu.memory_space<vmem>>) attributes {dimension_semantics = [#tpu.dimension_semantics<parallel>], iteration_bounds = array<i64: 1>, scalar_prefetch = 0 : i64, scratch_operands = 0 : i64, tpu.core_type = #tpu.core_type<tc>, window_params = [{transform_indices = @transform_0, window_bounds = array<i64: 8, 16>}, {pipeline_mode = #tpu.pipeline_mode<synchronous>, transform_indices = @transform_1, window_bounds = array<i64: 16, 256>}, {pipeline_mode = #tpu.pipeline_mode<synchronous>, transform_indices = @transform_2, window_bounds = array<i64: 1, 256>}, {transform_indices = @transform_3, window_bounds = array<i64: 8, 256>}]} {
    %c0 = arith.constant 0 : index
    %c0_0 = arith.constant 0 : index
    %0 = vector.load %arg1[%c0, %c0_0] : memref<8x16xf32, #tpu.memory_space<vmem>>, vector<8x16xf32>
    %1 = arith.truncf %0 : vector<8x16xf32> to vector<8x16xbf16>
    %c0_1 = arith.constant 0 : index
    %c0_2 = arith.constant 0 : index
    %2 = vector.load %arg2[%c0_1, %c0_2] : memref<16x256xbf16, #tpu.memory_space<vmem>>, vector<16x256xbf16>
    %cst = arith.constant dense<0.000000e+00> : vector<8x256xf32>
    %3 = tpu.matmul %1, %2, %cst {dimension_numbers = #tpu.dot_dimension_numbers<[1], [0], [0], [1], [0, 0, 1, 1], [], []>} : vector<8x16xbf16>, vector<16x256xbf16>, vector<8x256xf32> -> vector<8x256xf32>
    %c0_3 = arith.constant 0 : index
    %c0_4 = arith.constant 0 : index
    %4 = vector.load %arg3[%c0_3, %c0_4] : memref<1x256xf32, #tpu.memory_space<vmem>>, vector<1x256xf32>
    %5 = vector.broadcast %4 : vector<1x256xf32> to vector<8x256xf32>
    %6 = arith.addf %3, %5 : vector<8x256xf32>
    %7 = arith.truncf %6 : vector<8x256xf32> to vector<8x256xbf16>
    %c0_5 = arith.constant 0 : index
    %c0_6 = arith.constant 0 : index
    %8 = vector.load %arg4[%c0_5, %c0_6] : memref<8x256xbf16, #tpu.memory_space<vmem>>, vector<8x256xbf16>
    tpu.vector_store %arg4[%c0_5, %c0_6], %7 {strides = array<i32>} : memref<8x256xbf16, #tpu.memory_space<vmem>>, vector<8x256xbf16>,
    return
  }
  func.func @transform_0(%arg0: i32) -> (i32, i32) {
    %c0_i32 = arith.constant 0 : i32
    %c0_i32_0 = arith.constant 0 : i32
    return %arg0, %c0_i32 : i32, i32
  }
  func.func @transform_1(%arg0: i32) -> (i32, i32) {
    %c0_i32 = arith.constant 0 : i32
    %c0_i32_0 = arith.constant 0 : i32
    %c0_i32_1 = arith.constant 0 : i32
    return %c0_i32, %c0_i32_0 : i32, i32
  }
  func.func @transform_2(%arg0: i32) -> (i32, i32) {
    %c0_i32 = arith.constant 0 : i32
    %c0_i32_0 = arith.constant 0 : i32
    %c0_i32_1 = arith.constant 0 : i32
    return %c0_i32, %c0_i32_0 : i32, i32
  }
  func.func @transform_3(%arg0: i32) -> (i32, i32) {
    %c0_i32 = arith.constant 0 : i32
    %c0_i32_0 = arith.constant 0 : i32
    return %arg0, %c0_i32 : i32, i32
  }
}

module attributes {stable_mosaic.version = 11 : i64} {
  func.func @conv_mid_kernel(%arg0: i32, %arg1: memref<4x8x32xbf16, #tpu.memory_space<vmem>>, %arg2: memref<32x32xbf16, #tpu.memory_space<vmem>>, %arg3: memref<32x32xbf16, #tpu.memory_space<vmem>>, %arg4: memref<32x32xbf16, #tpu.memory_space<vmem>>, %arg5: memref<4x8x32xbf16, #tpu.memory_space<vmem>>, %arg6: memref<1x2x16xf32, #tpu.memory_space<vmem>>) attributes {dimension_semantics = [#tpu.dimension_semantics<parallel>], iteration_bounds = array<i64: 2>, scalar_prefetch = 0 : i64, scratch_operands = 0 : i64, tpu.core_type = #tpu.core_type<tc>, window_params = [{transform_indices = @transform_0, window_bounds = array<i64: 4, 8, 32>}, {pipeline_mode = #tpu.pipeline_mode<synchronous>, transform_indices = @transform_1, window_bounds = array<i64: 32, 32>}, {pipeline_mode = #tpu.pipeline_mode<synchronous>, transform_indices = @transform_2, window_bounds = array<i64: 32, 32>}, {pipeline_mode = #tpu.pipeline_mode<synchronous>, transform_indices = @transform_3, window_bounds = array<i64: 32, 32>}, {transform_indices = @transform_4, window_bounds = array<i64: 4, 8, 32>}, {transform_indices = @transform_5, window_bounds = array<i64: 1, 2, 16>}]} {
    %c0 = arith.constant 0 : index
    %c0_0 = arith.constant 0 : index
    %c0_1 = arith.constant 0 : index
    %0 = vector.load %arg1[%c0, %c0_0, %c0_1] : memref<4x8x32xbf16, #tpu.memory_space<vmem>>, vector<4x8x32xbf16>
    %cst = arith.constant 0.000000e+00 : bf16
    %1 = vector.broadcast %cst : bf16 to vector<4x1x32xbf16>
    %2 = tpu.concatenate %1, %0, %1 in 1 : vector<4x1x32xbf16>, vector<4x8x32xbf16>, vector<4x1x32xbf16> -> vector<4x10x32xbf16>
    %3 = vector.extract_strided_slice %2 {offsets = [0, 0, 0], sizes = [4, 8, 32], strides = [1, 1, 1]} : vector<4x10x32xbf16> to vector<4x8x32xbf16>
    %4 = vector.shape_cast %3 : vector<4x8x32xbf16> to vector<32x32xbf16>
    %c0_2 = arith.constant 0 : index
    %c0_3 = arith.constant 0 : index
    %5 = vector.load %arg2[%c0_2, %c0_3] : memref<32x32xbf16, #tpu.memory_space<vmem>>, vector<32x32xbf16>
    %cst_4 = arith.constant dense<0.000000e+00> : vector<32x32xf32>
    %6 = tpu.matmul %4, %5, %cst_4 {dimension_numbers = #tpu.dot_dimension_numbers<[1], [0], [0], [1], [0, 0, 1, 1], [], []>} : vector<32x32xbf16>, vector<32x32xbf16>, vector<32x32xf32> -> vector<32x32xf32>
    %7 = vector.extract_strided_slice %2 {offsets = [0, 1, 0], sizes = [4, 8, 32], strides = [1, 1, 1]} : vector<4x10x32xbf16> to vector<4x8x32xbf16>
    %8 = vector.shape_cast %7 : vector<4x8x32xbf16> to vector<32x32xbf16>
    %c0_5 = arith.constant 0 : index
    %c0_6 = arith.constant 0 : index
    %9 = vector.load %arg3[%c0_5, %c0_6] : memref<32x32xbf16, #tpu.memory_space<vmem>>, vector<32x32xbf16>
    %cst_7 = arith.constant dense<0.000000e+00> : vector<32x32xf32>
    %10 = tpu.matmul %8, %9, %cst_7 {dimension_numbers = #tpu.dot_dimension_numbers<[1], [0], [0], [1], [0, 0, 1, 1], [], []>} : vector<32x32xbf16>, vector<32x32xbf16>, vector<32x32xf32> -> vector<32x32xf32>
    %11 = arith.addf %6, %10 : vector<32x32xf32>
    %12 = vector.extract_strided_slice %2 {offsets = [0, 2, 0], sizes = [4, 8, 32], strides = [1, 1, 1]} : vector<4x10x32xbf16> to vector<4x8x32xbf16>
    %13 = vector.shape_cast %12 : vector<4x8x32xbf16> to vector<32x32xbf16>
    %c0_8 = arith.constant 0 : index
    %c0_9 = arith.constant 0 : index
    %14 = vector.load %arg4[%c0_8, %c0_9] : memref<32x32xbf16, #tpu.memory_space<vmem>>, vector<32x32xbf16>
    %cst_10 = arith.constant dense<0.000000e+00> : vector<32x32xf32>
    %15 = tpu.matmul %13, %14, %cst_10 {dimension_numbers = #tpu.dot_dimension_numbers<[1], [0], [0], [1], [0, 0, 1, 1], [], []>} : vector<32x32xbf16>, vector<32x32xbf16>, vector<32x32xf32> -> vector<32x32xf32>
    %16 = arith.addf %11, %15 : vector<32x32xf32>
    %17 = arith.truncf %16 : vector<32x32xf32> to vector<32x32xbf16>
    %18 = vector.shape_cast %17 : vector<32x32xbf16> to vector<4x8x32xbf16>
    %c0_11 = arith.constant 0 : index
    %c0_12 = arith.constant 0 : index
    %c0_13 = arith.constant 0 : index
    %19 = vector.load %arg5[%c0_11, %c0_12, %c0_13] : memref<4x8x32xbf16, #tpu.memory_space<vmem>>, vector<4x8x32xbf16>
    tpu.vector_store %arg5[%c0_11, %c0_12, %c0_13], %18 {strides = array<i32>} : memref<4x8x32xbf16, #tpu.memory_space<vmem>>, vector<4x8x32xbf16>,
    %cst_14 = arith.constant dense<0.000000e+00> : vector<32xf32>
    %20 = vector.multi_reduction <add>, %16, %cst_14 [0] : vector<32x32xf32> to vector<32xf32>
    %21 = vector.shape_cast %20 : vector<32xf32> to vector<1x32xf32>
    %22 = arith.mulf %16, %16 : vector<32x32xf32>
    %cst_15 = arith.constant dense<0.000000e+00> : vector<32xf32>
    %23 = vector.multi_reduction <add>, %22, %cst_15 [0] : vector<32x32xf32> to vector<32xf32>
    %24 = vector.shape_cast %23 : vector<32xf32> to vector<1x32xf32>
    %25 = vector.extract_strided_slice %21 {offsets = [0, 0], sizes = [1, 16], strides = [1, 1]} : vector<1x32xf32> to vector<1x16xf32>
    %26 = vector.extract_strided_slice %21 {offsets = [0, 16], sizes = [1, 16], strides = [1, 1]} : vector<1x32xf32> to vector<1x16xf32>
    %27 = arith.addf %25, %26 : vector<1x16xf32>
    %28 = vector.extract_strided_slice %24 {offsets = [0, 0], sizes = [1, 16], strides = [1, 1]} : vector<1x32xf32> to vector<1x16xf32>
    %29 = vector.extract_strided_slice %24 {offsets = [0, 16], sizes = [1, 16], strides = [1, 1]} : vector<1x32xf32> to vector<1x16xf32>
    %30 = arith.addf %28, %29 : vector<1x16xf32>
    %31 = tpu.concatenate %27, %30 in 0 : vector<1x16xf32>, vector<1x16xf32> -> vector<2x16xf32>
    %32 = vector.shape_cast %31 : vector<2x16xf32> to vector<1x2x16xf32>
    %c0_16 = arith.constant 0 : index
    %c0_17 = arith.constant 0 : index
    %c0_18 = arith.constant 0 : index
    %33 = vector.load %arg6[%c0_16, %c0_17, %c0_18] : memref<1x2x16xf32, #tpu.memory_space<vmem>>, vector<1x2x16xf32>
    tpu.vector_store %arg6[%c0_16, %c0_17, %c0_18], %32 {strides = array<i32>} : memref<1x2x16xf32, #tpu.memory_space<vmem>>, vector<1x2x16xf32>,
    return
  }
  func.func @transform_0(%arg0: i32) -> (i32, i32, i32) {
    %c0_i32 = arith.constant 0 : i32
    %c0_i32_0 = arith.constant 0 : i32
    %c0_i32_1 = arith.constant 0 : i32
    return %arg0, %c0_i32, %c0_i32_0 : i32, i32, i32
  }
  func.func @transform_1(%arg0: i32) -> (i32, i32) {
    %c0_i32 = arith.constant 0 : i32
    %c0_i32_0 = arith.constant 0 : i32
    %c0_i32_1 = arith.constant 0 : i32
    return %c0_i32, %c0_i32_0 : i32, i32
  }
  func.func @transform_2(%arg0: i32) -> (i32, i32) {
    %c0_i32 = arith.constant 0 : i32
    %c0_i32_0 = arith.constant 0 : i32
    %c0_i32_1 = arith.constant 0 : i32
    return %c0_i32, %c0_i32_0 : i32, i32
  }
  func.func @transform_3(%arg0: i32) -> (i32, i32) {
    %c0_i32 = arith.constant 0 : i32
    %c0_i32_0 = arith.constant 0 : i32
    %c0_i32_1 = arith.constant 0 : i32
    return %c0_i32, %c0_i32_0 : i32, i32
  }
  func.func @transform_4(%arg0: i32) -> (i32, i32, i32) {
    %c0_i32 = arith.constant 0 : i32
    %c0_i32_0 = arith.constant 0 : i32
    %c0_i32_1 = arith.constant 0 : i32
    return %arg0, %c0_i32, %c0_i32_0 : i32, i32, i32
  }
  func.func @transform_5(%arg0: i32) -> (i32, i32, i32) {
    %c0_i32 = arith.constant 0 : i32
    %c0_i32_0 = arith.constant 0 : i32
    %c0_i32_1 = arith.constant 0 : i32
    return %arg0, %c0_i32, %c0_i32_0 : i32, i32, i32
  }
}

module attributes {stable_mosaic.version = 11 : i64} {
  func.func @conv_mid_kernel(%arg0: i32, %arg1: memref<2x2x16xf32, #tpu.memory_space<vmem>>, %arg2: memref<1x16xf32, #tpu.memory_space<vmem>>, %arg3: memref<1x16xf32, #tpu.memory_space<vmem>>, %arg4: memref<4x16x16xbf16, #tpu.memory_space<vmem>>, %arg5: memref<16x16xbf16, #tpu.memory_space<vmem>>, %arg6: memref<16x16xbf16, #tpu.memory_space<vmem>>, %arg7: memref<16x16xbf16, #tpu.memory_space<vmem>>, %arg8: memref<4x16x16xbf16, #tpu.memory_space<vmem>>, %arg9: memref<1x2x8xf32, #tpu.memory_space<vmem>>) attributes {dimension_semantics = [#tpu.dimension_semantics<parallel>], iteration_bounds = array<i64: 2>, scalar_prefetch = 0 : i64, scratch_operands = 0 : i64, tpu.core_type = #tpu.core_type<tc>, window_params = [{pipeline_mode = #tpu.pipeline_mode<synchronous>, transform_indices = @transform_0, window_bounds = array<i64: 2, 2, 16>}, {pipeline_mode = #tpu.pipeline_mode<synchronous>, transform_indices = @transform_1, window_bounds = array<i64: 1, 16>}, {pipeline_mode = #tpu.pipeline_mode<synchronous>, transform_indices = @transform_2, window_bounds = array<i64: 1, 16>}, {transform_indices = @transform_3, window_bounds = array<i64: 4, 16, 16>}, {pipeline_mode = #tpu.pipeline_mode<synchronous>, transform_indices = @transform_4, window_bounds = array<i64: 16, 16>}, {pipeline_mode = #tpu.pipeline_mode<synchronous>, transform_indices = @transform_5, window_bounds = array<i64: 16, 16>}, {pipeline_mode = #tpu.pipeline_mode<synchronous>, transform_indices = @transform_6, window_bounds = array<i64: 16, 16>}, {transform_indices = @transform_7, window_bounds = array<i64: 4, 16, 16>}, {transform_indices = @transform_8, window_bounds = array<i64: 1, 2, 8>}]} {
    %c0 = arith.constant 0 : index
    %c0_0 = arith.constant 0 : index
    %c0_1 = arith.constant 0 : index
    %0 = vector.load %arg4[%c0, %c0_0, %c0_1] : memref<4x16x16xbf16, #tpu.memory_space<vmem>>, vector<4x16x16xbf16>
    %c0_2 = arith.constant 0 : index
    %c0_3 = arith.constant 0 : index
    %c0_4 = arith.constant 0 : index
    %1 = vector.load %arg1[%c0_2, %c0_3, %c0_4] : memref<2x2x16xf32, #tpu.memory_space<vmem>>, vector<2x2x16xf32>
    %cst = arith.constant dense<0.000000e+00> : vector<2x16xf32>
    %2 = vector.multi_reduction <add>, %1, %cst [0] : vector<2x2x16xf32> to vector<2x16xf32>
    %3 = vector.extract_strided_slice %2 {offsets = [0, 0], sizes = [1, 16], strides = [1, 1]} : vector<2x16xf32> to vector<1x16xf32>
    %cst_5 = arith.constant 7.812500e-03 : f32
    %4 = vector.broadcast %cst_5 : f32 to vector<1x16xf32>
    %5 = arith.mulf %3, %4 : vector<1x16xf32>
    %6 = vector.extract_strided_slice %2 {offsets = [1, 0], sizes = [1, 16], strides = [1, 1]} : vector<2x16xf32> to vector<1x16xf32>
    %cst_6 = arith.constant 7.812500e-03 : f32
    %7 = vector.broadcast %cst_6 : f32 to vector<1x16xf32>
    %8 = arith.mulf %6, %7 : vector<1x16xf32>
    %9 = arith.mulf %5, %5 : vector<1x16xf32>
    %10 = arith.subf %8, %9 : vector<1x16xf32>
    %cst_7 = arith.constant 0.000000e+00 : f32
    %11 = vector.broadcast %cst_7 : f32 to vector<1x16xf32>
    %12 = arith.maximumf %10, %11 : vector<1x16xf32>
    %c0_8 = arith.constant 0 : index
    %c0_9 = arith.constant 0 : index
    %13 = vector.load %arg2[%c0_8, %c0_9] : memref<1x16xf32, #tpu.memory_space<vmem>>, vector<1x16xf32>
    %cst_10 = arith.constant 9.99999974E-6 : f32
    %14 = vector.broadcast %cst_10 : f32 to vector<1x16xf32>
    %15 = arith.addf %12, %14 : vector<1x16xf32>
    %16 = math.rsqrt %15 : vector<1x16xf32>
    %17 = arith.mulf %13, %16 : vector<1x16xf32>
    %c0_11 = arith.constant 0 : index
    %c0_12 = arith.constant 0 : index
    %18 = vector.load %arg3[%c0_11, %c0_12] : memref<1x16xf32, #tpu.memory_space<vmem>>, vector<1x16xf32>
    %19 = arith.mulf %5, %17 : vector<1x16xf32>
    %20 = arith.subf %18, %19 : vector<1x16xf32>
    %21 = arith.extf %0 : vector<4x16x16xbf16> to vector<4x16x16xf32>
    %22 = vector.shape_cast %17 : vector<1x16xf32> to vector<1x1x16xf32>
    %23 = vector.broadcast %22 : vector<1x1x16xf32> to vector<4x16x16xf32>
    %24 = arith.mulf %21, %23 : vector<4x16x16xf32>
    %25 = vector.shape_cast %20 : vector<1x16xf32> to vector<1x1x16xf32>
    %26 = vector.broadcast %25 : vector<1x1x16xf32> to vector<4x16x16xf32>
    %27 = arith.addf %24, %26 : vector<4x16x16xf32>
    %cst_13 = arith.constant 0.000000e+00 : f32
    %28 = vector.broadcast %cst_13 : f32 to vector<4x16x16xf32>
    %29 = arith.maximumf %27, %28 : vector<4x16x16xf32>
    %30 = arith.truncf %29 : vector<4x16x16xf32> to vector<4x16x16xbf16>
    %cst_14 = arith.constant 0.000000e+00 : bf16
    %31 = vector.broadcast %cst_14 : bf16 to vector<4x1x16xbf16>
    %32 = tpu.concatenate %31, %30, %31 in 1 : vector<4x1x16xbf16>, vector<4x16x16xbf16>, vector<4x1x16xbf16> -> vector<4x18x16xbf16>
    %33 = vector.extract_strided_slice %32 {offsets = [0, 0, 0], sizes = [4, 16, 16], strides = [1, 1, 1]} : vector<4x18x16xbf16> to vector<4x16x16xbf16>
    %34 = vector.shape_cast %33 : vector<4x16x16xbf16> to vector<64x16xbf16>
    %c0_15 = arith.constant 0 : index
    %c0_16 = arith.constant 0 : index
    %35 = vector.load %arg5[%c0_15, %c0_16] : memref<16x16xbf16, #tpu.memory_space<vmem>>, vector<16x16xbf16>
    %cst_17 = arith.constant dense<0.000000e+00> : vector<64x16xf32>
    %36 = tpu.matmul %34, %35, %cst_17 {dimension_numbers = #tpu.dot_dimension_numbers<[1], [0], [0], [1], [0, 0, 1, 1], [], []>} : vector<64x16xbf16>, vector<16x16xbf16>, vector<64x16xf32> -> vector<64x16xf32>
    %37 = vector.extract_strided_slice %32 {offsets = [0, 1, 0], sizes = [4, 16, 16], strides = [1, 1, 1]} : vector<4x18x16xbf16> to vector<4x16x16xbf16>
    %38 = vector.shape_cast %37 : vector<4x16x16xbf16> to vector<64x16xbf16>
    %c0_18 = arith.constant 0 : index
    %c0_19 = arith.constant 0 : index
    %39 = vector.load %arg6[%c0_18, %c0_19] : memref<16x16xbf16, #tpu.memory_space<vmem>>, vector<16x16xbf16>
    %cst_20 = arith.constant dense<0.000000e+00> : vector<64x16xf32>
    %40 = tpu.matmul %38, %39, %cst_20 {dimension_numbers = #tpu.dot_dimension_numbers<[1], [0], [0], [1], [0, 0, 1, 1], [], []>} : vector<64x16xbf16>, vector<16x16xbf16>, vector<64x16xf32> -> vector<64x16xf32>
    %41 = arith.addf %36, %40 : vector<64x16xf32>
    %42 = vector.extract_strided_slice %32 {offsets = [0, 2, 0], sizes = [4, 16, 16], strides = [1, 1, 1]} : vector<4x18x16xbf16> to vector<4x16x16xbf16>
    %43 = vector.shape_cast %42 : vector<4x16x16xbf16> to vector<64x16xbf16>
    %c0_21 = arith.constant 0 : index
    %c0_22 = arith.constant 0 : index
    %44 = vector.load %arg7[%c0_21, %c0_22] : memref<16x16xbf16, #tpu.memory_space<vmem>>, vector<16x16xbf16>
    %cst_23 = arith.constant dense<0.000000e+00> : vector<64x16xf32>
    %45 = tpu.matmul %43, %44, %cst_23 {dimension_numbers = #tpu.dot_dimension_numbers<[1], [0], [0], [1], [0, 0, 1, 1], [], []>} : vector<64x16xbf16>, vector<16x16xbf16>, vector<64x16xf32> -> vector<64x16xf32>
    %46 = arith.addf %41, %45 : vector<64x16xf32>
    %47 = arith.truncf %46 : vector<64x16xf32> to vector<64x16xbf16>
    %48 = vector.shape_cast %47 : vector<64x16xbf16> to vector<4x16x16xbf16>
    %c0_24 = arith.constant 0 : index
    %c0_25 = arith.constant 0 : index
    %c0_26 = arith.constant 0 : index
    %49 = vector.load %arg8[%c0_24, %c0_25, %c0_26] : memref<4x16x16xbf16, #tpu.memory_space<vmem>>, vector<4x16x16xbf16>
    tpu.vector_store %arg8[%c0_24, %c0_25, %c0_26], %48 {strides = array<i32>} : memref<4x16x16xbf16, #tpu.memory_space<vmem>>, vector<4x16x16xbf16>,
    %cst_27 = arith.constant dense<0.000000e+00> : vector<16xf32>
    %50 = vector.multi_reduction <add>, %46, %cst_27 [0] : vector<64x16xf32> to vector<16xf32>
    %51 = vector.shape_cast %50 : vector<16xf32> to vector<1x16xf32>
    %52 = arith.mulf %46, %46 : vector<64x16xf32>
    %cst_28 = arith.constant dense<0.000000e+00> : vector<16xf32>
    %53 = vector.multi_reduction <add>, %52, %cst_28 [0] : vector<64x16xf32> to vector<16xf32>
    %54 = vector.shape_cast %53 : vector<16xf32> to vector<1x16xf32>
    %55 = vector.extract_strided_slice %51 {offsets = [0, 0], sizes = [1, 8], strides = [1, 1]} : vector<1x16xf32> to vector<1x8xf32>
    %56 = vector.extract_strided_slice %51 {offsets = [0, 8], sizes = [1, 8], strides = [1, 1]} : vector<1x16xf32> to vector<1x8xf32>
    %57 = arith.addf %55, %56 : vector<1x8xf32>
    %58 = vector.extract_strided_slice %54 {offsets = [0, 0], sizes = [1, 8], strides = [1, 1]} : vector<1x16xf32> to vector<1x8xf32>
    %59 = vector.extract_strided_slice %54 {offsets = [0, 8], sizes = [1, 8], strides = [1, 1]} : vector<1x16xf32> to vector<1x8xf32>
    %60 = arith.addf %58, %59 : vector<1x8xf32>
    %61 = tpu.concatenate %57, %60 in 0 : vector<1x8xf32>, vector<1x8xf32> -> vector<2x8xf32>
    %62 = vector.shape_cast %61 : vector<2x8xf32> to vector<1x2x8xf32>
    %c0_29 = arith.constant 0 : index
    %c0_30 = arith.constant 0 : index
    %c0_31 = arith.constant 0 : index
    %63 = vector.load %arg9[%c0_29, %c0_30, %c0_31] : memref<1x2x8xf32, #tpu.memory_space<vmem>>, vector<1x2x8xf32>
    tpu.vector_store %arg9[%c0_29, %c0_30, %c0_31], %62 {strides = array<i32>} : memref<1x2x8xf32, #tpu.memory_space<vmem>>, vector<1x2x8xf32>,
    return
  }
  func.func @transform_0(%arg0: i32) -> (i32, i32, i32) {
    %c0_i32 = arith.constant 0 : i32
    %c0_i32_0 = arith.constant 0 : i32
    %c0_i32_1 = arith.constant 0 : i32
    %c0_i32_2 = arith.constant 0 : i32
    return %c0_i32, %c0_i32_0, %c0_i32_1 : i32, i32, i32
  }
  func.func @transform_1(%arg0: i32) -> (i32, i32) {
    %c0_i32 = arith.constant 0 : i32
    %c0_i32_0 = arith.constant 0 : i32
    %c0_i32_1 = arith.constant 0 : i32
    return %c0_i32, %c0_i32_0 : i32, i32
  }
  func.func @transform_2(%arg0: i32) -> (i32, i32) {
    %c0_i32 = arith.constant 0 : i32
    %c0_i32_0 = arith.constant 0 : i32
    %c0_i32_1 = arith.constant 0 : i32
    return %c0_i32, %c0_i32_0 : i32, i32
  }
  func.func @transform_3(%arg0: i32) -> (i32, i32, i32) {
    %c0_i32 = arith.constant 0 : i32
    %c0_i32_0 = arith.constant 0 : i32
    %c0_i32_1 = arith.constant 0 : i32
    return %arg0, %c0_i32, %c0_i32_0 : i32, i32, i32
  }
  func.func @transform_4(%arg0: i32) -> (i32, i32) {
    %c0_i32 = arith.constant 0 : i32
    %c0_i32_0 = arith.constant 0 : i32
    %c0_i32_1 = arith.constant 0 : i32
    return %c0_i32, %c0_i32_0 : i32, i32
  }
  func.func @transform_5(%arg0: i32) -> (i32, i32) {
    %c0_i32 = arith.constant 0 : i32
    %c0_i32_0 = arith.constant 0 : i32
    %c0_i32_1 = arith.constant 0 : i32
    return %c0_i32, %c0_i32_0 : i32, i32
  }
  func.func @transform_6(%arg0: i32) -> (i32, i32) {
    %c0_i32 = arith.constant 0 : i32
    %c0_i32_0 = arith.constant 0 : i32
    %c0_i32_1 = arith.constant 0 : i32
    return %c0_i32, %c0_i32_0 : i32, i32
  }
  func.func @transform_7(%arg0: i32) -> (i32, i32, i32) {
    %c0_i32 = arith.constant 0 : i32
    %c0_i32_0 = arith.constant 0 : i32
    %c0_i32_1 = arith.constant 0 : i32
    return %arg0, %c0_i32, %c0_i32_0 : i32, i32, i32
  }
  func.func @transform_8(%arg0: i32) -> (i32, i32, i32) {
    %c0_i32 = arith.constant 0 : i32
    %c0_i32_0 = arith.constant 0 : i32
    %c0_i32_1 = arith.constant 0 : i32
    return %arg0, %c0_i32, %c0_i32_0 : i32, i32, i32
  }
}

module attributes {stable_mosaic.version = 11 : i64} {
  func.func @conv_last_kernel(%arg0: i32, %arg1: memref<2x2x8xf32, #tpu.memory_space<vmem>>, %arg2: memref<1x8xf32, #tpu.memory_space<vmem>>, %arg3: memref<1x8xf32, #tpu.memory_space<vmem>>, %arg4: memref<4x32x8xbf16, #tpu.memory_space<vmem>>, %arg5: memref<5x8xf32, #tpu.memory_space<vmem>>, %arg6: memref<1x1xf32, #tpu.memory_space<vmem>>, %arg7: memref<4x2x32xf32, #tpu.memory_space<vmem>>) attributes {dimension_semantics = [#tpu.dimension_semantics<parallel>], iteration_bounds = array<i64: 2>, scalar_prefetch = 0 : i64, scratch_operands = 0 : i64, tpu.core_type = #tpu.core_type<tc>, window_params = [{pipeline_mode = #tpu.pipeline_mode<synchronous>, transform_indices = @transform_0, window_bounds = array<i64: 2, 2, 8>}, {pipeline_mode = #tpu.pipeline_mode<synchronous>, transform_indices = @transform_1, window_bounds = array<i64: 1, 8>}, {pipeline_mode = #tpu.pipeline_mode<synchronous>, transform_indices = @transform_2, window_bounds = array<i64: 1, 8>}, {transform_indices = @transform_3, window_bounds = array<i64: 4, 32, 8>}, {pipeline_mode = #tpu.pipeline_mode<synchronous>, transform_indices = @transform_4, window_bounds = array<i64: 5, 8>}, {pipeline_mode = #tpu.pipeline_mode<synchronous>, transform_indices = @transform_5, window_bounds = array<i64: 1, 1>}, {transform_indices = @transform_6, window_bounds = array<i64: 4, 2, 32>}]} {
    %c0 = arith.constant 0 : index
    %c0_0 = arith.constant 0 : index
    %c0_1 = arith.constant 0 : index
    %0 = vector.load %arg1[%c0, %c0_0, %c0_1] : memref<2x2x8xf32, #tpu.memory_space<vmem>>, vector<2x2x8xf32>
    %cst = arith.constant dense<0.000000e+00> : vector<2x8xf32>
    %1 = vector.multi_reduction <add>, %0, %cst [0] : vector<2x2x8xf32> to vector<2x8xf32>
    %2 = vector.extract_strided_slice %1 {offsets = [0, 0], sizes = [1, 8], strides = [1, 1]} : vector<2x8xf32> to vector<1x8xf32>
    %cst_2 = arith.constant 3.906250e-03 : f32
    %3 = vector.broadcast %cst_2 : f32 to vector<1x8xf32>
    %4 = arith.mulf %2, %3 : vector<1x8xf32>
    %5 = vector.extract_strided_slice %1 {offsets = [1, 0], sizes = [1, 8], strides = [1, 1]} : vector<2x8xf32> to vector<1x8xf32>
    %cst_3 = arith.constant 3.906250e-03 : f32
    %6 = vector.broadcast %cst_3 : f32 to vector<1x8xf32>
    %7 = arith.mulf %5, %6 : vector<1x8xf32>
    %8 = arith.mulf %4, %4 : vector<1x8xf32>
    %9 = arith.subf %7, %8 : vector<1x8xf32>
    %cst_4 = arith.constant 0.000000e+00 : f32
    %10 = vector.broadcast %cst_4 : f32 to vector<1x8xf32>
    %11 = arith.maximumf %9, %10 : vector<1x8xf32>
    %c0_5 = arith.constant 0 : index
    %c0_6 = arith.constant 0 : index
    %12 = vector.load %arg2[%c0_5, %c0_6] : memref<1x8xf32, #tpu.memory_space<vmem>>, vector<1x8xf32>
    %cst_7 = arith.constant 9.99999974E-6 : f32
    %13 = vector.broadcast %cst_7 : f32 to vector<1x8xf32>
    %14 = arith.addf %11, %13 : vector<1x8xf32>
    %15 = math.rsqrt %14 : vector<1x8xf32>
    %16 = arith.mulf %12, %15 : vector<1x8xf32>
    %c0_8 = arith.constant 0 : index
    %c0_9 = arith.constant 0 : index
    %17 = vector.load %arg3[%c0_8, %c0_9] : memref<1x8xf32, #tpu.memory_space<vmem>>, vector<1x8xf32>
    %18 = arith.mulf %4, %16 : vector<1x8xf32>
    %19 = arith.subf %17, %18 : vector<1x8xf32>
    %c0_10 = arith.constant 0 : index
    %c0_11 = arith.constant 0 : index
    %c0_12 = arith.constant 0 : index
    %20 = vector.load %arg4[%c0_10, %c0_11, %c0_12] : memref<4x32x8xbf16, #tpu.memory_space<vmem>>, vector<4x32x8xbf16>
    %21 = arith.extf %20 : vector<4x32x8xbf16> to vector<4x32x8xf32>
    %22 = vector.shape_cast %16 : vector<1x8xf32> to vector<1x1x8xf32>
    %23 = vector.broadcast %22 : vector<1x1x8xf32> to vector<4x32x8xf32>
    %24 = arith.mulf %21, %23 : vector<4x32x8xf32>
    %25 = vector.shape_cast %19 : vector<1x8xf32> to vector<1x1x8xf32>
    %26 = vector.broadcast %25 : vector<1x1x8xf32> to vector<4x32x8xf32>
    %27 = arith.addf %24, %26 : vector<4x32x8xf32>
    %cst_13 = arith.constant 0.000000e+00 : f32
    %28 = vector.broadcast %cst_13 : f32 to vector<4x32x8xf32>
    %29 = arith.maximumf %27, %28 : vector<4x32x8xf32>
    %cst_14 = arith.constant 0.000000e+00 : f32
    %30 = vector.broadcast %cst_14 : f32 to vector<4x1x8xf32>
    %31 = tpu.concatenate %30, %29, %30 in 1 : vector<4x1x8xf32>, vector<4x32x8xf32>, vector<4x1x8xf32> -> vector<4x34x8xf32>
    %32 = vector.extract_strided_slice %31 {offsets = [0, 0, 0], sizes = [4, 32, 8], strides = [1, 1, 1]} : vector<4x34x8xf32> to vector<4x32x8xf32>
    %33 = vector.extract_strided_slice %31 {offsets = [0, 1, 0], sizes = [4, 32, 8], strides = [1, 1, 1]} : vector<4x34x8xf32> to vector<4x32x8xf32>
    %34 = vector.extract_strided_slice %31 {offsets = [0, 2, 0], sizes = [4, 32, 8], strides = [1, 1, 1]} : vector<4x34x8xf32> to vector<4x32x8xf32>
    %c0_15 = arith.constant 0 : index
    %c0_16 = arith.constant 0 : index
    %35 = vector.load %arg5[%c0_15, %c0_16] : memref<5x8xf32, #tpu.memory_space<vmem>>, vector<5x8xf32>
    %36 = vector.extract_strided_slice %35 {offsets = [0, 0], sizes = [1, 8], strides = [1, 1]} : vector<5x8xf32> to vector<1x8xf32>
    %37 = vector.shape_cast %36 : vector<1x8xf32> to vector<1x1x8xf32>
    %38 = vector.extract_strided_slice %35 {offsets = [1, 0], sizes = [1, 8], strides = [1, 1]} : vector<5x8xf32> to vector<1x8xf32>
    %39 = vector.shape_cast %38 : vector<1x8xf32> to vector<1x1x8xf32>
    %40 = vector.extract_strided_slice %35 {offsets = [2, 0], sizes = [1, 8], strides = [1, 1]} : vector<5x8xf32> to vector<1x8xf32>
    %41 = vector.shape_cast %40 : vector<1x8xf32> to vector<1x1x8xf32>
    %42 = vector.extract_strided_slice %35 {offsets = [3, 0], sizes = [1, 8], strides = [1, 1]} : vector<5x8xf32> to vector<1x8xf32>
    %43 = vector.shape_cast %42 : vector<1x8xf32> to vector<1x1x8xf32>
    %44 = vector.extract_strided_slice %35 {offsets = [4, 0], sizes = [1, 8], strides = [1, 1]} : vector<5x8xf32> to vector<1x8xf32>
    %45 = vector.shape_cast %44 : vector<1x8xf32> to vector<1x1x8xf32>
    %46 = vector.broadcast %37 : vector<1x1x8xf32> to vector<4x32x8xf32>
    %47 = arith.mulf %34, %46 : vector<4x32x8xf32>
    %48 = vector.broadcast %41 : vector<1x1x8xf32> to vector<4x32x8xf32>
    %49 = arith.mulf %33, %48 : vector<4x32x8xf32>
    %50 = arith.addf %47, %49 : vector<4x32x8xf32>
    %51 = vector.broadcast %45 : vector<1x1x8xf32> to vector<4x32x8xf32>
    %52 = arith.mulf %32, %51 : vector<4x32x8xf32>
    %53 = arith.addf %50, %52 : vector<4x32x8xf32>
    %cst_17 = arith.constant dense<0.000000e+00> : vector<4x32xf32>
    %54 = vector.multi_reduction <add>, %53, %cst_17 [2] : vector<4x32x8xf32> to vector<4x32xf32>
    %55 = vector.broadcast %39 : vector<1x1x8xf32> to vector<4x32x8xf32>
    %56 = arith.mulf %34, %55 : vector<4x32x8xf32>
    %57 = vector.broadcast %43 : vector<1x1x8xf32> to vector<4x32x8xf32>
    %58 = arith.mulf %33, %57 : vector<4x32x8xf32>
    %59 = arith.addf %56, %58 : vector<4x32x8xf32>
    %cst_18 = arith.constant dense<0.000000e+00> : vector<4x32xf32>
    %60 = vector.multi_reduction <add>, %59, %cst_18 [2] : vector<4x32x8xf32> to vector<4x32xf32>
    %c0_19 = arith.constant 0 : index
    %c0_20 = arith.constant 0 : index
    %61 = vector.load %arg6[%c0_19, %c0_20] : memref<1x1xf32, #tpu.memory_space<vmem>>, vector<1x1xf32>
    %62 = vector.broadcast %61 : vector<1x1xf32> to vector<4x32xf32>
    %63 = arith.addf %54, %62 : vector<4x32xf32>
    %cst_21 = arith.constant 0.000000e+00 : f32
    %64 = vector.broadcast %cst_21 : f32 to vector<4x32xf32>
    %65 = arith.subf %64, %63 : vector<4x32xf32>
    %66 = math.exp %65 : vector<4x32xf32>
    %cst_22 = arith.constant 1.000000e+00 : f32
    %67 = vector.broadcast %cst_22 : f32 to vector<4x32xf32>
    %68 = arith.addf %67, %66 : vector<4x32xf32>
    %69 = tpu.reciprocal %68 {approx = true} : vector<4x32xf32> -> vector<4x32xf32>
    %70 = vector.shape_cast %69 : vector<4x32xf32> to vector<4x1x32xf32>
    %c0_23 = arith.constant 0 : index
    %c0_24 = arith.constant 0 : index
    %c0_25 = arith.constant 0 : index
    %71 = vector.load %arg7[%c0_23, %c0_24, %c0_25] : memref<4x2x32xf32, #tpu.memory_space<vmem>>, vector<4x1x32xf32>
    tpu.vector_store %arg7[%c0_23, %c0_24, %c0_25], %70 {strides = array<i32>} : memref<4x2x32xf32, #tpu.memory_space<vmem>>, vector<4x1x32xf32>,
    %72 = vector.broadcast %61 : vector<1x1xf32> to vector<4x32xf32>
    %73 = arith.addf %60, %72 : vector<4x32xf32>
    %cst_26 = arith.constant 0.000000e+00 : f32
    %74 = vector.broadcast %cst_26 : f32 to vector<4x32xf32>
    %75 = arith.subf %74, %73 : vector<4x32xf32>
    %76 = math.exp %75 : vector<4x32xf32>
    %cst_27 = arith.constant 1.000000e+00 : f32
    %77 = vector.broadcast %cst_27 : f32 to vector<4x32xf32>
    %78 = arith.addf %77, %76 : vector<4x32xf32>
    %79 = tpu.reciprocal %78 {approx = true} : vector<4x32xf32> -> vector<4x32xf32>
    %80 = vector.shape_cast %79 : vector<4x32xf32> to vector<4x1x32xf32>
    %c0_28 = arith.constant 0 : index
    %c1 = arith.constant 1 : index
    %c0_29 = arith.constant 0 : index
    %81 = vector.load %arg7[%c0_28, %c1, %c0_29] : memref<4x2x32xf32, #tpu.memory_space<vmem>>, vector<4x1x32xf32>
    tpu.vector_store %arg7[%c0_28, %c1, %c0_29], %80 {strides = array<i32>} : memref<4x2x32xf32, #tpu.memory_space<vmem>>, vector<4x1x32xf32>,
    return
  }
  func.func @transform_0(%arg0: i32) -> (i32, i32, i32) {
    %c0_i32 = arith.constant 0 : i32
    %c0_i32_0 = arith.constant 0 : i32
    %c0_i32_1 = arith.constant 0 : i32
    %c0_i32_2 = arith.constant 0 : i32
    return %c0_i32, %c0_i32_0, %c0_i32_1 : i32, i32, i32
  }
  func.func @transform_1(%arg0: i32) -> (i32, i32) {
    %c0_i32 = arith.constant 0 : i32
    %c0_i32_0 = arith.constant 0 : i32
    %c0_i32_1 = arith.constant 0 : i32
    return %c0_i32, %c0_i32_0 : i32, i32
  }
  func.func @transform_2(%arg0: i32) -> (i32, i32) {
    %c0_i32 = arith.constant 0 : i32
    %c0_i32_0 = arith.constant 0 : i32
    %c0_i32_1 = arith.constant 0 : i32
    return %c0_i32, %c0_i32_0 : i32, i32
  }
  func.func @transform_3(%arg0: i32) -> (i32, i32, i32) {
    %c0_i32 = arith.constant 0 : i32
    %c0_i32_0 = arith.constant 0 : i32
    %c0_i32_1 = arith.constant 0 : i32
    return %arg0, %c0_i32, %c0_i32_0 : i32, i32, i32
  }
  func.func @transform_4(%arg0: i32) -> (i32, i32) {
    %c0_i32 = arith.constant 0 : i32
    %c0_i32_0 = arith.constant 0 : i32
    %c0_i32_1 = arith.constant 0 : i32
    return %c0_i32, %c0_i32_0 : i32, i32
  }
  func.func @transform_5(%arg0: i32) -> (i32, i32) {
    %c0_i32 = arith.constant 0 : i32
    %c0_i32_0 = arith.constant 0 : i32
    %c0_i32_1 = arith.constant 0 : i32
    return %c0_i32, %c0_i32_0 : i32, i32
  }
  func.func @transform_6(%arg0: i32) -> (i32, i32, i32) {
    %c0_i32 = arith.constant 0 : i32
    %c0_i32_0 = arith.constant 0 : i32
    %c0_i32_1 = arith.constant 0 : i32
    return %arg0, %c0_i32, %c0_i32_0 : i32, i32, i32
  }
}

</mosaic_0001>

<bundles_post_ra>
// kernel: forward.8
= control target key start
LH: loop header
LB: loop body
LE: loop exit
PB: predicated region body
PF: predicated region fallthrough
CT: control target
= control target key end

     0   :  { %s1032_s12 = smov 0   ;;  %s1280_s0 = inlined_call_operand.vmem [shape: bf16[8,32,2], index: 0, kind: input, shape index: {}]   ;;  %s1281_s1 = inlined_call_operand.vmem [shape: bf16[5,8], index: 1, kind: input, shape index: {}]   ;;  %s1282_s2 = inlined_call_operand.vmem [shape: bf16[8,32,8], index: 2, kind: output, shape index: {0}]   ;;  %s1283_s3 = inlined_call_operand.vmem [shape: f32[2,2,8], index: 3, kind: output, shape index: {1}]  }
   0x1 LB: > { %s1038_s13 = sadd.s32 4294967295, %s1007_s12   ;;  %p893_p0 = scmp.ge.s32.totalorder %s1007_s12, 1  ;;  %s1007_s12 = sphi %s1032_s12, %s14_s12  }
   0x2   : > { %p142_p1 = scmp.lt.s32.totalorder %s1007_s12, 3 }
   0x4   : > { %p143_p2 = pnand %p893_p0, %p142_p1 }
   0x5   : > { %s894_s14 = sshll.u32 (!%p143_p2), %s1038_s13, 2  ;;  %vm247_vm0 = vsmask.f32 (!%p143_p2), 256  ;;  %vm316_vm1 = vcmask (!%p143_p2), 1040384   ;;  %vm326_vm2 = vsmask.f32 (!%p143_p2), 7424 }
   0x6   : > { %146 = sbr.rel (%p143_p2) target bundleno = 414 (0x19e), region = 28  ;;  %p173_p3 = scmp.lt.s32.totalorder (!%p143_p2), %s894_s14, 7  ;;  %vm1059_vm3 = vmand (!%p143_p2), %vm316_vm1, %vm247_vm0  ;;  %vm431_vm4 = vcmask (!%p143_p2), 1046528   ;;  %vm520_vm5 = vcmask (!%p143_p2), 1041408   ;;  %vm521_vm6 = vcmask (!%p143_p2), 1042432   ;;  %vm468_vm7 = vcmask (!%p143_p2), 15360  }
   0x7   : > { %s1009_s19 = smov (!%p143_p2), 4   ;;  %s1010_s20 = smov (!%p143_p2), 2   ;;  %vm485_vm8 = vcmask (!%p143_p2), 31744   ;;  %vm503_vm9 = vcmask (!%p143_p2), 39936   ;;  %vm688_vm10 = vcmask (!%p143_p2), 60416   ;;  %vm705_vm11 = vcmask (!%p143_p2), 64512  }
   0x8   : > { %p186_p4 = scmp.lt.s32.totalorder (!%p143_p2), %s1038_s13, 1  ;;  %vm798_vm12 = vcmask (!%p143_p2), 58368  }
   0xd   : > { %s1287_s14 = smov (!%p173_p3, %s894_s14), 7  ;;  %s1289_s13 = smov (!%p186_p4, %s1038_s13), 1 }
   0xe   : > { %s935_s15 = sshll.u32 %s1287_s14, 4  ;;  %s900_s26 = sshll.u32 %s1289_s13, 1 }
   0xf   : > { %s1051_s18 = scalar_lea.vmem %s1280_s0, %s935_s15  ;;  %s1205_s25 = scalar_lea.vmem %s1282_s2, %s935_s15 }
  0x10   : > { %v993_v0 = vld [vmem:[%s1051_s18] sm:$0xff]   ;;  %v994_v1 = vld [vmem:[%s1051_s18 + $0x8] sm:$0xff]   ;;  %v995_v6 = vld [vmem:[%s1051_s18 + $0x10] sm:$0xff]   ;;  %s189_s29 = scalar_lea.vmem %s1283_s3, %s900_s26 }
  0x11   : > { %v249_v2 = vshrl.u32 %v993_v0, 16  ;;  %v252_v3 = vshll.u32 %v993_v0, 16  ;;  %v256_v4 = vshrl.u32 %v994_v1, 16  ;;  %v259_v5 = vshll.u32 %v994_v1, 16  ;;  %v996_v7 = vld [vmem:[%s1051_s18 + $0x18] sm:$0xff]   ;;  %v1066_v17 = vld [vmem:[%s1051_s18 + $0x20] sm:$0xff]  }
  0x12   : > { %v264_v11 = vshrl.u32 %v995_v6, 16  ;;  %v271_v12 = vshrl.u32 %v996_v7, 16  ;;  %v274_v16 = vshll.u32 %v996_v7, 16  ;;  %v998_v18 = vld [vmem:[%s1051_s18 + $0x28] sm:$0xff]   ;;  %v267_v22 = vshll.u32 %v995_v6, 16  ;;  %v999_v50 = vld [vmem:[%s1051_s18 + $0x30] sm:$0xff]  }
  0x13   : > { %v251_v8 = vrot.slane %v249_v2, 7  ;;  %v258_v9 = vrot.slane %v256_v4, 7  ;;  %v279_v26 = vshrl.u32 %v1066_v17, 16  ;;  %v286_v34 = vshrl.u32 %v998_v18, 16  ;;  %v1000_v51 = vld [vmem:[%s1051_s18 + $0x38] sm:$0xff]  }
  0x14   : > { %v273_v21 = vrot.slane %v271_v12, 7  ;;  %v266_v25 = vrot.slane %v264_v11, 7  ;;  %v289_v63 = vshll.u32 %v998_v18, 16  ;;  %v282_v0 = vshll.u32 %v1066_v17, 16 }
  0x15   : > { %v254_v13 = vor.u32 %v252_v3, %v251_v8  ;;  %v261_v14 = vor.u32 %v259_v5, %v258_v9  ;;  %v322_v15 = vsel %vm1059_vm3, %v258_v9, 0  ;;  %v281_v59 = vrot.slane %v279_v26, 7 }
  0x16   : > { %v435_v19 = vrot.slane %v322_v15, 1  ;;  %v343_v20 = vshll.u32 %v322_v15, 16  ;;  %v276_v33 = vor.u32 %v274_v16, %v273_v21  ;;  %v323_v38 = vsel %vm1059_vm3, %v273_v21, 0 }
  0x17   : > { %v1070_v23 = vsel %vm247_vm0, %v251_v8, %v261_v14  ;;  %v1074_v24 = vsel %vm1059_vm3, 0, %v254_v13  ;;  %v363_v41 = vshll.u32 %v323_v38, 16  ;;  %v269_v42 = vor.u32 %v267_v22, %v266_v25 }
  0x18   : > { %v432_v27 = vrot.slane %v1074_v24, 1  ;;  %v433_v28 = vrot.slane %v1070_v23, 1  ;;  %v328_v29 = vshrl.u32 %v1074_v24, 16  ;;  %v330_v30 = vshll.u32 %v1074_v24, 16 }
  0x19   : > { %v335_v31 = vshll.u32 %v1070_v23, 16  ;;  %v339_v32 = vshrl.u32 %v1070_v23, 16  ;;  %v345_v37 = vrot.slane %v343_v20, 1  ;;  %v1088_v40 = vsel %vm247_vm0, %v266_v25, %v276_v33 }
  0x1a   : > { %v434_v35 = vsel %vm431_vm4, %v432_v27, %v433_v28  ;;  %v332_v36 = vrot.slane %v330_v30, 1  ;;  %v436_v44 = vsel %vm431_vm4, %v433_v28, %v435_v19  ;;  %v355_v45 = vshll.u32 %v1088_v40, 16 }
  0x1b   : > { %452 = vrot.lane.b32.xlu1 %v434_v35, %s1009_s19  ;;  %v337_v39 = vrot.slane %v335_v31, 1  ;;  %v359_v46 = vshrl.u32 %v1088_v40, 16  ;;  %v365_v48 = vrot.slane %v363_v41, 1  ;;  %v1095_v49 = vsel %vm1059_vm3, 0, %v269_v42 }
  0x1c   : > { %v333_v43 = vor.u32 %v332_v36, %v328_v29  ;;  %v357_v53 = vrot.slane %v355_v45, 1  ;;  %v348_v54 = vshrl.u32 %v1095_v49, 16  ;;  %v350_v55 = vshll.u32 %v1095_v49, 16  ;;  %v502_v36 = vld [vmem:[%s1281_s1] sm:$0x7] }
  0x1d   : > { %v341_v47 = vor.u32 %v339_v32, %v337_v39  ;;  %v438_v57 = vrot.slane %v1088_v40, 1  ;;  %v440_v58 = vrot.slane %v323_v38, 1  ;;  %v288_v62 = vrot.slane %v286_v34, 7 }
  0x1e   : > { %v338_v52 = vsel %vm326_vm2, %v333_v43, %v337_v39  ;;  %v361_v60 = vor.u32 %v359_v46, %v357_v53  ;;  %v352_v61 = vrot.slane %v350_v55, 1  ;;  %v294_v1 = vshrl.u32 %v999_v50, 16 }
  0x1f   : > { %407 = vrot.lane.b32.xlu0 %v338_v52, %s1010_s20  ;;  %454 = vrot.lane.b32.xlu1 %v436_v44, %s1009_s19  ;;  %v346_v56 = vsel %vm326_vm2, %v341_v47, %v345_v37  ;;  %v301_v2 = vshrl.u32 %v1000_v51, 16  ;;  %v1011_v3 = vmov 65535   ;;  %v291_v7 = vor.u32 %v289_v63, %v288_v62 }
  0x20   : > { %v522_v4 = vsel %vm520_vm5, 4294967295, %v1011_v3  ;;  %v366_v5 = vsel %vm326_vm2, %v361_v60, %v365_v48  ;;  %v353_v6 = vor.u32 %v352_v61, %v348_v54  ;;  %v324_v8 = vsel %vm1059_vm3, %v288_v62, 0 }
  0x21   : > { %v441_v9 = vsel %vm431_vm4, %v438_v57, %v440_v58  ;;  %v437_v11 = vrot.slane %v1095_v49, 1  ;;  %v383_v12 = vshll.u32 %v324_v8, 16  ;;  %v284_v13 = vor.u32 %v282_v0, %v281_v59 }
  0x22   : > { %v358_v14 = vsel %vm326_vm2, %v353_v6, %v357_v53  ;;  %v1117_v15 = vsel %vm247_vm0, %v281_v59, %v291_v7  ;;  %v303_v16 = vrot.slane %v301_v2, 7  ;;  %v304_v17 = vshll.u32 %v1000_v51, 16 }
  0x23   : > { %409 = vrot.lane.b32.xlu0 %v346_v56, %s1010_s20  ;;  %413 = vrot.lane.b32.xlu1 %v366_v5, %s1010_s20  ;;  %v375_v18 = vshll.u32 %v1117_v15, 16  ;;  %v379_v19 = vshrl.u32 %v1117_v15, 16  ;;  %v1123_v20 = vsel %vm1059_vm3, 0, %v284_v13  ;;  %v296_v21 = vrot.slane %v294_v1, 7 }
  0x24   : > { %v385_v22 = vrot.slane %v383_v12, 1  ;;  %v368_v25 = vshrl.u32 %v1123_v20, 16  ;;  %v370_v26 = vshll.u32 %v1123_v20, 16  ;;  %v523_v27 = vsel %vm521_vm6, %v522_v4, 0 }
  0x25   : > { %v377_v28 = vrot.slane %v375_v18, 1  ;;  %v306_v29 = vor.u32 %v304_v17, %v303_v16  ;;  %v325_v30 = vsel %vm1059_vm3, %v303_v16, 0  ;;  %v297_v31 = vshll.u32 %v999_v50, 16 }
  0x26   : > { %v439_v32 = vsel %vm431_vm4, %v437_v11, %v438_v57  ;;  %v372_v33 = vrot.slane %v370_v26, 1  ;;  %v443_v34 = vrot.slane %v1117_v15, 1  ;;  %v445_v35 = vrot.slane %v324_v8, 1 }
  0x27   : > { %411 = vrot.lane.b32.xlu0 %v358_v14, %s1010_s20  ;;  %458 = vrot.lane.b32.xlu1 %v441_v9, %s1009_s19  ;;  %v381_v37 = vor.u32 %v379_v19, %v377_v28  ;;  %v1138_v38 = vsel %vm247_vm0, %v296_v21, %v306_v29  ;;  %v403_v39 = vshll.u32 %v325_v30, 16  ;;  %v299_v41 = vor.u32 %v297_v31, %v296_v21 }
  0x28   : > { %v373_v42 = vor.u32 %v372_v33, %v368_v25  ;;  %v395_v43 = vshll.u32 %v1138_v38, 16  ;;  %v399_v44 = vshrl.u32 %v1138_v38, 16  ;;  %v442_v46 = vrot.slane %v1123_v20, 1 }
  0x29   : > { %v386_v45 = vsel %vm326_vm2, %v381_v37, %v385_v22  ;;  %v1147_v47 = vsel %vm1059_vm3, 0, %v299_v41  ;;  %v525_v48 = vand.u32 %v523_v27, %v502_v36  ;;  %v446_v54 = vsel %vm431_vm4, %v443_v34, %v445_v35 }
  0x2a   : > { %v378_v50 = vsel %vm326_vm2, %v373_v42, %v377_v28  ;;  %v397_v51 = vrot.slane %v395_v43, 1  ;;  %v388_v52 = vshrl.u32 %v1147_v47, 16  ;;  %v390_v53 = vshll.u32 %v1147_v47, 16 }
  0x2b   : > { %456 = vrot.lane.b32.xlu0 %v439_v32, %s1009_s19  ;;  %417 = vrot.lane.b32.xlu1 %v386_v45, %s1010_s20  ;;  %v405_v55 = vrot.slane %v403_v39, 1  ;;  %v444_v10 = vsel %vm431_vm4, %v442_v46, %v443_v34  ;;  %v448_v60 = vrot.slane %v1138_v38, 1  ;;  %v450_v61 = vrot.slane %v325_v30, 1 }
  0x2c   : > { %962 = vmatprep.subr.bf16.mxu0 %v525_v48  ;;  %980 = vmatprep.subr.bf16.mxu1 %v525_v48  ;;  %v401_v56 = vor.u32 %v399_v44, %v397_v51  ;;  %v392_v57 = vrot.slane %v390_v53, 1  ;;  %v447_v63 = vrot.slane %v1147_v47, 1 }
  0x2d   : > { %963 = vmatpush3.bf16.msra.mxu0 %v525_v48  ;;  %981 = vmatpush3.bf16.msra.mxu1 %v525_v48  ;;  %v451_v0 = vsel %vm431_vm4, %v448_v60, %v450_v61 }
  0x2e   : > { %v393_v58 = vor.u32 %v392_v57, %v388_v52  ;;  %v406_v59 = vsel %vm326_vm2, %v401_v56, %v405_v55  ;;  %v449_v1 = vsel %vm431_vm4, %v447_v63, %v448_v60 }
  0x2f   : > { %415 = vrot.lane.b32.xlu0 %v378_v50, %s1010_s20  ;;  %462 = vrot.lane.b32.xlu1 %v446_v54, %s1009_s19 }
  0x30   : > { %v398_v62 = vsel %vm326_vm2, %v393_v58, %v397_v51 }
  0x33   : > { %460 = vrot.lane.b32.xlu0 %v444_v10, %s1009_s19  ;;  %421 = vrot.lane.b32.xlu1 %v406_v59, %s1010_s20 }
  0x37   : > { %419 = vrot.lane.b32.xlu0 %v398_v62, %s1010_s20  ;;  %466 = vrot.lane.b32.xlu1 %v451_v0, %s1009_s19 }
  0x3b   : > { %464 = vrot.lane.b32.xlu0 %v449_v1, %s1009_s19 }
  0x8d   : > { %v453_v2 = vpop.permute.xlu1 %452 }
  0x91   : > { %v408_v3 = vpop.permute.xlu0 %407  ;;  %v455_v4 = vpop.permute.xlu1 %454 }
  0x92   : > { %v470_v5 = vsel %vm468_vm7, %v1074_v24, %v408_v3 }
  0x93   : > { %v487_v6 = vsel %vm485_vm8, %v470_v5, %v453_v2 }
  0x94   : > { %964 = vmatprep.mubr.msk.bf16.mxu0 %vm503_vm9, %v487_v6 }
  0x95   : > { %v410_v7 = vpop.permute.xlu0 %409  ;;  %v414_v8 = vpop.permute.xlu1 %413 }
  0x96   : > { %v472_v9 = vsel %vm468_vm7, %v1070_v23, %v410_v7  ;;  %v476_v14 = vsel %vm468_vm7, %v1088_v40, %v414_v8 }
  0x97   : > { %v489_v11 = vsel %vm485_vm8, %v472_v9, %v455_v4 }
  0x98   : > { %965 = vmatmul.mubr.msk.bf16.vlgmr.msra.gmra.mrb[0].mxu0 %vm503_vm9, %v489_v11 }
  0x99   : > { %v412_v12 = vpop.permute.xlu0 %411  ;;  %v459_v13 = vpop.permute.xlu1 %458 }
  0x9a   : > { %v474_v24 = vsel %vm468_vm7, %v1095_v49, %v412_v12  ;;  %v493_v19 = vsel %vm485_vm8, %v476_v14, %v459_v13 }
  0x9d   : > { %v457_v16 = vpop.permute.xlu0 %456  ;;  %v418_v18 = vpop.permute.xlu1 %417 }
  0x9e   : > { %v491_v17 = vsel %vm485_vm8, %v474_v24, %v457_v16  ;;  %v480_v22 = vsel %vm468_vm7, %v1117_v15, %v418_v18 }
  0x9f   : > { %968 = vmatprep.mubr.msk.bf16.mxu0 %vm503_vm9, %v491_v17 }
  0xa0   : > { %969 = vmatmul.mubr.msk.bf16.gmra.mrb[4].mxu0 %vm503_vm9, %v493_v19 }
  0xa1   : > { %v416_v23 = vpop.permute.xlu0 %415  ;;  %v463_v21 = vpop.permute.xlu1 %462 }
  0xa2   : > { %v478_v40 = vsel %vm468_vm7, %v1123_v20, %v416_v23  ;;  %v497_v27 = vsel %vm485_vm8, %v480_v22, %v463_v21 }
  0xa5   : > { %v461_v49 = vpop.permute.xlu0 %460  ;;  %v422_v25 = vpop.permute.xlu1 %421 }
  0xa6   : > { %v495_v26 = vsel %vm485_vm8, %v478_v40, %v461_v49  ;;  %v484_v29 = vsel %vm468_vm7, %v1138_v38, %v422_v25 }
  0xa7   : > { %972 = vmatprep.mubr.msk.bf16.mxu1 %vm503_vm9, %v495_v26 }
  0xa8   : > { %973 = vmatmul.mubr.msk.bf16.vlgmr.msra.gmra.mrb[0].mxu1 %vm503_vm9, %v497_v27 }
  0xa9   : > { %v420_v28 = vpop.permute.xlu0 %419  ;;  %v467_v30 = vpop.permute.xlu1 %466 }
  0xaa   : > { %v482_v15 = vsel %vm468_vm7, %v1147_v47, %v420_v28  ;;  %v501_v32 = vsel %vm485_vm8, %v484_v29, %v467_v30 }
  0xad   : > { %v465_v20 = vpop.permute.xlu0 %464 }
  0xae   : > { %v499_v31 = vsel %vm485_vm8, %v482_v15, %v465_v20 }
  0xaf   : > { %976 = vmatprep.mubr.msk.bf16.mxu1 %vm503_vm9, %v499_v31 }
  0xb0   : > { %977 = vmatmul.mubr.msk.bf16.gmra.mrb[4].mxu1 %vm503_vm9, %v501_v32 }
 0x16b   : > { %v966_v33 = vpop.f32.mrb[0].mxu0 }
 0x16c   : > { %v939_v34 = vpack.c.bf16 %v966_v33, %v966_v33  ;;  %v561_v35 = vpop.f32.mrb[1].mxu0  ;;  %v745_v39 = vmul.f32 %v966_v33, %v966_v33  ;;  %v709_v50 = vsel %vm705_vm11, %v966_v33, 0.0 }
 0x16d   : > { %v937_v36 = vpack.c.bf16 %v561_v35, %v561_v35  ;;  %v743_v37 = vmul.f32 %v561_v35, %v561_v35  ;;  %v967_v38 = vpop.f32.mrb[2].mxu0  ;;  %v706_v43 = vsel %vm705_vm11, %v561_v35, 0.0 }
 0x16e   : > { %691 = vst.msk [vmem:[%s1205_s25 + $0x8] sm:$0xf] %vm688_vm10, %v939_v34  ;;  %v940_v41 = vpack.c.bf16 %v967_v38, %v967_v38  ;;  %v564_v42 = vpop.f32.mrb[3].mxu0  ;;  %v746_v47 = vmul.f32 %v967_v38, %v967_v38  ;;  %v762_v55 = vsel %vm705_vm11, %v745_v39, 0.0  ;;  %v711_v57 = vsel %vm705_vm11, %v967_v38, 0.0 }
 0x16f   : > { %689 = vst.msk [vmem:[%s1205_s25] sm:$0xf] %vm688_vm10, %v937_v36  ;;  %v938_v44 = vpack.c.bf16 %v564_v42, %v564_v42  ;;  %v707_v45 = vsel %vm705_vm11, %v564_v42, 0.0  ;;  %v744_v46 = vmul.f32 %v564_v42, %v564_v42  ;;  %v759_v51 = vsel %vm705_vm11, %v743_v37, 0.0 }
 0x170   : > { %692 = vst.msk [vmem:[%s1205_s25 + $0xc] sm:$0xf] %vm688_vm10, %v940_v41  ;;  %v708_v48 = vadd.f32 %v707_v45, %v706_v43  ;;  %v764_v10 = vsel %vm705_vm11, %v746_v47, 0.0 }
 0x171   : > { %690 = vst.msk [vmem:[%s1205_s25 + $0x4] sm:$0xf] %vm688_vm10, %v938_v44  ;;  %v760_v52 = vsel %vm705_vm11, %v744_v46, 0.0 }
 0x172   : > { %v710_v53 = vadd.f32 %v709_v50, %v708_v48  ;;  %v761_v54 = vadd.f32 %v760_v52, %v759_v51 }
 0x173   : > { %v970_v56 = vpop.f32.mrb[4].mxu0 }
 0x174   : > { %v763_v58 = vadd.f32 %v762_v55, %v761_v54  ;;  %v943_v59 = vpack.c.bf16 %v970_v56, %v970_v56  ;;  %v577_v60 = vpop.f32.mrb[5].mxu0  ;;  %v712_v62 = vadd.f32 %v711_v57, %v710_v53  ;;  %v749_v8 = vmul.f32 %v970_v56, %v970_v56 }
 0x175   : > { %v941_v61 = vpack.c.bf16 %v577_v60, %v577_v60  ;;  %v713_v63 = vsel %vm705_vm11, %v577_v60, 0.0  ;;  %v747_v0 = vmul.f32 %v577_v60, %v577_v60  ;;  %v971_v1 = vpop.f32.mrb[6].mxu0  ;;  %v717_v14 = vsel %vm705_vm11, %v970_v56, 0.0 }
 0x176   : > { %695 = vst.msk [vmem:[%s1205_s25 + $0x18] sm:$0xf] %vm688_vm10, %v943_v59  ;;  %v765_v2 = vadd.f32 %v764_v10, %v763_v58  ;;  %v944_v3 = vpack.c.bf16 %v971_v1, %v971_v1  ;;  %v580_v4 = vpop.f32.mrb[7].mxu0  ;;  %v714_v5 = vadd.f32 %v713_v63, %v712_v62  ;;  %v750_v24 = vmul.f32 %v971_v1, %v971_v1 }
 0x177   : > { %693 = vst.msk [vmem:[%s1205_s25 + $0x10] sm:$0xf] %vm688_vm10, %v941_v61  ;;  %v766_v6 = vsel %vm705_vm11, %v747_v0, 0.0  ;;  %v942_v7 = vpack.c.bf16 %v580_v4, %v580_v4  ;;  %v715_v11 = vsel %vm705_vm11, %v580_v4, 0.0  ;;  %v748_v12 = vmul.f32 %v580_v4, %v580_v4 }
 0x178   : > { %v767_v9 = vadd.f32 %v766_v6, %v765_v2  ;;  %696 = vst.msk [vmem:[%s1205_s25 + $0x1c] sm:$0xf] %vm688_vm10, %v944_v3  ;;  %v716_v13 = vadd.f32 %v715_v11, %v714_v5  ;;  %v770_v23 = vsel %vm705_vm11, %v749_v8, 0.0  ;;  %v719_v21 = vsel %vm705_vm11, %v971_v1, 0.0 }
 0x179   : > { %694 = vst.msk [vmem:[%s1205_s25 + $0x14] sm:$0xf] %vm688_vm10, %v942_v7  ;;  %v768_v16 = vsel %vm705_vm11, %v748_v12, 0.0  ;;  %v772_v29 = vsel %vm705_vm11, %v750_v24, 0.0 }
 0x17a   : > { %v718_v17 = vadd.f32 %v717_v14, %v716_v13  ;;  %v769_v18 = vadd.f32 %v768_v16, %v767_v9 }
 0x17b   : > { %v974_v19 = vpop.f32.mrb[0].mxu1 }
 0x17c   : > { %v947_v22 = vpack.c.bf16 %v974_v19, %v974_v19  ;;  %v593_v40 = vpop.f32.mrb[1].mxu1  ;;  %v771_v49 = vadd.f32 %v770_v23, %v769_v18  ;;  %v720_v26 = vadd.f32 %v719_v21, %v718_v17  ;;  %v753_v34 = vmul.f32 %v974_v19, %v974_v19 }
 0x17d   : > { %v945_v25 = vpack.c.bf16 %v593_v40, %v593_v40  ;;  %v721_v27 = vsel %vm705_vm11, %v593_v40, 0.0  ;;  %v975_v28 = vpop.f32.mrb[2].mxu1  ;;  %v751_v30 = vmul.f32 %v593_v40, %v593_v40  ;;  %v725_v41 = vsel %vm705_vm11, %v974_v19, 0.0 }
 0x17e   : > { %699 = vst.msk [vmem:[%s1205_s25 + $0x28] sm:$0xf] %vm688_vm10, %v947_v22  ;;  %v948_v15 = vpack.c.bf16 %v975_v28, %v975_v28  ;;  %v596_v20 = vpop.f32.mrb[3].mxu1  ;;  %v722_v31 = vadd.f32 %v721_v27, %v720_v26  ;;  %v773_v32 = vadd.f32 %v772_v29, %v771_v49  ;;  %v754_v42 = vmul.f32 %v975_v28, %v975_v28 }
 0x17f   : > { %697 = vst.msk [vmem:[%s1205_s25 + $0x20] sm:$0xf] %vm688_vm10, %v945_v25  ;;  %v946_v33 = vpack.c.bf16 %v596_v20, %v596_v20  ;;  %v774_v35 = vsel %vm705_vm11, %v751_v30, 0.0  ;;  %v723_v36 = vsel %vm705_vm11, %v596_v20, 0.0  ;;  %v752_v37 = vmul.f32 %v596_v20, %v596_v20 }
 0x180   : > { %700 = vst.msk [vmem:[%s1205_s25 + $0x2c] sm:$0xf] %vm688_vm10, %v948_v15  ;;  %v775_v38 = vadd.f32 %v774_v35, %v773_v32  ;;  %v724_v39 = vadd.f32 %v723_v36, %v722_v31  ;;  %v778_v47 = vsel %vm705_vm11, %v753_v34, 0.0  ;;  %v727_v48 = vsel %vm705_vm11, %v975_v28, 0.0 }
 0x181   : > { %698 = vst.msk [vmem:[%s1205_s25 + $0x24] sm:$0xf] %vm688_vm10, %v946_v33  ;;  %v776_v43 = vsel %vm705_vm11, %v752_v37, 0.0  ;;  %v780_v57 = vsel %vm705_vm11, %v754_v42, 0.0 }
 0x182   : > { %v726_v44 = vadd.f32 %v725_v41, %v724_v39  ;;  %v777_v45 = vadd.f32 %v776_v43, %v775_v38 }
 0x183   : > { %v978_v46 = vpop.f32.mrb[4].mxu1 }
 0x184   : > { %v951_v50 = vpack.c.bf16 %v978_v46, %v978_v46  ;;  %v609_v51 = vpop.f32.mrb[5].mxu1  ;;  %v779_v52 = vadd.f32 %v778_v47, %v777_v45  ;;  %v728_v54 = vadd.f32 %v727_v48, %v726_v44  ;;  %v757_v63 = vmul.f32 %v978_v46, %v978_v46 }
 0x185   : > { %v949_v53 = vpack.c.bf16 %v609_v51, %v609_v51  ;;  %v729_v55 = vsel %vm705_vm11, %v609_v51, 0.0  ;;  %v979_v56 = vpop.f32.mrb[6].mxu1  ;;  %v755_v10 = vmul.f32 %v609_v51, %v609_v51  ;;  %v733_v5 = vsel %vm705_vm11, %v978_v46, 0.0 }
 0x186   : > { %703 = vst.msk [vmem:[%s1205_s25 + $0x38] sm:$0xf] %vm688_vm10, %v951_v50  ;;  %v952_v58 = vpack.c.bf16 %v979_v56, %v979_v56  ;;  %v612_v59 = vpop.f32.mrb[7].mxu1  ;;  %v730_v60 = vadd.f32 %v729_v55, %v728_v54  ;;  %v781_v61 = vadd.f32 %v780_v57, %v779_v52  ;;  %v758_v6 = vmul.f32 %v979_v56, %v979_v56 }
 0x187   : > { %701 = vst.msk [vmem:[%s1205_s25 + $0x30] sm:$0xf] %vm688_vm10, %v949_v53  ;;  %v950_v62 = vpack.c.bf16 %v612_v59, %v612_v59  ;;  %v782_v0 = vsel %vm705_vm11, %v755_v10, 0.0  ;;  %v731_v1 = vsel %vm705_vm11, %v612_v59, 0.0  ;;  %v756_v2 = vmul.f32 %v612_v59, %v612_v59 }
 0x188   : > { %704 = vst.msk [vmem:[%s1205_s25 + $0x3c] sm:$0xf] %vm688_vm10, %v952_v58  ;;  %v783_v3 = vadd.f32 %v782_v0, %v781_v61  ;;  %v732_v4 = vadd.f32 %v731_v1, %v730_v60  ;;  %v786_v11 = vsel %vm705_vm11, %v757_v63, 0.0  ;;  %v735_v12 = vsel %vm705_vm11, %v979_v56, 0.0 }
 0x189   : > { %702 = vst.msk [vmem:[%s1205_s25 + $0x34] sm:$0xf] %vm688_vm10, %v950_v62  ;;  %v784_v7 = vsel %vm705_vm11, %v756_v2, 0.0  ;;  %v788_v24 = vsel %vm705_vm11, %v758_v6, 0.0 }
 0x18a   : > { %v734_v8 = vadd.f32 %v733_v5, %v732_v4  ;;  %v785_v9 = vadd.f32 %v784_v7, %v783_v3 }
 0x18c   : > { %v736_v13 = vadd.f32 %v735_v12, %v734_v8  ;;  %v787_v14 = vadd.f32 %v786_v11, %v785_v9 }
 0x18e   : > { %v737_v16 = vrot.slane %v736_v13, 4  ;;  %v789_v17 = vadd.f32 %v788_v24, %v787_v14 }
 0x190   : > { %v738_v18 = vadd.f32 %v737_v16, %v736_v13  ;;  %v790_v19 = vrot.slane %v789_v17, 4 }
 0x192   : > { %v739_v23 = vrot.slane %v738_v18, 2  ;;  %v791_v21 = vadd.f32 %v790_v19, %v789_v17 }
 0x194   : > { %v740_v22 = vadd.f32 %v739_v23, %v738_v18  ;;  %v792_v40 = vrot.slane %v791_v21, 2 }
 0x196   : > { %v741_v49 = vrot.slane %v740_v22, 1  ;;  %v793_v25 = vadd.f32 %v792_v40, %v791_v21 }
 0x198   : > { %v794_v26 = vrot.slane %v793_v25, 1  ;;  %v742_v27 = vadd.f32 %v741_v49, %v740_v22 }
 0x19a   : > { %v795_v28 = vadd.f32 %v794_v26, %v793_v25 }
 0x19c   : > { %v797_v29 = vsel %vm316_vm1, %v742_v27, %v795_v28 }
 0x19d   : > { %799 = vst.msk [vmem:[%s189_s29] sm:$0x3] %vm798_vm12, %v797_v29 }
 0x19e PF: > { %s14_s12 = sadd.s32 1, %s1007_s12  }
 0x19f   : > { %p11_p5 = scmp.ge.s32.totalorder %s14_s12, 4  }
 0x1a1   :  { %13 = sbr.rel (!%p11_p5) target bundleno = 1 (0x1), region = 70 }

// kernel: forward.10
= control target key start
LH: loop header
LB: loop body
LE: loop exit
PB: predicated region body
PF: predicated region fallthrough
CT: control target
= control target key end

     0   :  { %s1090_s27 = smov 0   ;;  %s1227_s0 = inlined_call_operand.vmem [shape: f32[2,2,16], index: 0, kind: input, shape index: {}]   ;;  %s1228_s1 = inlined_call_operand.vmem [shape: f32[1,16], index: 1, kind: input, shape index: {}]   ;;  %s1229_s2 = inlined_call_operand.vmem [shape: f32[1,16], index: 2, kind: input, shape index: {}]   ;;  %s1230_s3 = inlined_call_operand.vmem [shape: bf16[8,8,32], index: 3, kind: input, shape index: {}]   ;;  %s1231_s4 = inlined_call_operand.vmem [shape: bf16[32,32], index: 4, kind: input, shape index: {}]   ;;  %s1232_s5 = inlined_call_operand.vmem [shape: bf16[32,32], index: 5, kind: input, shape index: {}]   ;;  %s1233_s6 = inlined_call_operand.vmem [shape: bf16[16,32], index: 6, kind: input, shape index: {}]   ;;  %s1234_s7 = inlined_call_operand.vmem [shape: bf16[8,8,32], index: 7, kind: output, shape index: {0}]   ;;  %s1235_s8 = inlined_call_operand.vmem [shape: f32[2,2,32], index: 8, kind: output, shape index: {1}]  }
   0x1 LB: > { %s1096_s28 = sadd.s32 4294967295, %s1041_s27   ;;  %p923_p0 = scmp.ge.s32.totalorder %s1041_s27, 1  ;;  %s1041_s27 = sphi %s1090_s27, %s19_s27  }
   0x2   : > { %p266_p1 = scmp.lt.s32.totalorder %s1041_s27, 3 }
   0x4   : > { %p267_p2 = pnand %p923_p0, %p266_p1 }
   0x5   : > { %v325_v0 = vld [vmem:[%s1227_s0] sm:$0x3] (!%p267_p2)  ;;  %v326_v1 = vld [vmem:[%s1227_s0 + $0x2] sm:$0x3] (!%p267_p2)  ;;  %vm327_vm0 = vcmask (!%p267_p2), 123904   ;;  %v345_v13 = vlaneseq (!%p267_p2)  ;;  %s1044_s15 = smov (!%p267_p2), 16  }
   0x6   : > { %270 = sbr.rel (%p267_p2) target bundleno = 438 (0x1b6), region = 48  ;;  %v328_v2 = vsel (!%p267_p2), %vm327_vm0, %v325_v0, 0.0  ;;  %v329_v3 = vsel (!%p267_p2), %vm327_vm0, %v326_v1, 0.0  ;;  %v1043_v11 = vmov (!%p267_p2), 1966171168   ;;  %v1028_v28 = vld [vmem:[%s1231_s4] sm:$0xff] (!%p267_p2)  }
   0x7   : > { %v330_v4 = vadd.f32 (!%p267_p2), %v329_v3, %v328_v2  ;;  %v343_v12 = vunpack.c.l.s4 (!%p267_p2), %v1043_v11  ;;  %v346_v15 = vshrl.u32 (!%p267_p2), %v345_v13, 7  ;;  %v338_v20 = vld [vmem:[%s1228_s1] sm:$0x1] (!%p267_p2)  ;;  %v1029_v30 = vld [vmem:[%s1231_s4 + $0x8] sm:$0xff] (!%p267_p2)   ;;  %996 = vmatprep.subr.bf16.mxu0 (!%p267_p2), %v1028_v28  ;;  %s924_s26 = sshll.u32 (!%p267_p2), %s1096_s28, 2  ;;  %vm370_vm1 = vcmask (!%p267_p2), 130048  }
   0x8   : > { %v359_v24 = vld [vmem:[%s1229_s2] sm:$0x1] (!%p267_p2)  ;;  %997 = vmatpush3.bf16.msra.mxu0 (!%p267_p2), %v1028_v28  ;;  %v1032_v33 = vld [vmem:[%s1232_s5 + $0x8] sm:$0xff] (!%p267_p2)   ;;  %p305_p3 = scmp.lt.s32.totalorder (!%p267_p2), %s924_s26, 7  ;;  %vm441_vm2 = vcmask (!%p267_p2), 1040384   ;;  %vm448_vm4 = vcmask (!%p267_p2), 1044480  }
   0x9   : > { %v331_v5 = vmul.f32 (!%p267_p2), 0.0078125, %v330_v4  ;;  %v344_v14 = vunpack.c.0.s8 (!%p267_p2), %v343_v12  ;;  %v365_v22 = vsub.s32 (!%p267_p2), 0, %v346_v15  ;;  %998 = vmatprep.subr.bf16.mxu0 (!%p267_p2), %v1029_v30  ;;  %v1121_v31 = vld [vmem:[%s1233_s6] sm:$0xff] (!%p267_p2)   ;;  %vm442_vm3 = vsmask.f32 (!%p267_p2), 256  ;;  %p316_p4 = scmp.lt.s32.totalorder (!%p267_p2), %s1096_s28, 1 }
   0xa   : > { %v1031_v32 = vld [vmem:[%s1232_s5] sm:$0xff] (!%p267_p2)   ;;  %vm449_vm5 = vsmask.f32 (!%p267_p2), 4352  ;;  %vm1142_vm6 = vmand (!%p267_p2), %vm441_vm2, %vm442_vm3  ;;  %vm560_vm8 = vcmask (!%p267_p2), 261120   ;;  %vm685_vm9 = vcmask (!%p267_p2), 1042432   ;;  %vm686_vm10 = vcmask (!%p267_p2), 1046532  }
   0xb   : > { %v332_v6 = vmul.f32 (!%p267_p2), %v331_v5, %v331_v5  ;;  %v347_v16 = vsub.s32 (!%p267_p2), %v344_v14, %v346_v15  ;;  %988 = vmatprep.subr.bf16.mxu1 (!%p267_p2), %v1031_v32  ;;  %vm1146_vm7 = vmand (!%p267_p2), %vm448_vm4, %vm449_vm5  ;;  %vm479_vm11 = vsmask.f32 (!%p267_p2), 3328  ;;  %vm480_vm13 = vsmask.f32 (!%p267_p2), 7440 }
   0xc   : > { %999 = vmatpush3.bf16.msra.mxu0 (!%p267_p2), %v1029_v30  ;;  %989 = vmatpush3.bf16.msra.mxu1 (!%p267_p2), %v1031_v32  ;;  %vm1168_vm12 = vmor (!%p267_p2), %vm685_vm9, %vm686_vm10  ;;  %vm793_vm15 = vcmask (!%p267_p2), 257024   ;;  %vm830_vm0 = vcmask (!%p267_p2), 254976  }
   0xd   : > { %v334_v7 = vrot.slane %v332_v6, 7  ;;  %1004 = vmatprep.subr.bf16.mxu0 %v1121_v31  ;;  %990 = vmatprep.subr.bf16.mxu1 %v1032_v33  ;;  %s1245_s26 = smov (!%p305_p3, %s924_s26), 7  ;;  %vm1182_vm14 = vmor %vm479_vm11, %vm480_vm13  ;;  %s1247_s28 = smov (!%p316_p4, %s1096_s28), 1 }
   0xe   : > { %s925_s29 = sshll.u32 %s1245_s26, 2  ;;  %s928_s14 = sshll.u32 %s1247_s28, 1 }
   0xf   : > { %v336_v8 = vsub.f32 %v331_v5, %v334_v7  ;;  %s308_s10 = scalar_lea.vmem %s1230_s3, %s925_s29  ;;  %s314_s13 = scalar_lea.vmem %s1234_s7, %s925_s29 }
  0x10   : > { %991 = vmatpush3.bf16.msra.mxu1 %v1032_v33  ;;  %v969_v34 = vld [vmem:[%s308_s10] sm:$0xff]   ;;  %v976_v35 = vld [vmem:[%s308_s10 + $0x8] sm:$0xff]   ;;  %s319_s17 = scalar_lea.vmem %s1235_s8, %s928_s14 }
  0x11   : > { %v337_v9 = vmax.f32 %v336_v8, 0.0  ;;  %v970_v37 = vunpack.c.l.bf16 %v969_v34  ;;  %v971_v39 = vunpack.c.h.bf16 %v969_v34  ;;  %v974_v40 = vunpack.c.l.bf16 %v976_v35 }
  0x12   : > { %v975_v41 = vunpack.c.h.bf16 %v976_v35 }
  0x13   : > { %v339_v10 = vadd.f32 1e-05, %v337_v9 }
  0x15   : > { %1033 = vrsqrt.f32 %v339_v10 }
  0x1f   : > { %v1034_v17 = vpop.eup %1033 }
  0x20   : > { %v348_v18 = vrot.slane %v1034_v17, %v347_v16 }
  0x22   : > { %v349_v19 = vcombine.high %v348_v18, %v348_v18 }
  0x24   : > { %v356_v21 = vrot.slane %v349_v19, %v347_v16 }
  0x26   : > { %v358_v23 = vmul.f32 %v356_v21, %v338_v20 }
  0x28   : > { %v366_v25 = vrot.slane %v358_v23, %v365_v22  ;;  %v360_v26 = vmul.f32 %v358_v23, %v331_v5 }
  0x2a   : > { %367 = vrot.lane.b32.xlu0 %v366_v25, %s1044_s15  ;;  %v361_v27 = vsub.f32 %v359_v24, %v360_v26 }
  0x2c   : > { %v376_v29 = vrot.slane %v361_v27, %v365_v22 }
  0x2e   : > { %377 = vrot.lane.b32.xlu0 %v376_v29, %s1044_s15 }
  0x9c   : > { %v368_v36 = vpop.permute.xlu0 %367 }
  0x9d   : > { %v371_v38 = vsel %vm370_vm1, %v358_v23, %v368_v36 }
  0x9e   : > { %v388_v42 = vrot.slane %v371_v38, %v365_v22 }
  0xa0   : > { %v378_v43 = vpop.permute.xlu0 %377  ;;  %v389_v44 = vmul.f32 %v970_v37, %v388_v42  ;;  %v390_v46 = vmul.f32 %v971_v39, %v388_v42  ;;  %v391_v47 = vmul.f32 %v974_v40, %v388_v42  ;;  %v392_v48 = vmul.f32 %v975_v41, %v388_v42 }
  0xa1   : > { %v380_v45 = vsel %vm370_vm1, %v361_v27, %v378_v43 }
  0xa2   : > { %v396_v49 = vrot.slane %v380_v45, %v365_v22 }
  0xa4   : > { %v397_v50 = vadd.f32 %v396_v49, %v389_v44  ;;  %v398_v51 = vadd.f32 %v396_v49, %v390_v46  ;;  %v399_v52 = vadd.f32 %v396_v49, %v391_v47  ;;  %v400_v53 = vadd.f32 %v396_v49, %v392_v48 }
  0xa6   : > { %v403_v54 = vmax.f32 %v399_v52, 0.0  ;;  %v404_v55 = vmax.f32 %v400_v53, 0.0  ;;  %v401_v56 = vmax.f32 %v397_v50, 0.0  ;;  %v402_v57 = vmax.f32 %v398_v51, 0.0 }
  0xa8   : > { %v407_v58 = vpack.c.bf16 %v403_v54, %v403_v54  ;;  %v408_v59 = vpack.c.bf16 %v404_v55, %v404_v55  ;;  %v405_v60 = vpack.c.bf16 %v401_v56, %v401_v56  ;;  %v406_v61 = vpack.c.bf16 %v402_v57, %v402_v57 }
  0xaa   : > { %v424_v62 = vshrl.u32 %v407_v58, 16  ;;  %v431_v63 = vshrl.u32 %v408_v59, 16  ;;  %v410_v0 = vshrl.u32 %v405_v60, 16  ;;  %v417_v1 = vshrl.u32 %v406_v61, 16 }
  0xab   : > { %v427_v3 = vshll.u32 %v407_v58, 16  ;;  %v434_v5 = vshll.u32 %v408_v59, 16  ;;  %v413_v7 = vshll.u32 %v405_v60, 16  ;;  %v420_v9 = vshll.u32 %v406_v61, 16 }
  0xac   : > { %v426_v2 = vrot.slane %v424_v62, 7  ;;  %v433_v4 = vrot.slane %v431_v63, 7  ;;  %v412_v6 = vrot.slane %v410_v0, 7  ;;  %v419_v8 = vrot.slane %v417_v1, 7 }
  0xae   : > { %v429_v12 = vor.u32 %v427_v3, %v426_v2  ;;  %v436_v13 = vor.u32 %v434_v5, %v433_v4  ;;  %v415_v14 = vor.u32 %v413_v7, %v412_v6  ;;  %v422_v15 = vor.u32 %v420_v9, %v419_v8 }
  0xb0   : > { %v446_v16 = vsel %vm1142_vm6, 0, %v429_v12  ;;  %v447_v17 = vsel %vm1142_vm6, 0, %v436_v13  ;;  %v444_v18 = vsel %vm1142_vm6, 0, %v415_v14  ;;  %v445_v19 = vsel %vm1142_vm6, 0, %v422_v15 }
  0xb1   : > { %v453_v20 = vsel %vm1146_vm7, %v446_v16, 0  ;;  %v454_v21 = vsel %vm1146_vm7, %v447_v17, 0  ;;  %v451_v22 = vsel %vm1146_vm7, %v444_v18, 0  ;;  %v452_v23 = vsel %vm1146_vm7, %v445_v19, 0 }
  0xb2   : > { %v933_v24 = vcombine.low %v453_v20, %v453_v20  ;;  %v934_v25 = vcombine.high %v453_v20, %v453_v20  ;;  %v929_v26 = vcombine.low %v451_v22, %v451_v22  ;;  %v930_v27 = vcombine.high %v451_v22, %v451_v22 }
  0xb3   : > { %v931_v28 = vcombine.low %v452_v23, %v452_v23  ;;  %v932_v29 = vcombine.high %v452_v23, %v452_v23  ;;  %v943_v30 = vcombine.low %v451_v22, %v452_v23  ;;  %v935_v32 = vcombine.low %v454_v21, %v454_v21 }
  0xb4   : > { %v944_v33 = vcombine.low %v453_v20, %v454_v21  ;;  %v949_v35 = vrot.slane %v929_v26, 9  ;;  %v690_v36 = vrot.slane %v930_v27, 5  ;;  %v936_v39 = vcombine.high %v454_v21, %v454_v21 }
  0xb5   : > { %v950_v37 = vrot.slane %v931_v28, 9  ;;  %v694_v38 = vrot.slane %v932_v29, 5  ;;  %1000 = vmatprep.mubr.msk.bf16.mxu0 %vm560_vm8, %v943_v30  ;;  %v951_v40 = vrot.slane %v933_v24, 9  ;;  %v698_v41 = vrot.slane %v934_v25, 5 }
  0xb6   : > { %v952_v42 = vrot.slane %v935_v32, 9  ;;  %1001 = vmatmul.mubr.msk.bf16.vlgmr.msra.gmra.mrb[0].mxu0 %vm560_vm8, %v944_v33  ;;  %v691_v43 = vsel %vm1168_vm12, %v949_v35, %v690_v36  ;;  %v483_v45 = vshrl.u32 %v929_v26, 16  ;;  %v486_v46 = vshll.u32 %v929_v26, 16 }
  0xb7   : > { %v695_v44 = vsel %vm1168_vm12, %v950_v37, %v694_v38  ;;  %1005 = vmatpush3.bf16.msra.mxu0 %v1121_v31  ;;  %v492_v48 = vshll.u32 %v930_v27, 16  ;;  %v497_v49 = vshrl.u32 %v931_v28, 16  ;;  %v500_v50 = vshll.u32 %v931_v28, 16 }
  0xb8   : > { %v953_v47 = vcombine.low %v691_v43, %v695_v44  ;;  %v485_v51 = vrot.slane %v483_v45, 4  ;;  %v488_v52 = vrot.slane %v486_v46, 5  ;;  %v506_v53 = vshll.u32 %v932_v29, 16 }
  0xb9   : > { %v511_v54 = vshrl.u32 %v933_v24, 16  ;;  %v702_v55 = vrot.slane %v936_v39, 5  ;;  %v499_v56 = vrot.slane %v497_v49, 4  ;;  %v502_v57 = vrot.slane %v500_v50, 5 }
  0xba   : > { %1006 = vmatprep.mubr.msk.bf16.mxu0 %vm370_vm1, %v953_v47  ;;  %v514_v58 = vshll.u32 %v933_v24, 16  ;;  %v489_v59 = vor.u32 %v488_v52, %v485_v51  ;;  %v494_v60 = vrot.slane %v492_v48, 5  ;;  %v520_v62 = vshll.u32 %v934_v25, 16 }
  0xbb   : > { %v513_v61 = vrot.slane %v511_v54, 4  ;;  %v503_v63 = vor.u32 %v502_v57, %v499_v56  ;;  %v525_v1 = vshrl.u32 %v935_v32, 16  ;;  %v528_v2 = vshll.u32 %v935_v32, 16 }
  0xbc   : > { %v516_v0 = vrot.slane %v514_v58, 5  ;;  %v490_v3 = vrot.slane %v489_v59, 4  ;;  %v508_v4 = vrot.slane %v506_v53, 5  ;;  %v534_v5 = vshll.u32 %v936_v39, 16 }
  0xbd   : > { %v699_v6 = vsel %vm1168_vm12, %v951_v40, %v698_v41  ;;  %v504_v7 = vrot.slane %v503_v63, 4  ;;  %v527_v9 = vrot.slane %v525_v1, 4  ;;  %v530_v10 = vrot.slane %v528_v2, 5 }
  0xbe   : > { %v517_v8 = vor.u32 %v516_v0, %v513_v61  ;;  %v495_v11 = vsel %vm1182_vm14, %v490_v3, %v494_v60  ;;  %v703_v12 = vsel %vm1168_vm12, %v952_v42, %v702_v55  ;;  %v522_v15 = vrot.slane %v520_v62, 5 }
  0xbf   : > { %v509_v13 = vsel %vm1182_vm14, %v504_v7, %v508_v4  ;;  %v531_v16 = vor.u32 %v530_v10, %v527_v9  ;;  %v954_v18 = vcombine.low %v699_v6, %v703_v12  ;;  %v536_v21 = vrot.slane %v534_v5, 5 }
  0xc0   : > { %v518_v14 = vrot.slane %v517_v8, 4  ;;  %v937_v17 = vcombine.low %v495_v11, %v509_v13 }
  0xc1   : > { %v532_v20 = vrot.slane %v531_v16, 4 }
  0xc2   : > { %v523_v19 = vsel %vm1182_vm14, %v518_v14, %v522_v15  ;;  %992 = vmatprep.mubr.msk.bf16.mxu1 %vm560_vm8, %v937_v17  ;;  %1007 = vmatmul.mubr.msk.bf16.vlgmr.msra.gmra.mrb[0].mxu0 %vm370_vm1, %v954_v18 }
  0xc3   : > { %v537_v22 = vsel %vm1182_vm14, %v532_v20, %v536_v21 }
  0xc4   : > { %v938_v23 = vcombine.low %v523_v19, %v537_v22 }
  0xc6   : > { %993 = vmatmul.mubr.msk.bf16.vlgmr.msra.gmra.mrb[0].mxu1 %vm560_vm8, %v938_v23 }
 0x195   : > { %v1008_v24 = vpop.f32.mrb[0].mxu0 }
 0x196   : > { %v758_v25 = vpop.f32.mrb[1].mxu0 }
 0x197   : > { %v1009_v26 = vpop.f32.mrb[2].mxu0 }
 0x198   : > { %v761_v27 = vpop.f32.mrb[3].mxu0 }
 0x199   : > { %v994_v28 = vpop.f32.mrb[0].mxu1 }
 0x19a   : > { %v601_v29 = vpop.f32.mrb[1].mxu1  ;;  %v1010_v30 = vadd.f32 %v1008_v24, %v994_v28 }
 0x19b   : > { %v995_v32 = vpop.f32.mrb[2].mxu1  ;;  %v1011_v33 = vadd.f32 %v758_v25, %v601_v29 }
 0x19c   : > { %v604_v34 = vpop.f32.mrb[3].mxu1  ;;  %v1012_v35 = vadd.f32 %v1009_v26, %v995_v32  ;;  %v813_v39 = vmul.f32 %v1010_v30, %v1010_v30  ;;  %v966_v44 = vpack.c.bf16 %v1010_v30, %v1010_v30  ;;  %v801_v45 = vsel %vm560_vm8, %v1010_v30, 0.0 }
 0x19d   : > { %v964_v36 = vpack.c.bf16 %v1011_v33, %v1011_v33  ;;  %v811_v37 = vmul.f32 %v1011_v33, %v1011_v33  ;;  %v1013_v38 = vadd.f32 %v761_v27, %v604_v34  ;;  %v798_v40 = vsel %vm560_vm8, %v1011_v33, 0.0 }
 0x19e   : > { %v967_v48 = vpack.c.bf16 %v1012_v35, %v1012_v35  ;;  %v814_v49 = vmul.f32 %v1012_v35, %v1012_v35  ;;  %796 = vst.msk [vmem:[%s314_s13 + $0x8] sm:$0xf] %vm793_vm15, %v966_v44  ;;  %v818_v53 = vsel %vm560_vm8, %v813_v39, 0.0  ;;  %v803_v54 = vsel %vm560_vm8, %v1012_v35, 0.0 }
 0x19f   : > { %794 = vst.msk [vmem:[%s314_s13] sm:$0xf] %vm793_vm15, %v964_v36  ;;  %v965_v41 = vpack.c.bf16 %v1013_v38, %v1013_v38  ;;  %v799_v42 = vsel %vm560_vm8, %v1013_v38, 0.0  ;;  %v812_v43 = vmul.f32 %v1013_v38, %v1013_v38  ;;  %v815_v47 = vsel %vm560_vm8, %v811_v37, 0.0 }
 0x1a0   : > { %v800_v46 = vadd.f32 %v799_v42, %v798_v40  ;;  %797 = vst.msk [vmem:[%s314_s13 + $0xc] sm:$0xf] %vm793_vm15, %v967_v48  ;;  %v820_v57 = vsel %vm560_vm8, %v814_v49, 0.0 }
 0x1a1   : > { %795 = vst.msk [vmem:[%s314_s13 + $0x4] sm:$0xf] %vm793_vm15, %v965_v41  ;;  %v816_v50 = vsel %vm560_vm8, %v812_v43, 0.0 }
 0x1a2   : > { %v802_v51 = vadd.f32 %v801_v45, %v800_v46  ;;  %v817_v52 = vadd.f32 %v816_v50, %v815_v47 }
 0x1a4   : > { %v804_v55 = vadd.f32 %v803_v54, %v802_v51  ;;  %v819_v56 = vadd.f32 %v818_v53, %v817_v52 }
 0x1a6   : > { %v805_v58 = vrot.slane %v804_v55, 4  ;;  %v821_v59 = vadd.f32 %v820_v57, %v819_v56 }
 0x1a8   : > { %v806_v60 = vadd.f32 %v805_v58, %v804_v55  ;;  %v822_v61 = vrot.slane %v821_v59, 4 }
 0x1aa   : > { %v807_v62 = vrot.slane %v806_v60, 2  ;;  %v823_v31 = vadd.f32 %v822_v61, %v821_v59 }
 0x1ac   : > { %v808_v63 = vadd.f32 %v807_v62, %v806_v60  ;;  %v824_v0 = vrot.slane %v823_v31, 2 }
 0x1ae   : > { %v809_v1 = vrot.slane %v808_v63, 1  ;;  %v825_v2 = vadd.f32 %v824_v0, %v823_v31 }
 0x1b0   : > { %v826_v3 = vrot.slane %v825_v2, 1  ;;  %v810_v4 = vadd.f32 %v809_v1, %v808_v63 }
 0x1b2   : > { %v827_v5 = vadd.f32 %v826_v3, %v825_v2 }
 0x1b4   : > { %v829_v6 = vsel %vm441_vm2, %v810_v4, %v827_v5 }
 0x1b5   : > { %831 = vst.msk [vmem:[%s319_s17] sm:$0x3] %vm830_vm0, %v829_v6 }
 0x1b6 PF: > { %s19_s27 = sadd.s32 1, %s1041_s27  }
 0x1b7   : > { %p16_p5 = scmp.ge.s32.totalorder %s19_s27, 4  }
 0x1b9   :  { %18 = sbr.rel (!%p16_p5) target bundleno = 1 (0x1), region = 90 }

// kernel: forward.9
= control target key start
LH: loop header
LB: loop body
LE: loop exit
PB: predicated region body
PF: predicated region fallthrough
CT: control target
= control target key end

     0   :  { %s1190_s27 = smov 0   ;;  %s1330_s0 = inlined_call_operand.vmem [shape: f32[2,2,8], index: 0, kind: input, shape index: {}]   ;;  %s1331_s1 = inlined_call_operand.vmem [shape: f32[1,8], index: 1, kind: input, shape index: {}]   ;;  %s1332_s2 = inlined_call_operand.vmem [shape: f32[1,8], index: 2, kind: input, shape index: {}]   ;;  %s1333_s3 = inlined_call_operand.vmem [shape: bf16[8,16,16], index: 3, kind: input, shape index: {}]   ;;  %s1334_s4 = inlined_call_operand.vmem [shape: bf16[16,16], index: 4, kind: input, shape index: {}]   ;;  %s1335_s5 = inlined_call_operand.vmem [shape: bf16[16,16], index: 5, kind: input, shape index: {}]   ;;  %s1336_s6 = inlined_call_operand.vmem [shape: bf16[8,16], index: 6, kind: input, shape index: {}]   ;;  %s1337_s7 = inlined_call_operand.vmem [shape: bf16[8,16,16], index: 7, kind: output, shape index: {0}]   ;;  %s1338_s8 = inlined_call_operand.vmem [shape: f32[2,2,16], index: 8, kind: output, shape index: {1}]  }
   0x1 LB: > { %s1196_s28 = sadd.s32 4294967295, %s1141_s27   ;;  %p996_p0 = scmp.ge.s32.totalorder %s1141_s27, 1  ;;  %s1141_s27 = sphi %s1190_s27, %s19_s27  }
   0x2   : > { %p267_p1 = scmp.lt.s32.totalorder %s1141_s27, 3 }
   0x4   : > { %p268_p2 = pnand %p996_p0, %p267_p1 }
   0x5   : > { %v334_v0 = vld [vmem:[%s1330_s0] sm:$0x3] (!%p268_p2)  ;;  %v335_v1 = vld [vmem:[%s1330_s0 + $0x2] sm:$0x3] (!%p268_p2)  ;;  %vm336_vm0 = vcmask (!%p268_p2), 58368   ;;  %v354_v13 = vlaneseq (!%p268_p2)  ;;  %s1144_s17 = smov (!%p268_p2), 8  }
   0x6   : > { %271 = sbr.rel (%p268_p2) target bundleno = 445 (0x1bd), region = 48  ;;  %v337_v2 = vsel (!%p268_p2), %vm336_vm0, %v334_v0, 0.0  ;;  %v338_v3 = vsel (!%p268_p2), %vm336_vm0, %v335_v1, 0.0  ;;  %v1143_v11 = vmov (!%p268_p2), 1966171168   ;;  %v1209_v20 = vld [vmem:[%s1334_s4] sm:$0xff] (!%p268_p2)  }
   0x7   : > { %v339_v4 = vadd.f32 (!%p268_p2), %v338_v3, %v337_v2  ;;  %v352_v12 = vunpack.c.l.s4 (!%p268_p2), %v1143_v11  ;;  %v355_v15 = vshrl.u32 (!%p268_p2), %v354_v13, 7  ;;  %v347_v21 = vld [vmem:[%s1331_s1] sm:$0x1] (!%p268_p2)  ;;  %1082 = vmatprep.subr.bf16.mxu0 (!%p268_p2), %v1209_v20  ;;  %vm731_vm1 = vcmask (!%p268_p2), 1043456   ;;  %s997_s22 = sshll.u32 (!%p268_p2), %s1196_s28, 2  ;;  %p321_p4 = scmp.lt.s32.totalorder (!%p268_p2), %s1196_s28, 1 }
   0x8   : > { %1083 = vmatpush3.bf16.msra.mxu0 (!%p268_p2), %v1209_v20  ;;  %v368_v25 = vld [vmem:[%s1332_s2] sm:$0x1] (!%p268_p2)  ;;  %p308_p3 = scmp.lt.s32.totalorder (!%p268_p2), %s997_s22, 7  ;;  %vm379_vm2 = vcmask (!%p268_p2), 64512   ;;  %vm470_vm3 = vcmask (!%p268_p2), 1040384   ;;  %vm540_vm6 = vcmask (!%p268_p2), 130048  }
   0x9   : > { %v340_v5 = vmul.f32 (!%p268_p2), 0.00390625, %v339_v4  ;;  %v353_v14 = vunpack.c.0.s8 (!%p268_p2), %v352_v12  ;;  %v374_v23 = vsub.s32 (!%p268_p2), 0, %v355_v15  ;;  %v1132_v30 = vld [vmem:[%s1335_s5] sm:$0xff] (!%p268_p2)   ;;  %vm471_vm4 = vsmask.f32 (!%p268_p2), 256 }
   0xa   : > { %1072 = vmatprep.subr.bf16.mxu1 (!%p268_p2), %v1132_v30  ;;  %v718_v31 = vld [vmem:[%s1336_s6] sm:$0xf] (!%p268_p2)  ;;  %vm1240_vm5 = vmand (!%p268_p2), %vm470_vm3, %vm471_vm4  ;;  %vm705_vm7 = vcmask (!%p268_p2), 1046528   ;;  %vm483_vm8 = vsmask.f32 (!%p268_p2), 7424  ;;  %vm840_vm9 = vcmask (!%p268_p2), 125952  }
   0xb   : > { %v341_v6 = vmul.f32 (!%p268_p2), %v340_v5, %v340_v5  ;;  %v356_v16 = vsub.s32 (!%p268_p2), %v353_v14, %v355_v15  ;;  %1073 = vmatpush3.bf16.msra.mxu1 (!%p268_p2), %v1132_v30  ;;  %1120 = vmatprep.subr.msk.bf16.mxu0 (!%p268_p2), %vm731_vm1, %v718_v31  ;;  %v1226_v32 = vsel (!%p268_p2), %vm731_vm1, %v718_v31, 0  ;;  %vm901_vm10 = vcmask (!%p268_p2), 123904  }
   0xc   : > { %1102 = vmatprep.subr.bf16.mxu1 (!%p268_p2), %v1209_v20 }
   0xd   : > { %v343_v7 = vrot.slane %v341_v6, 7  ;;  %s1342_s22 = smov (!%p308_p3, %s997_s22), 7  ;;  %s1344_s28 = smov (!%p321_p4, %s1196_s28), 1 }
   0xe   : > { %s1028_s23 = sshll.u32 %s1342_s22, 3  ;;  %s1003_s10 = sshll.u32 %s1344_s28, 1 }
   0xf   : > { %v345_v8 = vsub.f32 %v340_v5, %v343_v7  ;;  %s312_s26 = scalar_lea.vmem %s1333_s3, %s1028_s23  ;;  %s1287_s9 = scalar_lea.vmem %s1337_s7, %s1028_s23 }
  0x10   : > { %v1039_v33 = vld [vmem:[%s312_s26] sm:$0xff]   ;;  %v1054_v34 = vld [vmem:[%s312_s26 + $0x8] sm:$0xff]   ;;  %v1055_v36 = vld [vmem:[%s312_s26 + $0x10] sm:$0xff]   ;;  %s324_s13 = scalar_lea.vmem %s1338_s8, %s1003_s10 }
  0x11   : > { %v346_v9 = vmax.f32 %v345_v8, 0.0  ;;  %v1056_v37 = vld [vmem:[%s312_s26 + $0x18] sm:$0xff]   ;;  %v1040_v39 = vunpack.c.l.bf16 %v1039_v33  ;;  %v1041_v41 = vunpack.c.h.bf16 %v1039_v33  ;;  %v1044_v42 = vunpack.c.l.bf16 %v1054_v34 }
  0x12   : > { %v1045_v43 = vunpack.c.h.bf16 %v1054_v34  ;;  %v1048_v44 = vunpack.c.l.bf16 %v1055_v36  ;;  %v1049_v45 = vunpack.c.h.bf16 %v1055_v36  ;;  %v1052_v46 = vunpack.c.l.bf16 %v1056_v37 }
  0x13   : > { %v348_v10 = vadd.f32 1e-05, %v346_v9  ;;  %v1053_v47 = vunpack.c.h.bf16 %v1056_v37 }
  0x15   : > { %1133 = vrsqrt.f32 %v348_v10 }
  0x1f   : > { %v1134_v17 = vpop.eup %1133 }
  0x20   : > { %v357_v18 = vrot.slane %v1134_v17, %v356_v16 }
  0x22   : > { %v358_v19 = vcombine.high %v357_v18, %v357_v18 }
  0x24   : > { %v365_v22 = vrot.slane %v358_v19, %v356_v16 }
  0x26   : > { %v367_v24 = vmul.f32 %v365_v22, %v347_v21 }
  0x28   : > { %v375_v26 = vrot.slane %v367_v24, %v374_v23  ;;  %v369_v27 = vmul.f32 %v367_v24, %v340_v5 }
  0x2a   : > { %376 = vrot.lane.b32.xlu0 %v375_v26, %s1144_s17  ;;  %v370_v28 = vsub.f32 %v368_v25, %v369_v27 }
  0x2c   : > { %v385_v29 = vrot.slane %v370_v28, %v374_v23 }
  0x2e   : > { %386 = vrot.lane.b32.xlu0 %v385_v29, %s1144_s17 }
  0x9c   : > { %v377_v35 = vpop.permute.xlu0 %376 }
  0x9d   : > { %v380_v38 = vsel %vm379_vm2, %v367_v24, %v377_v35 }
  0x9e   : > { %v401_v40 = vrot.slane %v380_v38, %v374_v23 }
  0xa0   : > { %v387_v48 = vpop.permute.xlu0 %386  ;;  %v402_v50 = vmul.f32 %v1040_v39, %v401_v40  ;;  %v403_v52 = vmul.f32 %v1041_v41, %v401_v40  ;;  %v404_v53 = vmul.f32 %v1044_v42, %v401_v40  ;;  %v405_v54 = vmul.f32 %v1045_v43, %v401_v40 }
  0xa1   : > { %v389_v49 = vsel %vm379_vm2, %v370_v28, %v387_v48  ;;  %v406_v55 = vmul.f32 %v1048_v44, %v401_v40  ;;  %v407_v56 = vmul.f32 %v1049_v45, %v401_v40  ;;  %v408_v57 = vmul.f32 %v1052_v46, %v401_v40 }
  0xa2   : > { %v413_v51 = vrot.slane %v389_v49, %v374_v23  ;;  %v409_v58 = vmul.f32 %v1053_v47, %v401_v40 }
  0xa4   : > { %v414_v59 = vadd.f32 %v413_v51, %v402_v50  ;;  %v415_v60 = vadd.f32 %v413_v51, %v403_v52  ;;  %v416_v61 = vadd.f32 %v413_v51, %v404_v53  ;;  %v417_v62 = vadd.f32 %v413_v51, %v405_v54 }
  0xa5   : > { %v418_v63 = vadd.f32 %v413_v51, %v406_v55  ;;  %v419_v0 = vadd.f32 %v413_v51, %v407_v56  ;;  %v420_v1 = vadd.f32 %v413_v51, %v408_v57  ;;  %v421_v2 = vadd.f32 %v413_v51, %v409_v58 }
  0xa6   : > { %v422_v3 = vmax.f32 %v414_v59, 0.0  ;;  %v423_v4 = vmax.f32 %v415_v60, 0.0  ;;  %v424_v5 = vmax.f32 %v416_v61, 0.0  ;;  %v425_v6 = vmax.f32 %v417_v62, 0.0 }
  0xa7   : > { %v426_v7 = vmax.f32 %v418_v63, 0.0  ;;  %v427_v8 = vmax.f32 %v419_v0, 0.0  ;;  %v428_v9 = vmax.f32 %v420_v1, 0.0  ;;  %v429_v10 = vmax.f32 %v421_v2, 0.0 }
  0xa8   : > { %v430_v11 = vpack.c.bf16 %v423_v4, %v422_v3  ;;  %v431_v12 = vpack.c.bf16 %v425_v6, %v424_v5 }
  0xa9   : > { %v432_v13 = vpack.c.bf16 %v427_v8, %v426_v7  ;;  %v433_v14 = vpack.c.bf16 %v429_v10, %v428_v9 }
  0xaa   : > { %v435_v15 = vshrl.u32 %v430_v11, 16  ;;  %v442_v16 = vshrl.u32 %v431_v12, 16  ;;  %v438_v21 = vshll.u32 %v430_v11, 16  ;;  %v445_v23 = vshll.u32 %v431_v12, 16 }
  0xab   : > { %v449_v18 = vshrl.u32 %v432_v13, 16  ;;  %v452_v25 = vshll.u32 %v432_v13, 16  ;;  %v456_v26 = vshrl.u32 %v433_v14, 16  ;;  %v459_v51 = vshll.u32 %v433_v14, 16 }
  0xac   : > { %v437_v19 = vrot.slane %v435_v15, 7  ;;  %v444_v22 = vrot.slane %v442_v16, 7 }
  0xad   : > { %v451_v24 = vrot.slane %v449_v18, 7  ;;  %v458_v43 = vrot.slane %v456_v26, 7 }
  0xae   : > { %v440_v27 = vor.u32 %v438_v21, %v437_v19  ;;  %v447_v28 = vor.u32 %v445_v23, %v444_v22  ;;  %v477_v29 = vsel %vm1240_vm5, %v437_v19, 0  ;;  %v478_v30 = vsel %vm1240_vm5, %v444_v22, 0 }
  0xaf   : > { %v454_v31 = vor.u32 %v452_v25, %v451_v24  ;;  %v707_v35 = vrot.slane %v477_v29, 1  ;;  %v479_v36 = vsel %vm1240_vm5, %v451_v24, 0  ;;  %v492_v39 = vshll.u32 %v477_v29, 16 }
  0xb0   : > { %v473_v33 = vsel %vm1240_vm5, 0, %v440_v27  ;;  %v474_v34 = vsel %vm1240_vm5, 0, %v447_v28  ;;  %v504_v40 = vshll.u32 %v478_v30, 16  ;;  %v516_v47 = vshll.u32 %v479_v36, 16 }
  0xb1   : > { %1084 = vmatprep.mubr.msk.bf16.mxu0 %vm540_vm6, %v473_v33  ;;  %v706_v37 = vrot.slane %v473_v33, 1  ;;  %v499_v38 = vshll.u32 %v474_v34, 16  ;;  %v497_v41 = vshrl.u32 %v474_v34, 16  ;;  %v487_v42 = vshll.u32 %v473_v33, 16 }
  0xb2   : > { %1085 = vmatmul.mubr.msk.bf16.vlgmr.msra.gmra.mrb[0].mxu0 %vm540_vm6, %v474_v34  ;;  %v475_v46 = vsel %vm1240_vm5, 0, %v454_v31  ;;  %v485_v48 = vshrl.u32 %v473_v33, 16  ;;  %v494_v52 = vrot.slane %v492_v39, 1  ;;  %v506_v54 = vrot.slane %v504_v40, 1 }
  0xb3   : > { %v501_v44 = vrot.slane %v499_v38, 1  ;;  %v708_v45 = vsel %vm705_vm7, %v706_v37, %v707_v35  ;;  %1093 = vmatpush3.bf16.msra.mxu0 %v1226_v32  ;;  %v489_v49 = vrot.slane %v487_v42, 1  ;;  %v511_v50 = vshll.u32 %v475_v46, 16 }
  0xb4   : > { %1094 = vmatprep.mubr.msk.bf16.mxu0 %vm379_vm2, %v708_v45  ;;  %v509_v56 = vshrl.u32 %v475_v46, 16  ;;  %v461_v58 = vor.u32 %v459_v51, %v458_v43  ;;  %v518_v32 = vrot.slane %v516_v47, 1  ;;  %v480_v63 = vsel %vm1240_vm5, %v458_v43, 0 }
  0xb5   : > { %v502_v53 = vor.u32 %v501_v44, %v497_v41  ;;  %v490_v55 = vor.u32 %v489_v49, %v485_v48  ;;  %v513_v57 = vrot.slane %v511_v50, 1  ;;  %v709_v0 = vrot.slane %v474_v34, 1 }
  0xb6   : > { %v476_v62 = vsel %vm1240_vm5, 0, %v461_v58  ;;  %v712_v3 = vrot.slane %v475_v46, 1  ;;  %v710_v4 = vrot.slane %v478_v30, 1  ;;  %v528_v7 = vshll.u32 %v480_v63, 16 }
  0xb7   : > { %v507_v59 = vsel %vm483_vm8, %v502_v53, %v506_v54  ;;  %v495_v60 = vsel %vm483_vm8, %v490_v55, %v494_v52  ;;  %v514_v61 = vor.u32 %v513_v57, %v509_v56  ;;  %v523_v1 = vshll.u32 %v476_v62, 16 }
  0xb8   : > { %1074 = vmatprep.mubr.msk.bf16.mxu1 %vm540_vm6, %v495_v60  ;;  %v521_v5 = vshrl.u32 %v476_v62, 16  ;;  %v713_v8 = vrot.slane %v479_v36, 1  ;;  %v711_v9 = vsel %vm705_vm7, %v709_v0, %v710_v4  ;;  %v530_v12 = vrot.slane %v528_v7, 1 }
  0xb9   : > { %1075 = vmatmul.mubr.msk.bf16.vlgmr.msra.gmra.mrb[0].mxu1 %vm540_vm6, %v507_v59  ;;  %v519_v2 = vsel %vm483_vm8, %v514_v61, %v518_v32  ;;  %v525_v6 = vrot.slane %v523_v1, 1  ;;  %v716_v14 = vrot.slane %v480_v63, 1 }
  0xba   : > { %1103 = vmatpush3.bf16.msra.mxu1 %v1209_v20  ;;  %1078 = vmatprep.mubr.msk.bf16.mxu1 %vm540_vm6, %v519_v2  ;;  %v714_v11 = vsel %vm705_vm7, %v712_v3, %v713_v8  ;;  %v715_v20 = vrot.slane %v476_v62, 1 }
  0xbb   : > { %v526_v10 = vor.u32 %v525_v6, %v521_v5 }
  0xbc   : > { %v717_v15 = vsel %vm705_vm7, %v715_v20, %v716_v14 }
  0xbd   : > { %v531_v13 = vsel %vm483_vm8, %v526_v10, %v530_v12 }
  0xbe   : > { %1095 = vmatmul.mubr.msk.bf16.vlgmr.msra.gmra.mrb[0].mxu0 %vm379_vm2, %v711_v9 }
  0xbf   : > { %1098 = vmatprep.mubr.msk.bf16.mxu0 %vm379_vm2, %v714_v11 }
  0xc1   : > { %1079 = vmatmul.mubr.msk.bf16.gmra.mrb[4].mxu1 %vm540_vm6, %v531_v13 }
  0xc2   : > { %1088 = vmatprep.mubr.msk.bf16.mxu1 %vm540_vm6, %v475_v46 }
  0xc6   : > { %1099 = vmatmul.mubr.msk.bf16.gmra.mrb[4].mxu0 %vm379_vm2, %v717_v15 }
  0xcd   : > { %1089 = vmatmul.mubr.msk.bf16.vlgmr.msra.gmra.mrb[4].mxu1 %vm540_vm6, %v476_v62 }
 0x18c   : > { %v1076_v16 = vpop.f32.mrb[0].mxu1 }
 0x18d   : > { %v587_v17 = vpop.f32.mrb[1].mxu1 }
 0x18e   : > { %v1077_v18 = vpop.f32.mrb[2].mxu1 }
 0x18f   : > { %v590_v19 = vpop.f32.mrb[3].mxu1 }
 0x191   : > { %v1096_v21 = vpop.f32.mrb[0].mxu0 }
 0x192   : > { %v1104_v22 = vadd.f32 %v1096_v21, %v1076_v16  ;;  %v769_v23 = vpop.f32.mrb[1].mxu0 }
 0x193   : > { %v1105_v24 = vadd.f32 %v769_v23, %v587_v17  ;;  %v1097_v25 = vpop.f32.mrb[2].mxu0 }
 0x194   : > { %v1106_v26 = vadd.f32 %v1097_v25, %v1077_v18  ;;  %v772_v27 = vpop.f32.mrb[3].mxu0  ;;  %v1032_v31 = vpack.c.bf16 %v1104_v22, %v1104_v22  ;;  %v872_v33 = vmul.f32 %v1104_v22, %v1104_v22  ;;  %v852_v40 = vsel %vm540_vm6, %v1104_v22, 0.0 }
 0x195   : > { %v1030_v28 = vpack.c.bf16 %v1105_v24, %v1105_v24  ;;  %v870_v29 = vmul.f32 %v1105_v24, %v1105_v24  ;;  %v1107_v30 = vadd.f32 %v772_v27, %v590_v19  ;;  %v849_v34 = vsel %vm540_vm6, %v1105_v24, 0.0 }
 0x196   : > { %843 = vst.msk [vmem:[%s1287_s9 + $0x8] sm:$0xf] %vm840_vm9, %v1032_v31  ;;  %v1033_v38 = vpack.c.bf16 %v1106_v26, %v1106_v26  ;;  %v873_v42 = vmul.f32 %v1106_v26, %v1106_v26  ;;  %v881_v48 = vsel %vm540_vm6, %v872_v33, 0.0  ;;  %v854_v49 = vsel %vm540_vm6, %v1106_v26, 0.0 }
 0x197   : > { %841 = vst.msk [vmem:[%s1287_s9] sm:$0xf] %vm840_vm9, %v1030_v28  ;;  %v1031_v35 = vpack.c.bf16 %v1107_v30, %v1107_v30  ;;  %v850_v36 = vsel %vm540_vm6, %v1107_v30, 0.0  ;;  %v871_v37 = vmul.f32 %v1107_v30, %v1107_v30  ;;  %v878_v41 = vsel %vm540_vm6, %v870_v29, 0.0 }
 0x198   : > { %v851_v39 = vadd.f32 %v850_v36, %v849_v34  ;;  %844 = vst.msk [vmem:[%s1287_s9 + $0xc] sm:$0xf] %vm840_vm9, %v1033_v38  ;;  %v883_v54 = vsel %vm540_vm6, %v873_v42, 0.0 }
 0x199   : > { %842 = vst.msk [vmem:[%s1287_s9 + $0x4] sm:$0xf] %vm840_vm9, %v1031_v35  ;;  %v879_v43 = vsel %vm540_vm6, %v871_v37, 0.0  ;;  %v1100_v44 = vpop.f32.mrb[4].mxu0 }
 0x19a   : > { %v853_v45 = vadd.f32 %v852_v40, %v851_v39  ;;  %v880_v46 = vadd.f32 %v879_v43, %v878_v41  ;;  %v785_v47 = vpop.f32.mrb[5].mxu0 }
 0x19b   : > { %v1101_v50 = vpop.f32.mrb[6].mxu0 }
 0x19c   : > { %v882_v51 = vadd.f32 %v881_v48, %v880_v46  ;;  %v788_v52 = vpop.f32.mrb[7].mxu0  ;;  %v855_v53 = vadd.f32 %v854_v49, %v853_v45 }
 0x19e   : > { %v884_v55 = vadd.f32 %v883_v54, %v882_v51 }
 0x1a0   : > { %v1090_v56 = vpop.f32.mrb[4].mxu1 }
 0x1a1   : > { %v1108_v57 = vadd.f32 %v1100_v44, %v1090_v56  ;;  %v682_v58 = vpop.f32.mrb[5].mxu1 }
 0x1a2   : > { %v1109_v59 = vadd.f32 %v785_v47, %v682_v58  ;;  %v1091_v32 = vpop.f32.mrb[6].mxu1 }
 0x1a3   : > { %v1110_v60 = vadd.f32 %v1101_v50, %v1091_v32  ;;  %v685_v61 = vpop.f32.mrb[7].mxu1  ;;  %v1036_v2 = vpack.c.bf16 %v1108_v57, %v1108_v57  ;;  %v876_v4 = vmul.f32 %v1108_v57, %v1108_v57  ;;  %v860_v12 = vsel %vm540_vm6, %v1108_v57, 0.0 }
 0x1a4   : > { %v1034_v62 = vpack.c.bf16 %v1109_v59, %v1109_v59  ;;  %v856_v63 = vsel %vm540_vm6, %v1109_v59, 0.0  ;;  %v874_v0 = vmul.f32 %v1109_v59, %v1109_v59  ;;  %v1111_v1 = vadd.f32 %v788_v52, %v685_v61 }
 0x1a5   : > { %v857_v3 = vadd.f32 %v856_v63, %v855_v53  ;;  %847 = vst.msk [vmem:[%s1287_s9 + $0x18] sm:$0xf] %vm840_vm9, %v1036_v2  ;;  %v1037_v9 = vpack.c.bf16 %v1110_v60, %v1110_v60  ;;  %v877_v13 = vmul.f32 %v1110_v60, %v1110_v60  ;;  %v862_v15 = vsel %vm540_vm6, %v1110_v60, 0.0 }
 0x1a6   : > { %845 = vst.msk [vmem:[%s1287_s9 + $0x10] sm:$0xf] %vm840_vm9, %v1034_v62  ;;  %v885_v5 = vsel %vm540_vm6, %v874_v0, 0.0  ;;  %v1035_v6 = vpack.c.bf16 %v1111_v1, %v1111_v1  ;;  %v858_v7 = vsel %vm540_vm6, %v1111_v1, 0.0  ;;  %v875_v11 = vmul.f32 %v1111_v1, %v1111_v1 }
 0x1a7   : > { %v886_v8 = vadd.f32 %v885_v5, %v884_v55  ;;  %v859_v10 = vadd.f32 %v858_v7, %v857_v3  ;;  %848 = vst.msk [vmem:[%s1287_s9 + $0x1c] sm:$0xf] %vm840_vm9, %v1037_v9  ;;  %v889_v17 = vsel %vm540_vm6, %v876_v4, 0.0  ;;  %v891_v21 = vsel %vm540_vm6, %v877_v13, 0.0 }
 0x1a8   : > { %846 = vst.msk [vmem:[%s1287_s9 + $0x14] sm:$0xf] %vm840_vm9, %v1035_v6  ;;  %v887_v14 = vsel %vm540_vm6, %v875_v11, 0.0 }
 0x1a9   : > { %v861_v20 = vadd.f32 %v860_v12, %v859_v10  ;;  %v888_v16 = vadd.f32 %v887_v14, %v886_v8 }
 0x1ab   : > { %v863_v18 = vadd.f32 %v862_v15, %v861_v20  ;;  %v890_v19 = vadd.f32 %v889_v17, %v888_v16 }
 0x1ad   : > { %v864_v22 = vrot.slane %v863_v18, 4  ;;  %v892_v23 = vadd.f32 %v891_v21, %v890_v19 }
 0x1af   : > { %v865_v24 = vadd.f32 %v864_v22, %v863_v18  ;;  %v893_v25 = vrot.slane %v892_v23, 4 }
 0x1b1   : > { %v866_v26 = vrot.slane %v865_v24, 2  ;;  %v894_v27 = vadd.f32 %v893_v25, %v892_v23 }
 0x1b3   : > { %v867_v28 = vadd.f32 %v866_v26, %v865_v24  ;;  %v895_v29 = vrot.slane %v894_v27, 2 }
 0x1b5   : > { %v868_v30 = vrot.slane %v867_v28, 1  ;;  %v896_v31 = vadd.f32 %v895_v29, %v894_v27 }
 0x1b7   : > { %v897_v33 = vrot.slane %v896_v31, 1  ;;  %v869_v34 = vadd.f32 %v868_v30, %v867_v28 }
 0x1b9   : > { %v898_v35 = vadd.f32 %v897_v33, %v896_v31 }
 0x1bb   : > { %v900_v36 = vsel %vm470_vm3, %v869_v34, %v898_v35 }
 0x1bc   : > { %902 = vst.msk [vmem:[%s324_s13] sm:$0x3] %vm901_vm10, %v900_v36 }
 0x1bd PF: > { %s19_s27 = sadd.s32 1, %s1141_s27  }
 0x1be   : > { %p16_p5 = scmp.ge.s32.totalorder %s19_s27, 4  }
 0x1c0   :  { %18 = sbr.rel (!%p16_p5) target bundleno = 1 (0x1), region = 90 }

// kernel: forward.11
= control target key start
LH: loop header
LB: loop body
LE: loop exit
PB: predicated region body
PF: predicated region fallthrough
CT: control target
= control target key end

     0   :  { %vm27_vm0 = vcmask 254976   ;;  %v359_v18 = vmov 1966171168   ;;  %v45_v20 = vlaneseq  ;;  %s360_s10 = smov 32   ;;  %s361_s11 = smov 96   ;;  %vm76_vm1 = vcmask 261120   ;;  %s467_s0 = inlined_call_operand.vmem [shape: f32[2,2,32], index: 0, kind: input, shape index: {}]   ;;  %s468_s4 = inlined_call_operand.vmem [shape: bf16[256,16], index: 4, kind: input, shape index: {}]   ;;  %s469_s1 = inlined_call_operand.vmem [shape: f32[1,32], index: 1, kind: input, shape index: {}]   ;;  %s470_s2 = inlined_call_operand.vmem [shape: f32[1,32], index: 2, kind: input, shape index: {}]   ;;  %s471_s3 = inlined_call_operand.vmem [shape: bf16[8,256], index: 3, kind: input, shape index: {}]   ;;  %s472_s5 = inlined_call_operand.vmem [shape: f32[1,16], index: 5, kind: input, shape index: {}]   ;;  %s473_s6 = inlined_call_operand.vmem [shape: f32[8,16], index: 6, kind: output, shape index: {}]  }
   0x1   :  { %v25_v0 = vld [vmem:[%s467_s0] sm:$0x3]  ;;  %v26_v1 = vld [vmem:[%s467_s0 + $0x2] sm:$0x3]  ;;  %v343_v8 = vld [vmem:[%s468_s4 + $0x48] sm:$0xff]   ;;  %v43_v19 = vunpack.c.l.s4 %v359_v18  ;;  %vm78_vm2 = vcmask 523264  }
   0x2   :  { %v28_v2 = vsel %vm27_vm0, %v25_v0, 0.0  ;;  %v29_v3 = vsel %vm27_vm0, %v26_v1, 0.0  ;;  %v341_v5 = vld [vmem:[%s468_s4 + $0x40] sm:$0xff]   ;;  %v344_v9 = vld [vmem:[%s468_s4 + $0x8] sm:$0xff]   ;;  %v345_v11 = vld [vmem:[%s468_s4 + $0x50] sm:$0xff]   ;;  %v46_v22 = vshrl.u32 %v45_v20, 7 }
   0x3   :  { %v30_v4 = vadd.f32 %v29_v3, %v28_v2  ;;  %v342_v6 = vld [vmem:[%s468_s4] sm:$0xff]   ;;  %315 = vmatprep.subr.bf16.mxu0 %v341_v5  ;;  %v346_v12 = vld [vmem:[%s468_s4 + $0x10] sm:$0xff]   ;;  %v347_v14 = vld [vmem:[%s468_s4 + $0x58] sm:$0xff]   ;;  %v44_v21 = vunpack.c.0.s8 %v43_v19  ;;  %vm80_vm3 = vcmask 785408   ;;  %vm292_vm4 = vcmask 130048  }
   0x4   :  { %316 = vmatpush3.bf16.msra.mxu0 %v342_v6  ;;  %v348_v23 = vld [vmem:[%s468_s4 + $0x18] sm:$0xff]   ;;  %v349_v25 = vld [vmem:[%s468_s4 + $0x60] sm:$0xff]   ;;  %v351_v30 = vld [vmem:[%s468_s4 + $0x68] sm:$0xff]   ;;  %v65_v34 = vsub.s32 0, %v46_v22 }
   0x5   :  { %v31_v7 = vmul.f32 0.015625, %v30_v4  ;;  %317 = vmatprep.subr.bf16.mxu0 %v343_v8  ;;  %v47_v24 = vsub.s32 %v44_v21, %v46_v22  ;;  %v350_v27 = vld [vmem:[%s468_s4 + $0x20] sm:$0xff]   ;;  %v352_v32 = vld [vmem:[%s468_s4 + $0x28] sm:$0xff]   ;;  %v353_v36 = vld [vmem:[%s468_s4 + $0x70] sm:$0xff]  }
   0x6   :  { %v38_v31 = vld [vmem:[%s469_s1] sm:$0x1]  ;;  %v354_v38 = vld [vmem:[%s468_s4 + $0x30] sm:$0xff]   ;;  %v355_v41 = vld [vmem:[%s468_s4 + $0x78] sm:$0xff]  }
   0x7   :  { %v32_v10 = vmul.f32 %v31_v7, %v31_v7  ;;  %v59_v37 = vld [vmem:[%s470_s2] sm:$0x1]  ;;  %v356_v42 = vld [vmem:[%s468_s4 + $0x38] sm:$0xff]   ;;  %s362_s2 = smov 64  }
   0x8   :  { %318 = vmatpush3.bf16.msra.mxu0 %v344_v9  ;;  %v24_v50 = vld [vmem:[%s471_s3] sm:$0xff] }
   0x9   :  { %v34_v13 = vrot.slane %v32_v10, 7  ;;  %319 = vmatprep.subr.bf16.mxu0 %v345_v11  ;;  %v99_v54 = vunpack.c.l.bf16 %v24_v50  ;;  %v100_v55 = vunpack.c.h.bf16 %v24_v50 }
   0xb   :  { %v36_v15 = vsub.f32 %v31_v7, %v34_v13 }
   0xc   :  { %320 = vmatpush3.bf16.msra.mxu0 %v346_v12 }
   0xd   :  { %v37_v16 = vmax.f32 %v36_v15, 0.0  ;;  %321 = vmatprep.subr.bf16.mxu0 %v347_v14 }
   0xf   :  { %v39_v17 = vadd.f32 1e-05, %v37_v16 }
  0x10   :  { %322 = vmatpush3.bf16.msra.mxu0 %v348_v23 }
  0x11   :  { %357 = vrsqrt.f32 %v39_v17  ;;  %323 = vmatprep.subr.bf16.mxu0 %v349_v25 }
  0x14   :  { %324 = vmatpush3.bf16.msra.mxu0 %v350_v27 }
  0x15   :  { %325 = vmatprep.subr.bf16.mxu0 %v351_v30 }
  0x18   :  { %326 = vmatpush3.bf16.msra.mxu0 %v352_v32 }
  0x19   :  { %327 = vmatprep.subr.bf16.mxu0 %v353_v36 }
  0x1b   :  { %v358_v26 = vpop.eup %357 }
  0x1c   :  { %v48_v28 = vrot.slane %v358_v26, %v47_v24  ;;  %328 = vmatpush3.bf16.msra.mxu0 %v354_v38 }
  0x1d   :  { %329 = vmatprep.subr.bf16.mxu0 %v355_v41 }
  0x1e   :  { %v49_v29 = vcombine.high %v48_v28, %v48_v28 }
  0x20   :  { %v56_v33 = vrot.slane %v49_v29, %v47_v24  ;;  %330 = vmatpush3.bf16.msra.mxu0 %v356_v42 }
  0x22   :  { %v58_v35 = vmul.f32 %v56_v33, %v38_v31 }
  0x24   :  { %v66_v39 = vrot.slane %v58_v35, %v65_v34  ;;  %v60_v40 = vmul.f32 %v58_v35, %v31_v7  ;;  %v298_v7 = vld [vmem:[%s472_s5] ss:$0 sm:$0xff] }
  0x26   :  { %67 = vrot.lane.b32.xlu0 %v66_v39, %s360_s10  ;;  %73 = vrot.lane.b32.xlu1 %v66_v39, %s361_s11  ;;  %v61_v43 = vsub.f32 %v59_v37, %v60_v40 }
  0x28   :  { %v86_v44 = vrot.slane %v61_v43, %v65_v34 }
  0x2a   :  { %70 = vrot.lane.b32.xlu0 %v66_v39, %s362_s2  ;;  %87 = vrot.lane.b32.xlu1 %v86_v44, %s360_s10 }
  0x2e   :  { %90 = vrot.lane.b32.xlu0 %v86_v44, %s362_s2  ;;  %93 = vrot.lane.b32.xlu1 %v86_v44, %s361_s11 }
  0x98   :  { %v68_v45 = vpop.permute.xlu0 %67  ;;  %v74_v46 = vpop.permute.xlu1 %73 }
  0x99   :  { %v77_v47 = vsel %vm76_vm1, %v58_v35, %v68_v45 }
  0x9c   :  { %v71_v48 = vpop.permute.xlu0 %70  ;;  %v88_v49 = vpop.permute.xlu1 %87 }
  0x9d   :  { %v79_v51 = vsel %vm78_vm2, %v77_v47, %v71_v48  ;;  %v96_v56 = vsel %vm76_vm1, %v61_v43, %v88_v49 }
  0x9e   :  { %v81_v52 = vsel %vm80_vm3, %v79_v51, %v74_v46 }
  0x9f   :  { %v104_v53 = vrot.slane %v81_v52, %v65_v34 }
  0xa0   :  { %v91_v57 = vpop.permute.xlu0 %90  ;;  %v94_v58 = vpop.permute.xlu1 %93 }
  0xa1   :  { %v97_v59 = vsel %vm78_vm2, %v96_v56, %v91_v57  ;;  %v105_v61 = vmul.f32 %v104_v53, %v99_v54  ;;  %v106_v63 = vmul.f32 %v104_v53, %v100_v55 }
  0xa2   :  { %v98_v60 = vsel %vm80_vm3, %v97_v59, %v94_v58 }
  0xa3   :  { %v110_v62 = vrot.slane %v98_v60, %v65_v34 }
  0xa5   :  { %v111_v0 = vadd.f32 %v110_v62, %v105_v61  ;;  %v112_v1 = vadd.f32 %v110_v62, %v106_v63 }
  0xa7   :  { %v114_v2 = vmax.f32 %v112_v1, 0.0  ;;  %v113_v3 = vmax.f32 %v111_v0, 0.0 }
  0xa9   :  { %v116_v4 = vpack.c.bf16 %v114_v2, %v114_v2  ;;  %v115_v5 = vpack.c.bf16 %v113_v3, %v113_v3 }
  0xab   :  { %284 = vmatprep.mubr.bf16.mxu0 %v116_v4 }
  0xac   :  { %285 = vmatmul.mubr.bf16.vlgmr.msra.gmra.mrb[0].mxu0 %v115_v5 }
 0x17f   :  { %v331_v6 = vpop.f32.mrb[0].mxu0 }
 0x180   :  { %v332_v8 = vpop.f32.mrb[1].mxu0 }
 0x181   :  { %v333_v9 = vadd.f32 %v332_v8, %v331_v6  ;;  %v334_v10 = vpop.f32.mrb[2].mxu0 }
 0x182   :  { %v335_v11 = vpop.f32.mrb[3].mxu0 }
 0x183   :  { %v287_v12 = vadd.f32 %v333_v9, %v298_v7 }
 0x185   :  { %293 = vst.msk [vmem:[%s473_s6] sm:$0xff] %vm292_vm4, %v287_v12 }

// kernel: forward.12
= control target key start
LH: loop header
LB: loop body
LE: loop exit
PB: predicated region body
PF: predicated region fallthrough
CT: control target
= control target key end

     0   :  { %v108_v1 = vmov 0   ;;  %vm41_vm0 = vcmask 130048   ;;  %v21_v5 = vlaneseq  ;;  %s144_s1 = inlined_call_operand.vmem [shape: bf16[16,256], index: 1, kind: input, shape index: {}]   ;;  %s145_s0 = inlined_call_operand.vmem [shape: f32[8,16], index: 0, kind: input, shape index: {}]   ;;  %s146_s2 = inlined_call_operand.vmem [shape: f32[1,256], index: 2, kind: input, shape index: {}]   ;;  %s147_s3 = inlined_call_operand.vmem [shape: bf16[8,256], index: 3, kind: output, shape index: {}]  }
   0x1   :  { %v105_v0 = vld [vmem:[%s144_s1 + $0x4] ss:$8 sps:$4 sm:$0xff]   ;;  %77 = vmatprep.mubr.bf16.mxu0 %v108_v1  ;;  %v107_v2 = vld [vmem:[%s144_s1] ss:$8 sps:$4 sm:$0xff]  }
   0x2   :  { %v15_v3 = vld [vmem:[%s145_s0] sm:$0xff]  ;;  %45 = vmatprep.subr.bf16.mxu0 %v105_v0  ;;  %v22_v6 = vshrl.u32 %v21_v5, 7 }
   0x3   :  { %v16_v4 = vpack.c.bf16 %v15_v3, %v15_v3  ;;  %46 = vmatpush1.bf16.msra.mxu0 %v107_v2  ;;  %v19_v8 = vld [vmem:[%s146_s2] sm:$0x3] }
   0x4   :  { %v23_v7 = vsub.s32 0, %v22_v6  ;;  %v27_v9 = vsub.s32 1, %v22_v6 }
   0x6   :  { %101 = vmatmul.mubr.msk.bf16.vlgmr.msra.gmra.mrb[0].mxu0 %vm41_vm0, %v16_v4  ;;  %v24_v10 = vrot.slane %v19_v8, %v23_v7  ;;  %v28_v11 = vrot.slane %v19_v8, %v27_v9 }
  0xd9   :  { %v79_v12 = vpop.f32.mrb[0].mxu0 }
  0xda   :  { %v80_v13 = vadd.f32 %v79_v12, %v24_v10  ;;  %v81_v14 = vpop.f32.mrb[1].mxu0 }
  0xdb   :  { %v82_v15 = vadd.f32 %v81_v14, %v28_v11  ;;  %v83_v16 = vpop.f32.mrb[2].mxu0 }
  0xdc   :  { %v84_v17 = vpop.f32.mrb[3].mxu0 }
  0xdd   :  { %v103_v18 = vpack.c.bf16 %v82_v15, %v80_v13 }
  0xdf   :  { %94 = vst [vmem:[%s147_s3] sm:$0xff] %v103_v18 }

// kernel: forward.13
= control target key start
LH: loop header
LB: loop body
LE: loop exit
PB: predicated region body
PF: predicated region fallthrough
CT: control target
= control target key end

     0   :  { %s943_s18 = smov 0   ;;  %s1071_s0 = inlined_call_operand.vmem [shape: bf16[8,8,32], index: 0, kind: input, shape index: {}]   ;;  %s1072_s1 = inlined_call_operand.vmem [shape: bf16[32,32], index: 1, kind: input, shape index: {}]   ;;  %s1073_s2 = inlined_call_operand.vmem [shape: bf16[32,32], index: 2, kind: input, shape index: {}]   ;;  %s1074_s3 = inlined_call_operand.vmem [shape: bf16[32,32], index: 3, kind: input, shape index: {}]   ;;  %s1075_s4 = inlined_call_operand.vmem [shape: bf16[8,8,32], index: 4, kind: output, shape index: {0}]   ;;  %s1076_s5 = inlined_call_operand.vmem [shape: f32[2,2,16], index: 5, kind: output, shape index: {1}]  }
   0x1 LB: > { %s949_s19 = sadd.s32 4294967295, %s910_s18   ;;  %p791_p0 = scmp.ge.s32.totalorder %s910_s18, 1  ;;  %s910_s18 = sphi %s943_s18, %s16_s18  }
   0x2   : > { %p191_p1 = scmp.lt.s32.totalorder %s910_s18, 3 }
   0x4   : > { %p192_p2 = pnand %p791_p0, %p191_p1 }
   0x5   : > { %v894_v0 = vld [vmem:[%s1072_s1] sm:$0xff] (!%p192_p2)   ;;  %s792_s22 = sshll.u32 (!%p192_p2), %s949_s19, 2  ;;  %v895_v1 = vld [vmem:[%s1072_s1 + $0x8] sm:$0xff] (!%p192_p2)   ;;  %vm288_vm0 = vcmask (!%p192_p2), 1040384   ;;  %vm289_vm1 = vsmask.f32 (!%p192_p2), 256 }
   0x6   : > { %195 = sbr.rel (%p192_p2) target bundleno = 407 (0x197), region = 36  ;;  %p224_p3 = scmp.lt.s32.totalorder (!%p192_p2), %s792_s22, 7  ;;  %861 = vmatprep.subr.bf16.mxu0 (!%p192_p2), %v894_v0  ;;  %v965_v2 = vld [vmem:[%s1074_s3] sm:$0xff] (!%p192_p2)   ;;  %vm296_vm2 = vsmask.f32 (!%p192_p2), 4352  ;;  %vm295_vm3 = vcmask (!%p192_p2), 1044480   ;;  %vm982_vm4 = vmand (!%p192_p2), %vm288_vm0, %vm289_vm1 }
   0x7   : > { %862 = vmatpush3.bf16.msra.mxu0 (!%p192_p2), %v894_v0  ;;  %v901_v3 = vld [vmem:[%s1073_s2] sm:$0xff] (!%p192_p2)   ;;  %v903_v12 = vld [vmem:[%s1073_s2 + $0x8] sm:$0xff] (!%p192_p2)   ;;  %vm987_vm5 = vmand (!%p192_p2), %vm295_vm3, %vm296_vm2  ;;  %vm407_vm6 = vcmask (!%p192_p2), 261120   ;;  %vm532_vm7 = vcmask (!%p192_p2), 1042432   ;;  %vm326_vm8 = vsmask.f32 (!%p192_p2), 3328 }
   0x8   : > { %863 = vmatprep.subr.bf16.mxu0 (!%p192_p2), %v895_v1  ;;  %853 = vmatprep.subr.bf16.mxu1 (!%p192_p2), %v901_v3  ;;  %vm327_vm9 = vsmask.f32 (!%p192_p2), 7440  ;;  %vm533_vm10 = vcmask (!%p192_p2), 1046532   ;;  %v902_v49 = vld [vmem:[%s1074_s3 + $0x8] sm:$0xff] (!%p192_p2)   ;;  %vm648_vm13 = vcmask (!%p192_p2), 257024   ;;  %s912_s15 = smov (!%p192_p2), 112  }
   0x9   : > { %854 = vmatpush3.bf16.msra.mxu1 (!%p192_p2), %v901_v3  ;;  %vm1015_vm11 = vmor (!%p192_p2), %vm532_vm7, %vm533_vm10  ;;  %p235_p4 = scmp.lt.s32.totalorder (!%p192_p2), %s949_s19, 1  ;;  %vm698_vm14 = vcmask (!%p192_p2), 123904  }
   0xa   : > { %855 = vmatprep.subr.bf16.mxu1 (!%p192_p2), %v903_v12  ;;  %vm1021_vm12 = vmor (!%p192_p2), %vm326_vm8, %vm327_vm9 }
   0xb   : > { %864 = vmatpush3.bf16.msra.mxu0 (!%p192_p2), %v895_v1 }
   0xc   : > { %869 = vmatprep.subr.bf16.mxu0 (!%p192_p2), %v965_v2 }
   0xd   : > { %s1086_s22 = smov (!%p224_p3, %s792_s22), 7  ;;  %856 = vmatpush3.bf16.msra.mxu1 %v903_v12  ;;  %s1088_s19 = smov (!%p235_p4, %s949_s19), 1 }
   0xe   : > { %s793_s27 = sshll.u32 %s1086_s22, 2  ;;  %s796_s16 = sshll.u32 %s1088_s19, 1 }
   0xf   : > { %s227_s7 = scalar_lea.vmem %s1071_s0, %s793_s27  ;;  %s233_s14 = scalar_lea.vmem %s1075_s4, %s793_s27 }
  0x10   : > { %v896_v4 = vld [vmem:[%s227_s7] ss:$0 sps:$4 sm:$0xff]   ;;  %v897_v5 = vld [vmem:[%s227_s7 + $0x4] ss:$0 sps:$4 sm:$0xff]   ;;  %v899_v8 = vld [vmem:[%s227_s7 + $0x8] ss:$0 sps:$4 sm:$0xff]   ;;  %s238_s21 = scalar_lea.vmem %s1076_s5, %s796_s16 }
  0x11   : > { %v257_v6 = vshrl.u32 %v896_v4, 16  ;;  %v260_v7 = vshll.u32 %v896_v4, 16  ;;  %v900_v9 = vld [vmem:[%s227_s7 + $0xc] ss:$0 sps:$4 sm:$0xff]   ;;  %v264_v10 = vshrl.u32 %v897_v5, 16  ;;  %v267_v11 = vshll.u32 %v897_v5, 16 }
  0x12   : > { %v271_v14 = vshrl.u32 %v899_v8, 16  ;;  %v274_v15 = vshll.u32 %v899_v8, 16  ;;  %v278_v16 = vshrl.u32 %v900_v9, 16  ;;  %v281_v19 = vshll.u32 %v900_v9, 16 }
  0x13   : > { %v259_v13 = vrot.slane %v257_v6, 7  ;;  %v266_v17 = vrot.slane %v264_v10, 7 }
  0x14   : > { %v273_v22 = vrot.slane %v271_v14, 7  ;;  %v280_v23 = vrot.slane %v278_v16, 7 }
  0x15   : > { %v262_v20 = vor.u32 %v260_v7, %v259_v13  ;;  %v269_v24 = vor.u32 %v267_v11, %v266_v17 }
  0x16   : > { %v276_v26 = vor.u32 %v274_v15, %v273_v22  ;;  %v283_v27 = vor.u32 %v281_v19, %v280_v23 }
  0x17   : > { %v291_v25 = vsel %vm982_vm4, 0, %v262_v20  ;;  %v292_v28 = vsel %vm982_vm4, 0, %v269_v24 }
  0x18   : > { %v298_v29 = vsel %vm987_vm5, %v291_v25, 0  ;;  %v299_v30 = vsel %vm987_vm5, %v292_v28, 0  ;;  %v293_v33 = vsel %vm982_vm4, 0, %v276_v26  ;;  %v294_v37 = vsel %vm982_vm4, 0, %v283_v27 }
  0x19   : > { %v801_v31 = vcombine.low %v298_v29, %v298_v29  ;;  %v802_v32 = vcombine.high %v298_v29, %v298_v29  ;;  %v803_v34 = vcombine.low %v299_v30, %v299_v30  ;;  %v804_v35 = vcombine.high %v299_v30, %v299_v30 }
  0x1a   : > { %v815_v36 = vcombine.low %v298_v29, %v299_v30  ;;  %v300_v40 = vsel %vm987_vm5, %v293_v33, 0  ;;  %v301_v41 = vsel %vm987_vm5, %v294_v37, 0 }
  0x1b   : > { %v821_v38 = vrot.slane %v801_v31, 9  ;;  %v537_v39 = vrot.slane %v802_v32, 5  ;;  %v822_v42 = vrot.slane %v803_v34, 9  ;;  %v541_v43 = vrot.slane %v804_v35, 5 }
  0x1c   : > { %865 = vmatprep.mubr.msk.bf16.mxu0 %vm407_vm6, %v815_v36  ;;  %v805_v44 = vcombine.low %v300_v40, %v300_v40  ;;  %v806_v45 = vcombine.high %v300_v40, %v300_v40  ;;  %v807_v46 = vcombine.low %v301_v41, %v301_v41  ;;  %v808_v47 = vcombine.high %v301_v41, %v301_v41 }
  0x1d   : > { %v816_v48 = vcombine.low %v300_v40, %v301_v41  ;;  %v330_v50 = vshrl.u32 %v801_v31, 16  ;;  %v333_v53 = vshll.u32 %v801_v31, 16  ;;  %v339_v54 = vshll.u32 %v802_v32, 16 }
  0x1e   : > { %v823_v51 = vrot.slane %v805_v44, 9  ;;  %v545_v52 = vrot.slane %v806_v45, 5  ;;  %v824_v55 = vrot.slane %v807_v46, 9  ;;  %v549_v56 = vrot.slane %v808_v47, 5 }
  0x1f   : > { %866 = vmatmul.mubr.msk.bf16.vlgmr.msra.gmra.mrb[0].mxu0 %vm407_vm6, %v816_v48  ;;  %v332_v57 = vrot.slane %v330_v50, 4  ;;  %v344_v58 = vshrl.u32 %v803_v34, 16  ;;  %v335_v59 = vrot.slane %v333_v53, 5  ;;  %v341_v60 = vrot.slane %v339_v54, 5 }
  0x20   : > { %870 = vmatpush3.bf16.msra.mxu0 %v965_v2  ;;  %v347_v61 = vshll.u32 %v803_v34, 16  ;;  %v353_v62 = vshll.u32 %v804_v35, 16  ;;  %v358_v0 = vshrl.u32 %v805_v44, 16  ;;  %v361_v1 = vshll.u32 %v805_v44, 16 }
  0x21   : > { %871 = vmatprep.subr.bf16.mxu0 %v902_v49  ;;  %v346_v63 = vrot.slane %v344_v58, 4  ;;  %v367_v3 = vshll.u32 %v806_v45, 16  ;;  %v336_v4 = vor.u32 %v335_v59, %v332_v57  ;;  %v372_v7 = vshrl.u32 %v807_v46, 16 }
  0x22   : > { %v349_v5 = vrot.slane %v347_v61, 5  ;;  %v355_v6 = vrot.slane %v353_v62, 5  ;;  %v360_v9 = vrot.slane %v358_v0, 4  ;;  %v363_v10 = vrot.slane %v361_v1, 5 }
  0x23   : > { %v369_v11 = vrot.slane %v367_v3, 5  ;;  %v375_v12 = vshll.u32 %v807_v46, 16  ;;  %v337_v13 = vrot.slane %v336_v4, 4  ;;  %v374_v15 = vrot.slane %v372_v7, 4 }
  0x24   : > { %872 = vmatpush3.bf16.msra.mxu0 %v902_v49  ;;  %v350_v14 = vor.u32 %v349_v5, %v346_v63  ;;  %v381_v16 = vshll.u32 %v808_v47, 16  ;;  %v364_v17 = vor.u32 %v363_v10, %v360_v9  ;;  %v538_v19 = vsel %vm1015_vm11, %v821_v38, %v537_v39 }
  0x25   : > { %v377_v18 = vrot.slane %v375_v12, 5  ;;  %v542_v20 = vsel %vm1015_vm11, %v822_v42, %v541_v43  ;;  %v342_v21 = vsel %vm1021_vm12, %v337_v13, %v341_v60  ;;  %v546_v27 = vsel %vm1015_vm11, %v823_v51, %v545_v52 }
  0x26   : > { %v351_v22 = vrot.slane %v350_v14, 4  ;;  %v383_v23 = vrot.slane %v381_v16, 5  ;;  %v825_v24 = vcombine.low %v538_v19, %v542_v20  ;;  %v365_v25 = vrot.slane %v364_v17, 4 }
  0x27   : > { %v378_v26 = vor.u32 %v377_v18, %v374_v15  ;;  %v550_v28 = vsel %vm1015_vm11, %v824_v55, %v549_v56 }
  0x28   : > { %v356_v29 = vsel %vm1021_vm12, %v351_v22, %v355_v6  ;;  %873 = vmatprep.mubr.msk.bf16.mxu0 %vm407_vm6, %v825_v24  ;;  %v826_v30 = vcombine.low %v546_v27, %v550_v28  ;;  %v370_v32 = vsel %vm1021_vm12, %v365_v25, %v369_v11 }
  0x29   : > { %v809_v31 = vcombine.low %v342_v21, %v356_v29  ;;  %v379_v33 = vrot.slane %v378_v26, 4 }
  0x2b   : > { %857 = vmatprep.mubr.msk.bf16.mxu1 %vm407_vm6, %v809_v31  ;;  %v384_v34 = vsel %vm1021_vm12, %v379_v33, %v383_v23  ;;  %874 = vmatmul.mubr.msk.bf16.vlgmr.msra.gmra.mrb[0].mxu0 %vm407_vm6, %v826_v30 }
  0x2c   : > { %v810_v35 = vcombine.low %v370_v32, %v384_v34 }
  0x2e   : > { %858 = vmatmul.mubr.msk.bf16.vlgmr.msra.gmra.mrb[0].mxu1 %vm407_vm6, %v810_v35 }
  0xfe   : > { %v875_v36 = vpop.f32.mrb[0].mxu0 }
  0xff   : > { %v613_v37 = vpop.f32.mrb[1].mxu0 }
 0x100   : > { %v876_v38 = vpop.f32.mrb[2].mxu0 }
 0x101   : > { %v859_v39 = vpop.f32.mrb[0].mxu1  ;;  %v616_v40 = vpop.f32.mrb[3].mxu0 }
 0x102   : > { %v448_v41 = vpop.f32.mrb[1].mxu1  ;;  %v877_v42 = vadd.f32 %v875_v36, %v859_v39 }
 0x103   : > { %v860_v43 = vpop.f32.mrb[2].mxu1  ;;  %v878_v44 = vadd.f32 %v613_v37, %v448_v41 }
 0x104   : > { %v451_v45 = vpop.f32.mrb[3].mxu1  ;;  %v879_v46 = vadd.f32 %v876_v38, %v860_v43  ;;  %v668_v50 = vmul.f32 %v877_v42, %v877_v42  ;;  %v839_v55 = vpack.c.bf16 %v877_v42, %v877_v42  ;;  %v656_v56 = vsel %vm407_vm6, %v877_v42, 0.0 }
 0x105   : > { %v837_v47 = vpack.c.bf16 %v878_v44, %v878_v44  ;;  %v666_v48 = vmul.f32 %v878_v44, %v878_v44  ;;  %v880_v49 = vadd.f32 %v616_v40, %v451_v45  ;;  %v653_v51 = vsel %vm407_vm6, %v878_v44, 0.0 }
 0x106   : > { %v840_v59 = vpack.c.bf16 %v879_v46, %v879_v46  ;;  %v669_v60 = vmul.f32 %v879_v46, %v879_v46  ;;  %651 = vst.msk [vmem:[%s233_s14 + $0x8] sm:$0xf] %vm648_vm13, %v839_v55  ;;  %v673_v0 = vsel %vm407_vm6, %v668_v50, 0.0  ;;  %v658_v1 = vsel %vm407_vm6, %v879_v46, 0.0 }
 0x107   : > { %649 = vst.msk [vmem:[%s233_s14] sm:$0xf] %vm648_vm13, %v837_v47  ;;  %v838_v52 = vpack.c.bf16 %v880_v49, %v880_v49  ;;  %v654_v53 = vsel %vm407_vm6, %v880_v49, 0.0  ;;  %v667_v54 = vmul.f32 %v880_v49, %v880_v49  ;;  %v670_v58 = vsel %vm407_vm6, %v666_v48, 0.0 }
 0x108   : > { %v655_v57 = vadd.f32 %v654_v53, %v653_v51  ;;  %652 = vst.msk [vmem:[%s233_s14 + $0xc] sm:$0xf] %vm648_vm13, %v840_v59  ;;  %v675_v5 = vsel %vm407_vm6, %v669_v60, 0.0 }
 0x109   : > { %650 = vst.msk [vmem:[%s233_s14 + $0x4] sm:$0xf] %vm648_vm13, %v838_v52  ;;  %v671_v61 = vsel %vm407_vm6, %v667_v54, 0.0 }
 0x10a   : > { %v657_v62 = vadd.f32 %v656_v56, %v655_v57  ;;  %v672_v63 = vadd.f32 %v671_v61, %v670_v58 }
 0x10c   : > { %v674_v3 = vadd.f32 %v673_v0, %v672_v63  ;;  %v659_v4 = vadd.f32 %v658_v1, %v657_v62 }
 0x10e   : > { %v676_v6 = vadd.f32 %v675_v5, %v674_v3  ;;  %v660_v7 = vrot.slane %v659_v4, 4 }
 0x110   : > { %v677_v8 = vrot.slane %v676_v6, 4  ;;  %v661_v2 = vadd.f32 %v660_v7, %v659_v4 }
 0x112   : > { %v678_v9 = vadd.f32 %v677_v8, %v676_v6  ;;  %v662_v10 = vrot.slane %v661_v2, 2 }
 0x114   : > { %v679_v11 = vrot.slane %v678_v9, 2  ;;  %v663_v13 = vadd.f32 %v662_v10, %v661_v2 }
 0x116   : > { %v680_v12 = vadd.f32 %v679_v11, %v678_v9  ;;  %v664_v16 = vrot.slane %v663_v13, 1 }
 0x118   : > { %v681_v14 = vrot.slane %v680_v12, 1  ;;  %v665_v17 = vadd.f32 %v664_v16, %v663_v13 }
 0x11a   : > { %v682_v15 = vadd.f32 %v681_v14, %v680_v12 }
 0x11c   : > { %689 = vrot.lane.b32.xlu0 %v682_v15, %s912_s15 }
 0x120   : > { %684 = vrot.lane.b32.xlu0 %v665_v17, %s912_s15 }
 0x18e   : > { %v690_v18 = vpop.permute.xlu0 %689 }
 0x18f   : > { %v692_v19 = vadd.f32 %v690_v18, %v682_v15 }
 0x191   : > { %v694_v21 = vrot.slane %v692_v19, 7 }
 0x192   : > { %v685_v20 = vpop.permute.xlu0 %684 }
 0x193   : > { %v687_v22 = vadd.f32 %v685_v20, %v665_v17 }
 0x195   : > { %v697_v23 = vsel %vm288_vm0, %v687_v22, %v694_v21 }
 0x196   : > { %699 = vst.msk [vmem:[%s238_s21] sm:$0x3] %vm698_vm14, %v697_v23 }
 0x197 PF: > { %s16_s18 = sadd.s32 1, %s910_s18  }
 0x198   : > { %p13_p5 = scmp.ge.s32.totalorder %s16_s18, 4  }
 0x19a   :  { %15 = sbr.rel (!%p13_p5) target bundleno = 1 (0x1), region = 78 }

// kernel: forward.14
= control target key start
LH: loop header
LB: loop body
LE: loop exit
PB: predicated region body
PF: predicated region fallthrough
CT: control target
= control target key end

     0   :  { %s1192_s27 = smov 0   ;;  %s1331_s0 = inlined_call_operand.vmem [shape: f32[2,2,16], index: 0, kind: input, shape index: {}]   ;;  %s1332_s1 = inlined_call_operand.vmem [shape: f32[1,16], index: 1, kind: input, shape index: {}]   ;;  %s1333_s2 = inlined_call_operand.vmem [shape: f32[1,16], index: 2, kind: input, shape index: {}]   ;;  %s1334_s3 = inlined_call_operand.vmem [shape: bf16[8,16,16], index: 3, kind: input, shape index: {}]   ;;  %s1335_s4 = inlined_call_operand.vmem [shape: bf16[16,16], index: 4, kind: input, shape index: {}]   ;;  %s1336_s5 = inlined_call_operand.vmem [shape: bf16[16,16], index: 5, kind: input, shape index: {}]   ;;  %s1337_s6 = inlined_call_operand.vmem [shape: bf16[16,16], index: 6, kind: input, shape index: {}]   ;;  %s1338_s7 = inlined_call_operand.vmem [shape: bf16[8,16,16], index: 7, kind: output, shape index: {0}]   ;;  %s1339_s8 = inlined_call_operand.vmem [shape: f32[2,2,8], index: 8, kind: output, shape index: {1}]  }
   0x1 LB: > { %s1198_s28 = sadd.s32 4294967295, %s1143_s27   ;;  %p997_p0 = scmp.ge.s32.totalorder %s1143_s27, 1  ;;  %s1143_s27 = sphi %s1192_s27, %s19_s27  }
   0x2   : > { %p267_p1 = scmp.lt.s32.totalorder %s1143_s27, 3 }
   0x4   : > { %p268_p2 = pnand %p997_p0, %p267_p1 }
   0x5   : > { %v1205_v0 = vld [vmem:[%s1335_s4] sm:$0xff] (!%p268_p2)   ;;  %vm336_vm0 = vcmask (!%p268_p2), 123904   ;;  %s998_s17 = sshll.u32 (!%p268_p2), %s1198_s28, 2  ;;  %v1145_v14 = vmov (!%p268_p2), 1966171168   ;;  %v354_v16 = vlaneseq (!%p268_p2)  ;;  %vm455_vm1 = vcmask (!%p268_p2), 1040384  }
   0x6   : > { %271 = sbr.rel (%p268_p2) target bundleno = 450 (0x1c2), region = 48  ;;  %v334_v1 = vld [vmem:[%s1331_s0] sm:$0x3] (!%p268_p2)  ;;  %v335_v2 = vld [vmem:[%s1331_s0 + $0x2] sm:$0x3] (!%p268_p2)  ;;  %1084 = vmatprep.subr.bf16.mxu0 (!%p268_p2), %v1205_v0  ;;  %v352_v15 = vunpack.c.l.s4 (!%p268_p2), %v1145_v14  ;;  %p308_p3 = scmp.lt.s32.totalorder (!%p268_p2), %s998_s17, 7 }
   0x7   : > { %v337_v3 = vsel (!%p268_p2), %vm336_vm0, %v334_v1, 0.0  ;;  %v338_v4 = vsel (!%p268_p2), %vm336_vm0, %v335_v2, 0.0  ;;  %1085 = vmatpush3.bf16.msra.mxu0 (!%p268_p2), %v1205_v0  ;;  %v1133_v6 = vld [vmem:[%s1336_s5] sm:$0xff] (!%p268_p2)   ;;  %v355_v18 = vshrl.u32 (!%p268_p2), %v354_v16, 7  ;;  %vm456_vm2 = vsmask.f32 (!%p268_p2), 256 }
   0x8   : > { %v339_v5 = vadd.f32 (!%p268_p2), %v338_v4, %v337_v3  ;;  %v1221_v7 = vld [vmem:[%s1337_s6] sm:$0xff] (!%p268_p2)   ;;  %1074 = vmatprep.subr.bf16.mxu1 (!%p268_p2), %v1133_v6  ;;  %v353_v17 = vunpack.c.0.s8 (!%p268_p2), %v352_v15  ;;  %vm1241_vm3 = vmand (!%p268_p2), %vm455_vm1, %vm456_vm2  ;;  %vm525_vm4 = vcmask (!%p268_p2), 130048   ;;  %vm468_vm5 = vsmask.f32 (!%p268_p2), 7424  ;;  %s1146_s9 = smov (!%p268_p2), 120   ;;  %p321_p4 = scmp.lt.s32.totalorder (!%p268_p2), %s1198_s28, 1 }
   0x9   : > { %1075 = vmatpush3.bf16.msra.mxu1 (!%p268_p2), %v1133_v6  ;;  %1094 = vmatprep.subr.bf16.mxu0 (!%p268_p2), %v1221_v7  ;;  %v347_v24 = vld [vmem:[%s1332_s1] sm:$0x1] (!%p268_p2)  ;;  %v382_v27 = vsub.s32 (!%p268_p2), 0, %v355_v18  ;;  %vm690_vm6 = vcmask (!%p268_p2), 1046528   ;;  %vm828_vm7 = vcmask (!%p268_p2), 125952   ;;  %vm902_vm8 = vcmask (!%p268_p2), 58368  }
   0xa   : > { %v340_v8 = vmul.f32 (!%p268_p2), 0.0078125, %v339_v5  ;;  %1104 = vmatprep.subr.bf16.mxu1 (!%p268_p2), %v1205_v0  ;;  %v356_v19 = vsub.s32 (!%p268_p2), %v353_v17, %v355_v18  ;;  %v368_v34 = vld [vmem:[%s1333_s2] sm:$0x1] (!%p268_p2) }
   0xc   : > { %v341_v9 = vmul.f32 (!%p268_p2), %v340_v8, %v340_v8 }
   0xd   : > { %s1343_s17 = smov (!%p308_p3, %s998_s17), 7  ;;  %s1345_s28 = smov (!%p321_p4, %s1198_s28), 1 }
   0xe   : > { %v343_v10 = vrot.slane %v341_v9, 7  ;;  %s1030_s18 = sshll.u32 %s1343_s17, 3  ;;  %s1004_s10 = sshll.u32 %s1345_s28, 1 }
   0xf   : > { %s312_s21 = scalar_lea.vmem %s1334_s3, %s1030_s18  ;;  %s1288_s30 = scalar_lea.vmem %s1338_s7, %s1030_s18 }
  0x10   : > { %v345_v11 = vsub.f32 %v340_v8, %v343_v10  ;;  %v1041_v23 = vld [vmem:[%s312_s21] sm:$0xff]   ;;  %v1056_v25 = vld [vmem:[%s312_s21 + $0x8] sm:$0xff]   ;;  %v1057_v28 = vld [vmem:[%s312_s21 + $0x10] sm:$0xff]   ;;  %s324_s13 = scalar_lea.vmem %s1339_s8, %s1004_s10 }
  0x11   : > { %v1058_v29 = vld [vmem:[%s312_s21 + $0x18] sm:$0xff]   ;;  %v1042_v30 = vunpack.c.l.bf16 %v1041_v23  ;;  %v1043_v31 = vunpack.c.h.bf16 %v1041_v23  ;;  %v1046_v33 = vunpack.c.l.bf16 %v1056_v25  ;;  %v1047_v35 = vunpack.c.h.bf16 %v1056_v25 }
  0x12   : > { %v346_v12 = vmax.f32 %v345_v11, 0.0  ;;  %v1050_v36 = vunpack.c.l.bf16 %v1057_v28  ;;  %v1051_v37 = vunpack.c.h.bf16 %v1057_v28  ;;  %v1054_v38 = vunpack.c.l.bf16 %v1058_v29 }
  0x13   : > { %v1055_v41 = vunpack.c.h.bf16 %v1058_v29 }
  0x14   : > { %v348_v13 = vadd.f32 1e-05, %v346_v12 }
  0x16   : > { %1135 = vrsqrt.f32 %v348_v13 }
  0x20   : > { %v1136_v20 = vpop.eup %1135 }
  0x21   : > { %v357_v21 = vrot.slane %v1136_v20, %v356_v19 }
  0x23   : > { %v358_v22 = vcombine.high %v357_v21, %v357_v21 }
  0x25   : > { %v365_v26 = vrot.slane %v358_v22, %v356_v19 }
  0x27   : > { %v367_v32 = vmul.f32 %v365_v26, %v347_v24 }
  0x29   : > { %v369_v39 = vmul.f32 %v367_v32, %v340_v8  ;;  %v383_v40 = vrot.slane %v367_v32, %v382_v27 }
  0x2b   : > { %v370_v42 = vsub.f32 %v368_v34, %v369_v39  ;;  %v385_v43 = vmul.f32 %v1042_v30, %v383_v40  ;;  %v386_v44 = vmul.f32 %v1043_v31, %v383_v40  ;;  %v387_v45 = vmul.f32 %v1046_v33, %v383_v40 }
  0x2c   : > { %v388_v46 = vmul.f32 %v1047_v35, %v383_v40  ;;  %v389_v47 = vmul.f32 %v1050_v36, %v383_v40  ;;  %v390_v48 = vmul.f32 %v1051_v37, %v383_v40  ;;  %v391_v49 = vmul.f32 %v1054_v38, %v383_v40 }
  0x2d   : > { %v397_v50 = vrot.slane %v370_v42, %v382_v27  ;;  %v392_v51 = vmul.f32 %v1055_v41, %v383_v40 }
  0x2f   : > { %v399_v52 = vadd.f32 %v397_v50, %v385_v43  ;;  %v400_v53 = vadd.f32 %v397_v50, %v386_v44  ;;  %v401_v54 = vadd.f32 %v397_v50, %v387_v45  ;;  %v402_v55 = vadd.f32 %v397_v50, %v388_v46 }
  0x30   : > { %v403_v56 = vadd.f32 %v397_v50, %v389_v47  ;;  %v404_v57 = vadd.f32 %v397_v50, %v390_v48  ;;  %v405_v58 = vadd.f32 %v397_v50, %v391_v49  ;;  %v406_v59 = vadd.f32 %v397_v50, %v392_v51 }
  0x31   : > { %v407_v60 = vmax.f32 %v399_v52, 0.0  ;;  %v408_v61 = vmax.f32 %v400_v53, 0.0  ;;  %v409_v62 = vmax.f32 %v401_v54, 0.0  ;;  %v410_v63 = vmax.f32 %v402_v55, 0.0 }
  0x32   : > { %v411_v1 = vmax.f32 %v403_v56, 0.0  ;;  %v412_v2 = vmax.f32 %v404_v57, 0.0  ;;  %v413_v3 = vmax.f32 %v405_v58, 0.0  ;;  %v414_v4 = vmax.f32 %v406_v59, 0.0 }
  0x33   : > { %v415_v5 = vpack.c.bf16 %v408_v61, %v407_v60  ;;  %v416_v6 = vpack.c.bf16 %v410_v63, %v409_v62 }
  0x34   : > { %v417_v8 = vpack.c.bf16 %v412_v2, %v411_v1  ;;  %v418_v9 = vpack.c.bf16 %v414_v4, %v413_v3 }
  0x35   : > { %v420_v10 = vshrl.u32 %v415_v5, 16  ;;  %v423_v11 = vshll.u32 %v415_v5, 16  ;;  %v427_v12 = vshrl.u32 %v416_v6, 16  ;;  %v430_v13 = vshll.u32 %v416_v6, 16 }
  0x36   : > { %v434_v14 = vshrl.u32 %v417_v8, 16  ;;  %v437_v17 = vshll.u32 %v417_v8, 16  ;;  %v441_v18 = vshrl.u32 %v418_v9, 16  ;;  %v444_v28 = vshll.u32 %v418_v9, 16 }
  0x37   : > { %v422_v15 = vrot.slane %v420_v10, 7  ;;  %v429_v16 = vrot.slane %v427_v12, 7 }
  0x38   : > { %v436_v20 = vrot.slane %v434_v14, 7  ;;  %v443_v32 = vrot.slane %v441_v18, 7 }
  0x39   : > { %v425_v21 = vor.u32 %v423_v11, %v422_v15  ;;  %v432_v22 = vor.u32 %v430_v13, %v429_v16  ;;  %v462_v23 = vsel %vm1241_vm3, %v422_v15, 0  ;;  %v463_v24 = vsel %vm1241_vm3, %v429_v16, 0 }
  0x3a   : > { %v477_v25 = vshll.u32 %v462_v23, 16  ;;  %v692_v26 = vrot.slane %v462_v23, 1  ;;  %v489_v27 = vshll.u32 %v463_v24, 16  ;;  %v439_v31 = vor.u32 %v437_v17, %v436_v20 }
  0x3b   : > { %v458_v29 = vsel %vm1241_vm3, 0, %v425_v21  ;;  %v459_v30 = vsel %vm1241_vm3, 0, %v432_v22  ;;  %v464_v36 = vsel %vm1241_vm3, %v436_v20, 0  ;;  %v695_v40 = vrot.slane %v463_v24, 1 }
  0x3c   : > { %1086 = vmatprep.mubr.msk.bf16.mxu0 %vm525_vm4, %v458_v29  ;;  %v691_v33 = vrot.slane %v458_v29, 1  ;;  %v482_v34 = vshrl.u32 %v459_v30, 16  ;;  %v484_v35 = vshll.u32 %v459_v30, 16  ;;  %v470_v37 = vshrl.u32 %v458_v29, 16 }
  0x3d   : > { %1087 = vmatmul.mubr.msk.bf16.vlgmr.msra.gmra.mrb[0].mxu0 %vm525_vm4, %v459_v30  ;;  %v472_v38 = vshll.u32 %v458_v29, 16  ;;  %v479_v39 = vrot.slane %v477_v25, 1  ;;  %v491_v42 = vrot.slane %v489_v27, 1  ;;  %v460_v44 = vsel %vm1241_vm3, 0, %v439_v31 }
  0x3e   : > { %v486_v41 = vrot.slane %v484_v35, 1  ;;  %1095 = vmatpush3.bf16.msra.mxu0 %v1221_v7  ;;  %v693_v43 = vsel %vm690_vm6, %v691_v33, %v692_v26  ;;  %v494_v46 = vshrl.u32 %v460_v44, 16  ;;  %v496_v47 = vshll.u32 %v460_v44, 16 }
  0x3f   : > { %v474_v45 = vrot.slane %v472_v38, 1  ;;  %1096 = vmatprep.mubr.msk.bf16.mxu0 %vm525_vm4, %v693_v43  ;;  %v501_v48 = vshll.u32 %v464_v36, 16  ;;  %v694_v49 = vrot.slane %v459_v30, 1  ;;  %v446_v51 = vor.u32 %v444_v28, %v443_v32 }
  0x40   : > { %v487_v50 = vor.u32 %v486_v41, %v482_v34  ;;  %v465_v52 = vsel %vm1241_vm3, %v443_v32, 0  ;;  %v498_v54 = vrot.slane %v496_v47, 1  ;;  %v697_v55 = vrot.slane %v460_v44, 1 }
  0x41   : > { %v475_v53 = vor.u32 %v474_v45, %v470_v37  ;;  %v503_v7 = vrot.slane %v501_v48, 1  ;;  %v461_v57 = vsel %vm1241_vm3, 0, %v446_v51  ;;  %v513_v58 = vshll.u32 %v465_v52, 16 }
  0x42   : > { %v492_v56 = vsel %vm468_vm5, %v487_v50, %v491_v42  ;;  %v698_v59 = vrot.slane %v464_v36, 1  ;;  %v499_v61 = vor.u32 %v498_v54, %v494_v46  ;;  %v506_v62 = vshrl.u32 %v461_v57, 16 }
  0x43   : > { %v480_v60 = vsel %vm468_vm5, %v475_v53, %v479_v39  ;;  %v508_v63 = vshll.u32 %v461_v57, 16  ;;  %v696_v3 = vsel %vm690_vm6, %v694_v49, %v695_v40  ;;  %v515_v4 = vrot.slane %v513_v58, 1 }
  0x44   : > { %1076 = vmatprep.mubr.msk.bf16.mxu1 %vm525_vm4, %v480_v60  ;;  %v504_v1 = vsel %vm468_vm5, %v499_v61, %v503_v7  ;;  %v699_v6 = vsel %vm690_vm6, %v697_v55, %v698_v59  ;;  %v700_v9 = vrot.slane %v461_v57, 1  ;;  %v701_v10 = vrot.slane %v465_v52, 1 }
  0x45   : > { %1077 = vmatmul.mubr.msk.bf16.vlgmr.msra.gmra.mrb[0].mxu1 %vm525_vm4, %v492_v56  ;;  %v510_v2 = vrot.slane %v508_v63, 1 }
  0x46   : > { %1105 = vmatpush3.bf16.msra.mxu1 %v1205_v0  ;;  %1080 = vmatprep.mubr.msk.bf16.mxu1 %vm525_vm4, %v504_v1  ;;  %v702_v0 = vsel %vm690_vm6, %v700_v9, %v701_v10 }
  0x47   : > { %v511_v5 = vor.u32 %v510_v2, %v506_v62 }
  0x49   : > { %1097 = vmatmul.mubr.msk.bf16.vlgmr.msra.gmra.mrb[0].mxu0 %vm525_vm4, %v696_v3  ;;  %v516_v8 = vsel %vm468_vm5, %v511_v5, %v515_v4 }
  0x4a   : > { %1100 = vmatprep.mubr.msk.bf16.mxu0 %vm525_vm4, %v699_v6 }
  0x4d   : > { %1081 = vmatmul.mubr.msk.bf16.gmra.mrb[4].mxu1 %vm525_vm4, %v516_v8 }
  0x4e   : > { %1090 = vmatprep.mubr.msk.bf16.mxu1 %vm525_vm4, %v460_v44 }
  0x51   : > { %1101 = vmatmul.mubr.msk.bf16.gmra.mrb[4].mxu0 %vm525_vm4, %v702_v0 }
  0x59   : > { %1091 = vmatmul.mubr.msk.bf16.vlgmr.msra.gmra.mrb[4].mxu1 %vm525_vm4, %v461_v57 }
 0x118   : > { %v1078_v11 = vpop.f32.mrb[0].mxu1 }
 0x119   : > { %v572_v12 = vpop.f32.mrb[1].mxu1 }
 0x11a   : > { %v1079_v13 = vpop.f32.mrb[2].mxu1 }
 0x11b   : > { %v575_v14 = vpop.f32.mrb[3].mxu1 }
 0x11c   : > { %v1098_v15 = vpop.f32.mrb[0].mxu0 }
 0x11d   : > { %v1106_v16 = vadd.f32 %v1098_v15, %v1078_v11  ;;  %v757_v17 = vpop.f32.mrb[1].mxu0 }
 0x11e   : > { %v1107_v18 = vadd.f32 %v757_v17, %v572_v12  ;;  %v1099_v19 = vpop.f32.mrb[2].mxu0 }
 0x11f   : > { %v1108_v20 = vadd.f32 %v1099_v19, %v1079_v13  ;;  %v760_v21 = vpop.f32.mrb[3].mxu0  ;;  %v1034_v25 = vpack.c.bf16 %v1106_v16, %v1106_v16  ;;  %v860_v26 = vmul.f32 %v1106_v16, %v1106_v16  ;;  %v840_v33 = vsel %vm525_vm4, %v1106_v16, 0.0 }
 0x120   : > { %v1032_v22 = vpack.c.bf16 %v1107_v18, %v1107_v18  ;;  %v858_v23 = vmul.f32 %v1107_v18, %v1107_v18  ;;  %v1109_v24 = vadd.f32 %v760_v21, %v575_v14  ;;  %v837_v27 = vsel %vm525_vm4, %v1107_v18, 0.0 }
 0x121   : > { %831 = vst.msk [vmem:[%s1288_s30 + $0x8] sm:$0xf] %vm828_vm7, %v1034_v25  ;;  %v1035_v31 = vpack.c.bf16 %v1108_v20, %v1108_v20  ;;  %v861_v35 = vmul.f32 %v1108_v20, %v1108_v20  ;;  %v869_v41 = vsel %vm525_vm4, %v860_v26, 0.0  ;;  %v842_v42 = vsel %vm525_vm4, %v1108_v20, 0.0 }
 0x122   : > { %829 = vst.msk [vmem:[%s1288_s30] sm:$0xf] %vm828_vm7, %v1032_v22  ;;  %v1033_v28 = vpack.c.bf16 %v1109_v24, %v1109_v24  ;;  %v838_v29 = vsel %vm525_vm4, %v1109_v24, 0.0  ;;  %v859_v30 = vmul.f32 %v1109_v24, %v1109_v24  ;;  %v866_v34 = vsel %vm525_vm4, %v858_v23, 0.0 }
 0x123   : > { %v839_v32 = vadd.f32 %v838_v29, %v837_v27  ;;  %832 = vst.msk [vmem:[%s1288_s30 + $0xc] sm:$0xf] %vm828_vm7, %v1035_v31  ;;  %v871_v47 = vsel %vm525_vm4, %v861_v35, 0.0 }
 0x124   : > { %830 = vst.msk [vmem:[%s1288_s30 + $0x4] sm:$0xf] %vm828_vm7, %v1033_v28  ;;  %v867_v36 = vsel %vm525_vm4, %v859_v30, 0.0  ;;  %v1102_v37 = vpop.f32.mrb[4].mxu0 }
 0x125   : > { %v841_v38 = vadd.f32 %v840_v33, %v839_v32  ;;  %v868_v39 = vadd.f32 %v867_v36, %v866_v34  ;;  %v773_v40 = vpop.f32.mrb[5].mxu0 }
 0x126   : > { %v1103_v43 = vpop.f32.mrb[6].mxu0 }
 0x127   : > { %v870_v44 = vadd.f32 %v869_v41, %v868_v39  ;;  %v776_v45 = vpop.f32.mrb[7].mxu0  ;;  %v843_v46 = vadd.f32 %v842_v42, %v841_v38 }
 0x129   : > { %v872_v48 = vadd.f32 %v871_v47, %v870_v44 }
 0x12c   : > { %v1092_v49 = vpop.f32.mrb[4].mxu1 }
 0x12d   : > { %v1110_v50 = vadd.f32 %v1102_v37, %v1092_v49  ;;  %v667_v51 = vpop.f32.mrb[5].mxu1 }
 0x12e   : > { %v1111_v52 = vadd.f32 %v773_v40, %v667_v51  ;;  %v1093_v53 = vpop.f32.mrb[6].mxu1 }
 0x12f   : > { %v1112_v54 = vadd.f32 %v1103_v43, %v1093_v53  ;;  %v670_v7 = vpop.f32.mrb[7].mxu1  ;;  %v1038_v59 = vpack.c.bf16 %v1110_v50, %v1110_v50  ;;  %v864_v61 = vmul.f32 %v1110_v50, %v1110_v50  ;;  %v848_v6 = vsel %vm525_vm4, %v1110_v50, 0.0 }
 0x130   : > { %v1036_v55 = vpack.c.bf16 %v1111_v52, %v1111_v52  ;;  %v844_v56 = vsel %vm525_vm4, %v1111_v52, 0.0  ;;  %v862_v57 = vmul.f32 %v1111_v52, %v1111_v52  ;;  %v1113_v58 = vadd.f32 %v776_v45, %v670_v7 }
 0x131   : > { %v845_v60 = vadd.f32 %v844_v56, %v843_v46  ;;  %835 = vst.msk [vmem:[%s1288_s30 + $0x18] sm:$0xf] %vm828_vm7, %v1038_v59  ;;  %v1039_v3 = vpack.c.bf16 %v1112_v54, %v1112_v54  ;;  %v865_v8 = vmul.f32 %v1112_v54, %v1112_v54  ;;  %v850_v0 = vsel %vm525_vm4, %v1112_v54, 0.0 }
 0x132   : > { %833 = vst.msk [vmem:[%s1288_s30 + $0x10] sm:$0xf] %vm828_vm7, %v1036_v55  ;;  %v873_v62 = vsel %vm525_vm4, %v862_v57, 0.0  ;;  %v1037_v63 = vpack.c.bf16 %v1113_v58, %v1113_v58  ;;  %v846_v1 = vsel %vm525_vm4, %v1113_v58, 0.0  ;;  %v863_v5 = vmul.f32 %v1113_v58, %v1113_v58 }
 0x133   : > { %v874_v2 = vadd.f32 %v873_v62, %v872_v48  ;;  %v847_v4 = vadd.f32 %v846_v1, %v845_v60  ;;  %836 = vst.msk [vmem:[%s1288_s30 + $0x1c] sm:$0xf] %vm828_vm7, %v1039_v3  ;;  %v877_v12 = vsel %vm525_vm4, %v864_v61, 0.0  ;;  %v879_v15 = vsel %vm525_vm4, %v865_v8, 0.0 }
 0x134   : > { %834 = vst.msk [vmem:[%s1288_s30 + $0x14] sm:$0xf] %vm828_vm7, %v1037_v63  ;;  %v875_v10 = vsel %vm525_vm4, %v863_v5, 0.0 }
 0x135   : > { %v849_v9 = vadd.f32 %v848_v6, %v847_v4  ;;  %v876_v11 = vadd.f32 %v875_v10, %v874_v2 }
 0x137   : > { %v851_v13 = vadd.f32 %v850_v0, %v849_v9  ;;  %v878_v14 = vadd.f32 %v877_v12, %v876_v11 }
 0x139   : > { %v852_v16 = vrot.slane %v851_v13, 4  ;;  %v880_v17 = vadd.f32 %v879_v15, %v878_v14 }
 0x13b   : > { %v853_v18 = vadd.f32 %v852_v16, %v851_v13  ;;  %v881_v19 = vrot.slane %v880_v17, 4 }
 0x13d   : > { %v882_v20 = vadd.f32 %v881_v19, %v880_v17  ;;  %v854_v21 = vrot.slane %v853_v18, 2 }
 0x13f   : > { %v883_v22 = vrot.slane %v882_v20, 2  ;;  %v855_v24 = vadd.f32 %v854_v21, %v853_v18 }
 0x141   : > { %v884_v23 = vadd.f32 %v883_v22, %v882_v20  ;;  %v856_v27 = vrot.slane %v855_v24, 1 }
 0x143   : > { %v885_v25 = vrot.slane %v884_v23, 1  ;;  %v857_v28 = vadd.f32 %v856_v27, %v855_v24 }
 0x145   : > { %v886_v26 = vadd.f32 %v885_v25, %v884_v23 }
 0x147   : > { %893 = vrot.lane.b32.xlu0 %v886_v26, %s1146_s9 }
 0x14b   : > { %888 = vrot.lane.b32.xlu0 %v857_v28, %s1146_s9 }
 0x1b9   : > { %v894_v29 = vpop.permute.xlu0 %893 }
 0x1ba   : > { %v896_v30 = vadd.f32 %v894_v29, %v886_v26 }
 0x1bc   : > { %v898_v32 = vrot.slane %v896_v30, 7 }
 0x1bd   : > { %v889_v31 = vpop.permute.xlu0 %888 }
 0x1be   : > { %v891_v33 = vadd.f32 %v889_v31, %v857_v28 }
 0x1c0   : > { %v901_v34 = vsel %vm455_vm1, %v891_v33, %v898_v32 }
 0x1c1   : > { %903 = vst.msk [vmem:[%s324_s13] sm:$0x3] %vm902_vm8, %v901_v34 }
 0x1c2 PF: > { %s19_s27 = sadd.s32 1, %s1143_s27  }
 0x1c3   : > { %p16_p5 = scmp.ge.s32.totalorder %s19_s27, 4  }
 0x1c5   :  { %18 = sbr.rel (!%p16_p5) target bundleno = 1 (0x1), region = 90 }

// kernel: forward.15
= control target key start
LH: loop header
LB: loop body
LE: loop exit
PB: predicated region body
PF: predicated region fallthrough
CT: control target
= control target key end

     0   :  { %s1818_s23 = smov 0   ;;  %s2663_s0 = inlined_call_operand.vmem [shape: f32[2,2,8], index: 0, kind: input, shape index: {}]   ;;  %s2664_s1 = inlined_call_operand.vmem [shape: f32[1,8], index: 1, kind: input, shape index: {}]   ;;  %s2665_s2 = inlined_call_operand.vmem [shape: f32[1,8], index: 2, kind: input, shape index: {}]   ;;  %s2666_s3 = inlined_call_operand.vmem [shape: bf16[8,32,8], index: 3, kind: input, shape index: {}]   ;;  %s2667_s4 = inlined_call_operand.vmem [shape: f32[5,8], index: 4, kind: input, shape index: {}]   ;;  %s2668_s5 = inlined_call_operand.<no memory space> [shape: f32[1,1], index: 5, kind: input, shape index: {}]   ;;  %s2669_s6 = inlined_call_operand.vmem [shape: f32[8,2,32], index: 6, kind: output, shape index: {}]  }
   0x1   :  { %v11_v0 = vstv %s2668_s5 }
   0x2   :  { %12 = vst [vmem:[#allocation2] sm:$0x1] %v11_v0 }
   0x3 LB: > { %s1544_s24 = sadd.s32 4294967295, %s1776_s23   ;;  %p1548_p0 = scmp.ge.s32.totalorder %s1776_s23, 1  ;;  %s1776_s23 = sphi %s1818_s23, %s18_s23  }
   0x4   : > { %p216_p1 = scmp.lt.s32.totalorder %s1776_s23, 3 }
   0x6   : > { %p217_p2 = pnand %p1548_p0, %p216_p1 }
   0x7   : > { %v260_v1 = vld [vmem:[%s2663_s0] sm:$0x3] (!%p217_p2)  ;;  %v261_v2 = vld [vmem:[%s2663_s0 + $0x2] sm:$0x3] (!%p217_p2)  ;;  %vm262_vm0 = vcmask (!%p217_p2), 58368   ;;  %v280_v5 = vlaneseq (!%p217_p2)  ;;  %s1549_s28 = sshll.u32 (!%p217_p2), %s1544_s24, 2 }
   0x8   : > { %220 = sbr.rel (%p217_p2) target bundleno = 395 (0x18b), region = 44  ;;  %v263_v3 = vsel (!%p217_p2), %vm262_vm0, %v260_v1, 0.0  ;;  %v264_v4 = vsel (!%p217_p2), %vm262_vm0, %v261_v2, 0.0  ;;  %p248_p3 = scmp.lt.s32.totalorder (!%p217_p2), %s1549_s28, 7  ;;  %v1778_v25 = vmov (!%p217_p2), 1966171168  }
   0x9   : > { %v265_v6 = vadd.f32 (!%p217_p2), %v264_v4, %v263_v3  ;;  %v1129_v7 = vand.u32 (!%p217_p2), 127, %v280_v5  ;;  %v1836_v9 = vshrl.u32 (!%p217_p2), %v280_v5, 7  ;;  %v278_v26 = vunpack.c.l.s4 (!%p217_p2), %v1778_v25  ;;  %v462_v36 = vld [vmem:[%s2667_s4] sm:$0x1f] (!%p217_p2) }
   0xa   : > { %v1779_v28 = vmov (!%p217_p2), 0   ;;  %v273_v40 = vld [vmem:[%s2664_s1] sm:$0x1] (!%p217_p2)  ;;  %vm405_vm1 = vcmask (!%p217_p2), 1040384   ;;  %vm712_vm2 = vcmask (!%p217_p2), 64514   ;;  %vm716_vm3 = vcmask (!%p217_p2), 64512  }
   0xb   : > { %v1834_v8 = vmul.f32 (!%p217_p2), 0.00390625, %v265_v6  ;;  %v1130_v10 = vadd.s32 (!%p217_p2), 2, %v1129_v7  ;;  %v1135_v11 = vadd.s32 (!%p217_p2), 4294967290, %v1129_v7  ;;  %v1142_v16 = vadd.s32 (!%p217_p2), 4294967282, %v1129_v7  ;;  %1607 = vset.pattern.permute.xlu0 (!%p217_p2), %v1779_v28  ;;  %v294_v60 = vld [vmem:[%s2665_s2] sm:$0x1] (!%p217_p2) }
   0xc   : > { %v1149_v17 = vadd.s32 (!%p217_p2), 4294967274, %v1129_v7  ;;  %v1156_v18 = vadd.s32 (!%p217_p2), 4294967266, %v1129_v7  ;;  %v279_v27 = vunpack.c.0.s8 (!%p217_p2), %v278_v26  ;;  %v489_v32 = vsub.s32 (!%p217_p2), 2, %v1836_v9 }
   0xd   : > { %v267_v12 = vmul.f32 (!%p217_p2), %v1834_v8, %v1834_v8  ;;  %v1841_v13 = vsub.s32 (!%p217_p2), %v1130_v10, %v1836_v9  ;;  %v1844_v14 = vsub.s32 (!%p217_p2), %v1135_v11, %v1836_v9  ;;  %v1848_v20 = vsub.s32 (!%p217_p2), %v1142_v16, %v1836_v9 }
   0xe   : > { %v1851_v21 = vsub.s32 (!%p217_p2), %v1149_v17, %v1836_v9  ;;  %v1854_v22 = vsub.s32 (!%p217_p2), %v1156_v18, %v1836_v9  ;;  %v282_v29 = vsub.s32 (!%p217_p2), %v279_v27, %v1836_v9  ;;  %v776_v33 = vsub.s32 (!%p217_p2), 1, %v1836_v9 }
   0xf   : > { %v269_v15 = vrot.slane %v267_v12, 7  ;;  %s2674_s28 = smov (!%p248_p3, %s1549_s28), 7  ;;  %v800_v34 = vsub.s32 3, %v1836_v9  ;;  %v332_v35 = vsub.s32 0, %v1836_v9  ;;  %v1875_v44 = vrot.slane %v462_v36, %v489_v32 }
  0x10   : > { %s1557_s29 = sshll.u32 %s2674_s28, 4  ;;  %v1877_v45 = vrot.slane %v462_v36, %v776_v33  ;;  %v609_v53 = vsub.s32 4, %v1836_v9  ;;  %vm643_vm4 = vcmask 1041408   ;;  %vm1140_vm5 = vcmask 113712   ;;  %s1553_s15 = sshll.u32 %s2674_s28, 1 }
  0x11   : > { %v271_v19 = vsub.f32 %v1834_v8, %v269_v15  ;;  %s252_s8 = scalar_lea.vmem %s2666_s3, %s1557_s29  ;;  %v1873_v41 = vrot.slane %v462_v36, %v332_v35  ;;  %v1879_v46 = vrot.slane %v462_v36, %v800_v34  ;;  %vm1147_vm6 = vcmask 179312   ;;  %s2537_s18 = scalar_lea.vmem %s2669_s6, %s1553_s15 }
  0x12   : > { %v1591_v38 = vld [vmem:[%s252_s8 + $0x10] sm:$0xff]   ;;  %v1593_v39 = vld [vmem:[%s252_s8 + $0x20] sm:$0xff]   ;;  %v1590_v48 = vld [vmem:[%s252_s8 + $0x8] sm:$0xff]   ;;  %v1892_v5 = vrot.slane %v462_v36, %v609_v53  ;;  %vm1154_vm7 = vcmask 244912   ;;  %vm1161_vm8 = vcmask 310512   ;;  %vm1239_vm9 = vcmask 256002  }
  0x13   : > { %v272_v23 = vmax.f32 %v271_v19, 0.0  ;;  %v1595_v42 = vld [vmem:[%s252_s8 + $0x30] sm:$0xff]   ;;  %v1559_v47 = vld [vmem:[%s252_s8] sm:$0xff]   ;;  %v1568_v49 = vunpack.c.l.bf16 %v1591_v38  ;;  %v1569_v50 = vunpack.c.h.bf16 %v1591_v38  ;;  %v1576_v51 = vunpack.c.l.bf16 %v1593_v39  ;;  %v1592_v52 = vld [vmem:[%s252_s8 + $0x18] sm:$0xff]  }
  0x14   : > { %v1577_v55 = vunpack.c.h.bf16 %v1593_v39  ;;  %v1584_v56 = vunpack.c.l.bf16 %v1595_v42  ;;  %v1585_v57 = vunpack.c.h.bf16 %v1595_v42  ;;  %v1882_v58 = vld [vmem:[%s252_s8 + $0x28] sm:$0xff]   ;;  %v1884_v59 = vld [vmem:[%s252_s8 + $0x38] sm:$0xff]   ;;  %v1560_v61 = vunpack.c.l.bf16 %v1559_v47 }
  0x15   : > { %v274_v24 = vadd.f32 1e-05, %v272_v23  ;;  %v1561_v62 = vunpack.c.h.bf16 %v1559_v47  ;;  %v1564_v63 = vunpack.c.l.bf16 %v1590_v48  ;;  %v1565_v0 = vunpack.c.h.bf16 %v1590_v48 }
  0x16   : > { %v1572_v3 = vunpack.c.l.bf16 %v1592_v52  ;;  %v1573_v4 = vunpack.c.h.bf16 %v1592_v52  ;;  %v1580_v6 = vunpack.c.l.bf16 %v1882_v58  ;;  %v1588_v7 = vunpack.c.l.bf16 %v1884_v59 }
  0x17   : > { %1608 = vrsqrt.f32 %v274_v24 }
  0x21   : > { %v1609_v30 = vpop.eup %1608 }
  0x22   : > { %v283_v31 = vrot.slane %v1609_v30, %v282_v29 }
  0x24   : > { %v284_v37 = vcombine.high %v283_v31, %v283_v31 }
  0x26   : > { %v291_v43 = vrot.slane %v284_v37, %v282_v29 }
  0x28   : > { %v293_v54 = vmul.f32 %v291_v43, %v273_v40 }
  0x2a   : > { %v295_v1 = vmul.f32 %v293_v54, %v1834_v8  ;;  %v1890_v2 = vrot.slane %v293_v54, %v332_v35 }
  0x2c   : > { %v296_v10 = vsub.f32 %v294_v60, %v295_v1  ;;  %v339_v11 = vmul.f32 %v1568_v49, %v1890_v2  ;;  %v340_v12 = vmul.f32 %v1569_v50, %v1890_v2  ;;  %v343_v8 = vmul.f32 %v1576_v51, %v1890_v2 }
  0x2d   : > { %v347_v15 = vmul.f32 %v1584_v56, %v1890_v2  ;;  %v335_v16 = vmul.f32 %v1560_v61, %v1890_v2  ;;  %v336_v17 = vmul.f32 %v1561_v62, %v1890_v2  ;;  %v337_v18 = vmul.f32 %v1564_v63, %v1890_v2 }
  0x2e   : > { %v1904_v19 = vrot.slane %v296_v10, %v332_v35  ;;  %v338_v23 = vmul.f32 %v1565_v0, %v1890_v2  ;;  %v341_v24 = vmul.f32 %v1572_v3, %v1890_v2  ;;  %v342_v25 = vmul.f32 %v1573_v4, %v1890_v2 }
  0x2f   : > { %v1910_v26 = vmul.f32 %v1577_v55, %v1890_v2  ;;  %v1913_v27 = vmul.f32 %v1580_v6, %v1890_v2  ;;  %v1916_v28 = vmul.f32 %v1585_v57, %v1890_v2  ;;  %v1919_v29 = vmul.f32 %v1588_v7, %v1890_v2 }
  0x30   : > { %v361_v30 = vadd.f32 %v1904_v19, %v339_v11  ;;  %v365_v31 = vadd.f32 %v1904_v19, %v343_v8  ;;  %v369_v32 = vadd.f32 %v1904_v19, %v347_v15  ;;  %v357_v33 = vadd.f32 %v1904_v19, %v335_v16 }
  0x31   : > { %v358_v34 = vadd.f32 %v1904_v19, %v336_v17  ;;  %v359_v35 = vadd.f32 %v1904_v19, %v337_v18  ;;  %v360_v36 = vadd.f32 %v1904_v19, %v338_v23  ;;  %v362_v37 = vadd.f32 %v1904_v19, %v340_v12 }
  0x32   : > { %v377_v38 = vmax.f32 %v361_v30, 0.0  ;;  %v381_v39 = vmax.f32 %v365_v31, 0.0  ;;  %v385_v40 = vmax.f32 %v369_v32, 0.0  ;;  %v373_v42 = vmax.f32 %v357_v33, 0.0 }
  0x33   : > { %v374_v43 = vmax.f32 %v358_v34, 0.0  ;;  %v375_v47 = vmax.f32 %v359_v35, 0.0  ;;  %v376_v48 = vmax.f32 %v360_v36, 0.0  ;;  %v363_v49 = vadd.f32 %v1904_v19, %v341_v24 }
  0x34   : > { %v1930_v50 = vrot.slane %v377_v38, 7  ;;  %v1932_v51 = vrot.slane %v381_v39, 7  ;;  %v1934_v52 = vrot.slane %v385_v40, 7  ;;  %v406_v53 = vrot.slane %v373_v42, 7 }
  0x35   : > { %v407_v54 = vrot.slane %v374_v43, 7  ;;  %v409_v55 = vrot.slane %v375_v47, 7  ;;  %v1936_v56 = vrot.slane %v376_v48, 7  ;;  %v364_v57 = vadd.f32 %v1904_v19, %v342_v25 }
  0x36   : > { %v1941_v60 = vsel %vm405_vm1, 0.0, %v1930_v50  ;;  %v1945_v61 = vsel %vm405_vm1, 0.0, %v1932_v51  ;;  %v1949_v62 = vsel %vm405_vm1, 0.0, %v1934_v52  ;;  %v454_v63 = vsel %vm405_vm1, 0.0, %v406_v53 }
  0x37   : > { %v783_v0 = vmul.f32 %v1877_v45, %v1941_v60  ;;  %v1956_v1 = vmul.f32 %v1879_v46, %v1941_v60  ;;  %v788_v3 = vmul.f32 %v1877_v45, %v1945_v61  ;;  %v1962_v4 = vmul.f32 %v1879_v46, %v1945_v61 }
  0x38   : > { %v793_v6 = vmul.f32 %v1877_v45, %v1949_v62  ;;  %v1968_v7 = vmul.f32 %v1879_v46, %v1949_v62  ;;  %v778_v10 = vmul.f32 %v1877_v45, %v454_v63  ;;  %v802_v11 = vmul.f32 %v1879_v46, %v454_v63 }
  0x39   : > { %v851_v12 = vrot.slane %v1956_v1, 7  ;;  %v860_v8 = vrot.slane %v1962_v4, 7  ;;  %v1975_v15 = vsel %vm405_vm1, %v407_v54, %v409_v55  ;;  %v1979_v16 = vsel %vm405_vm1, %v409_v55, %v1936_v56 }
  0x3a   : > { %v869_v17 = vrot.slane %v1968_v7, 7  ;;  %v842_v18 = vrot.slane %v802_v11, 7  ;;  %v781_v23 = vmul.f32 %v1877_v45, %v1979_v16  ;;  %v804_v24 = vmul.f32 %v1879_v46, %v1975_v15 }
  0x3b   : > { %v903_v25 = vadd.f32 %v851_v12, %v783_v0  ;;  %v908_v30 = vadd.f32 %v860_v8, %v788_v3  ;;  %v1992_v31 = vmul.f32 %v1879_v46, %v1979_v16  ;;  %v1995_v32 = vsel %vm405_vm1, %v406_v53, %v407_v54 }
  0x3c   : > { %v913_v33 = vadd.f32 %v869_v17, %v793_v6  ;;  %v898_v34 = vadd.f32 %v842_v18, %v778_v10  ;;  %v845_v35 = vrot.slane %v804_v24, 7  ;;  %v779_v36 = vmul.f32 %v1877_v45, %v1995_v32 }
  0x3d   : > { %v933_v38 = vsel %vm712_vm2, %v903_v25, 0.0  ;;  %v948_v39 = vsel %vm712_vm2, %v908_v30, 0.0  ;;  %v847_v40 = vrot.slane %v1992_v31, 7  ;;  %v803_v42 = vmul.f32 %v1879_v46, %v1995_v32 }
  0x3e   : > { %934 = vadd.xlane.f32.xlu0 %v933_v38  ;;  %v963_v43 = vsel %vm712_vm2, %v913_v33, 0.0  ;;  %v918_v47 = vsel %vm712_vm2, %v898_v34, 0.0  ;;  %v378_v48 = vmax.f32 %v362_v37, 0.0  ;;  %v379_v53 = vmax.f32 %v363_v49, 0.0 }
  0x3f   : > { %919 = vadd.xlane.f32.xlu1 %v918_v47  ;;  %v848_v54 = vsel %vm405_vm1, %v845_v35, %v847_v40  ;;  %v843_v55 = vrot.slane %v803_v42, 7  ;;  %v380_v0 = vmax.f32 %v364_v57, 0.0  ;;  %v780_v3 = vmul.f32 %v1877_v45, %v1975_v15 }
  0x40   : > { %v901_v6 = vadd.f32 %v848_v54, %v781_v23  ;;  %v414_v10 = vrot.slane %v378_v48, 7  ;;  %v416_v11 = vrot.slane %v379_v53, 7  ;;  %v467_v24 = vmul.f32 %v1873_v41, %v454_v63 }
  0x41   : > { %v844_v25 = vsel %vm405_vm1, %v842_v18, %v843_v55  ;;  %v2015_v30 = vrot.slane %v380_v0, 7  ;;  %v846_v37 = vsel %vm405_vm1, %v843_v55, %v845_v35  ;;  %v491_v49 = vmul.f32 %v1875_v44, %v454_v63 }
  0x42   : > { %949 = vadd.xlane.f32.xlu0 %v948_v39  ;;  %v927_v33 = vsel %vm716_vm3, %v901_v6, 0.0  ;;  %v899_v57 = vadd.f32 %v844_v25, %v779_v36  ;;  %v2021_v34 = vsel %vm405_vm1, %v414_v10, %v416_v11  ;;  %v900_v23 = vadd.f32 %v846_v37, %v780_v3 }
  0x43   : > { %v2025_v38 = vsel %vm405_vm1, %v416_v11, %v2015_v30  ;;  %v809_v18 = vmul.f32 %v1879_v46, %v2021_v34  ;;  %v531_v42 = vrot.slane %v491_v49, 7  ;;  %v611_v35 = vmul.f32 %v1892_v5, %v454_v63 }
  0x44   : > { %v921_v47 = vsel %vm716_vm3, %v899_v57, 0.0  ;;  %v786_v39 = vmul.f32 %v1877_v45, %v2025_v38  ;;  %v2035_v36 = vmul.f32 %v1879_v46, %v2025_v38  ;;  %v924_v48 = vsel %vm716_vm3, %v900_v23, 0.0 }
  0x45   : > { %922 = vadd.xlane.f32.xlu1 %v921_v47  ;;  %v854_v53 = vrot.slane %v809_v18, 7  ;;  %v587_v54 = vadd.f32 %v531_v42, %v467_v24  ;;  %v644_v55 = vrot.slane %v611_v35, 6  ;;  %v2040_v0 = vsel %vm405_vm1, %v1930_v50, %v414_v10 }
  0x46   : > { %964 = vadd.xlane.f32.xlu0 %v963_v43  ;;  %v2670_v63 = vrot.slane %v2035_v36, 7  ;;  %v784_v3 = vmul.f32 %v1877_v45, %v2040_v0  ;;  %v808_v6 = vmul.f32 %v1879_v46, %v2040_v0  ;;  %v477_v11 = vmul.f32 %v1873_v41, %v1945_v61 }
  0x47   : > { %v692_v25 = vadd.f32 %v644_v55, %v587_v54  ;;  %v2051_v24 = vmul.f32 %v1875_v44, %v1945_v61  ;;  %v2055_v50 = vmul.f32 %v1892_v5, %v1945_v61  ;;  %v785_v43 = vmul.f32 %v1877_v45, %v2021_v34 }
  0x48   : > { %v857_v10 = vsel %vm405_vm1, %v854_v53, %v2670_v63  ;;  %v852_v37 = vrot.slane %v808_v6, 7  ;;  %v366_v49 = vadd.f32 %v1904_v19, %v1910_v26  ;;  %v468_v57 = vmul.f32 %v1873_v41, %v1995_v32 }
  0x49   : > { %v906_v23 = vadd.f32 %v857_v10, %v786_v39  ;;  %925 = vadd.xlane.f32.xlu1 %v924_v48  ;;  %v713_v18 = vsel %vm712_vm2, %v692_v25, 0.0  ;;  %v549_v61 = vrot.slane %v2051_v24, 7  ;;  %v658_v35 = vrot.slane %v2055_v50, 6 }
  0x4a   : > { %928 = vadd.xlane.f32.xlu0 %v927_v33  ;;  %v853_v47 = vsel %vm405_vm1, %v851_v12, %v852_v37  ;;  %v855_v54 = vsel %vm405_vm1, %v852_v37, %v854_v53  ;;  %v382_v6 = vmax.f32 %v366_v49, 0.0  ;;  %v492_v26 = vmul.f32 %v1875_v44, %v1995_v32 }
  0x4b   : > { %v942_v39 = vsel %vm716_vm3, %v906_v23, 0.0  ;;  %v904_v48 = vadd.f32 %v853_v47, %v784_v3  ;;  %v597_v25 = vadd.f32 %v549_v61, %v477_v11  ;;  %v905_v10 = vadd.f32 %v855_v54, %v785_v43 }
  0x4c   : > { %v421_v63 = vrot.slane %v382_v6, 7  ;;  %v532_v9 = vrot.slane %v492_v26, 7  ;;  %v612_v1 = vmul.f32 %v1892_v5, %v1995_v32  ;;  %v2082_v12 = vsel %vm405_vm1, %v1936_v56, 0.0 }
  0x4d   : > { %v936_v33 = vsel %vm716_vm3, %v904_v48, 0.0  ;;  %v702_v53 = vadd.f32 %v658_v35, %v597_v25  ;;  %v939_v3 = vsel %vm716_vm3, %v905_v10, 0.0  ;;  %v782_v11 = vmul.f32 %v1877_v45, %v2082_v12 }
  0x4e   : > { %943 = vadd.xlane.f32.xlu0 %v942_v39  ;;  %937 = vadd.xlane.f32.xlu1 %v936_v33  ;;  %v2092_v43 = vsel %vm405_vm1, %v1932_v51, %v421_v63  ;;  %v533_v32 = vsel %vm405_vm1, %v531_v42, %v532_v9  ;;  %v645_v56 = vrot.slane %v612_v1, 6  ;;  %v806_v37 = vmul.f32 %v1879_v46, %v2082_v12 }
  0x4f   : > { %v744_v49 = vsel %vm712_vm2, %v702_v53, 0.0  ;;  %v789_v23 = vmul.f32 %v1877_v45, %v2092_v43  ;;  %v813_v47 = vmul.f32 %v1879_v46, %v2092_v43  ;;  %v588_v54 = vadd.f32 %v533_v32, %v468_v57 }
  0x50   : > { %v646_v6 = vsel %vm643_vm4, %v644_v55, %v645_v56  ;;  %v849_v26 = vrot.slane %v806_v37, 7  ;;  %v469_v51 = vmul.f32 %v1873_v41, %v1975_v15  ;;  %v493_v42 = vmul.f32 %v1875_v44, %v1975_v15 }
  0x51   : > { %v861_v39 = vrot.slane %v813_v47, 7  ;;  %v693_v48 = vadd.f32 %v646_v6, %v588_v54  ;;  %v613_v25 = vmul.f32 %v1892_v5, %v1975_v15  ;;  %v367_v10 = vadd.f32 %v1904_v19, %v1913_v27 }
  0x52   : > { %714 = vadd.xlane.f32.xlu0 %v713_v18  ;;  %940 = vadd.xlane.f32.xlu1 %v939_v3  ;;  %v850_v55 = vsel %vm405_vm1, %v847_v40, %v849_v26  ;;  %v534_v57 = vrot.slane %v493_v42, 7  ;;  %v473_v1 = vmul.f32 %v1873_v41, %v2040_v0  ;;  %v496_v33 = vmul.f32 %v1875_v44, %v1941_v60 }
  0x53   : > { %v862_v15 = vsel %vm405_vm1, %v860_v8, %v861_v39  ;;  %v717_v53 = vsel %vm716_vm3, %v693_v48, 0.0  ;;  %v902_v27 = vadd.f32 %v850_v55, %v782_v11  ;;  %v647_v18 = vrot.slane %v613_v25, 6 }
  0x54   : > { %v909_v3 = vadd.f32 %v862_v15, %v789_v23  ;;  %v535_v31 = vsel %vm405_vm1, %v532_v9, %v534_v57  ;;  %v383_v32 = vmax.f32 %v367_v10, 0.0  ;;  %v2125_v40 = vmul.f32 %v1875_v44, %v2040_v0 }
  0x55   : > { %v930_v37 = vsel %vm262_vm0, %v902_v27, 0.0  ;;  %v589_v47 = vadd.f32 %v535_v31, %v469_v51  ;;  %v648_v54 = vsel %vm643_vm4, %v645_v56, %v647_v18  ;;  %v540_v4 = vrot.slane %v496_v33, 7 }
  0x56   : > { %745 = vadd.xlane.f32.xlu0 %v744_v49  ;;  %v951_v8 = vsel %vm716_vm3, %v909_v3, 0.0  ;;  %v2130_v6 = vrot.slane %v383_v32, 7  ;;  %v541_v11 = vrot.slane %v2125_v40, 7  ;;  %v615_v9 = vmul.f32 %v1892_v5, %v1941_v60 }
  0x57   : > { %952 = vadd.xlane.f32.xlu1 %v951_v8  ;;  %v694_v23 = vadd.f32 %v648_v54, %v589_v47  ;;  %v2137_v26 = vmul.f32 %v1892_v5, %v2040_v0  ;;  %v370_v56 = vadd.f32 %v1904_v19, %v1916_v28  ;;  %v470_v49 = vmul.f32 %v1873_v41, %v1979_v16 }
  0x58   : > { %v424_v51 = vsel %vm405_vm1, %v421_v63, %v2130_v6  ;;  %v542_v42 = vsel %vm405_vm1, %v540_v4, %v541_v11  ;;  %v651_v48 = vrot.slane %v615_v9, 6  ;;  %v494_v25 = vmul.f32 %v1875_v44, %v1979_v16 }
  0x59   : > { %v720_v0 = vsel %vm716_vm3, %v694_v23, 0.0  ;;  %v790_v10 = vmul.f32 %v1877_v45, %v424_v51  ;;  %v2153_v28 = vmul.f32 %v1879_v46, %v424_v51  ;;  %v593_v55 = vadd.f32 %v542_v42, %v473_v1 }
  0x5a   : > { %718 = vadd.xlane.f32.xlu0 %v717_v53  ;;  %v652_v33 = vrot.slane %v2137_v26, 6  ;;  %v386_v63 = vmax.f32 %v370_v56, 0.0  ;;  %v536_v15 = vrot.slane %v494_v25, 7  ;;  %v614_v27 = vmul.f32 %v1892_v5, %v1979_v16 }
  0x5b   : > { %931 = vadd.xlane.f32.xlu1 %v930_v37  ;;  %v863_v3 = vrot.slane %v2153_v28, 7  ;;  %v472_v31 = vmul.f32 %v1873_v41, %v1941_v60  ;;  %v471_v32 = vmul.f32 %v1873_v41, %v2082_v12  ;;  %v495_v1 = vmul.f32 %v1875_v44, %v2082_v12 }
  0x5c   : > { %v653_v53 = vsel %vm643_vm4, %v651_v48, %v652_v33  ;;  %v2168_v47 = vrot.slane %v386_v63, 7  ;;  %v537_v16 = vsel %vm405_vm1, %v534_v57, %v536_v15  ;;  %v649_v37 = vrot.slane %v614_v27, 6 }
  0x5d   : > { %v864_v54 = vsel %vm405_vm1, %v861_v39, %v863_v3  ;;  %v698_v60 = vadd.f32 %v653_v53, %v593_v55  ;;  %v590_v8 = vadd.f32 %v537_v16, %v470_v49  ;;  %v592_v9 = vadd.f32 %v540_v4, %v472_v31 }
  0x5e   : > { %721 = vadd.xlane.f32.xlu0 %v720_v0  ;;  %v910_v23 = vadd.f32 %v864_v54, %v790_v10  ;;  %v429_v12 = vsel %vm405_vm1, %v1934_v52, %v2168_v47  ;;  %v650_v56 = vsel %vm643_vm4, %v647_v18, %v649_v37  ;;  %v538_v42 = vrot.slane %v495_v1, 7 }
  0x5f   : > { %v732_v25 = vsel %vm716_vm3, %v698_v60, 0.0  ;;  %v794_v57 = vmul.f32 %v1877_v45, %v429_v12  ;;  %v2181_v63 = vmul.f32 %v1879_v46, %v429_v12  ;;  %v695_v39 = vadd.f32 %v650_v56, %v590_v8 }
  0x60   : > { %v954_v49 = vsel %vm716_vm3, %v910_v23, 0.0  ;;  %v697_v4 = vadd.f32 %v651_v48, %v592_v9  ;;  %v539_v0 = vsel %vm405_vm1, %v536_v15, %v538_v42  ;;  %v482_v10 = vmul.f32 %v1873_v41, %v1949_v62 }
  0x61   : > { %955 = vadd.xlane.f32.xlu1 %v954_v49  ;;  %v870_v52 = vrot.slane %v2181_v63, 7  ;;  %v723_v18 = vsel %vm716_vm3, %v695_v39, 0.0  ;;  %v591_v55 = vadd.f32 %v539_v0, %v471_v32  ;;  %v506_v27 = vmul.f32 %v1875_v44, %v1949_v62 }
  0x62   : > { %733 = vadd.xlane.f32.xlu0 %v732_v25  ;;  %v729_v31 = vsel %vm712_vm2, %v697_v4, 0.0  ;;  %v623_v48 = vmul.f32 %v1892_v5, %v1949_v62  ;;  %v479_v15 = vmul.f32 %v1873_v41, %v424_v51  ;;  %v502_v1 = vmul.f32 %v1875_v44, %v2092_v43 }
  0x63   : > { %v871_v32 = vsel %vm405_vm1, %v869_v17, %v870_v52  ;;  %v696_v53 = vadd.f32 %v649_v37, %v591_v55  ;;  %v558_v16 = vrot.slane %v506_v27, 7  ;;  %v2203_v54 = vmul.f32 %v1875_v44, %v424_v51 }
  0x64   : > { %v914_v60 = vadd.f32 %v871_v32, %v794_v57  ;;  %v665_v8 = vrot.slane %v623_v48, 6  ;;  %v550_v9 = vrot.slane %v502_v1, 7  ;;  %v620_v62 = vmul.f32 %v1892_v5, %v2092_v43 }
  0x65   : > { %v726_v23 = vsel %vm262_vm0, %v696_v53, 0.0  ;;  %v602_v56 = vadd.f32 %v558_v16, %v482_v10  ;;  %v552_v42 = vrot.slane %v2203_v54, 7  ;;  %v2210_v7 = vmul.f32 %v1892_v5, %v424_v51 }
  0x66   : > { %v966_v17 = vsel %vm716_vm3, %v914_v60, 0.0  ;;  %724 = vadd.xlane.f32.xlu0 %v723_v18  ;;  %v659_v37 = vrot.slane %v620_v62, 6  ;;  %v474_v25 = vmul.f32 %v1873_v41, %v2021_v34  ;;  %v498_v57 = vmul.f32 %v1875_v44, %v2021_v34 }
  0x67   : > { %967 = vadd.xlane.f32.xlu1 %v966_v17  ;;  %v707_v39 = vadd.f32 %v665_v8, %v602_v56  ;;  %v553_v49 = vsel %vm405_vm1, %v550_v9, %v552_v42  ;;  %v661_v4 = vrot.slane %v2210_v7, 6  ;;  %v617_v51 = vmul.f32 %v1892_v5, %v2021_v34 }
  0x68   : > { %v599_v0 = vadd.f32 %v553_v49, %v479_v15  ;;  %v543_v10 = vrot.slane %v498_v57, 7  ;;  %v483_v18 = vmul.f32 %v1873_v41, %v429_v12  ;;  %v2225_v55 = vmul.f32 %v1875_v44, %v429_v12 }
  0x69   : > { %v759_v27 = vsel %vm712_vm2, %v707_v39, 0.0  ;;  %v662_v48 = vsel %vm643_vm4, %v659_v37, %v661_v4  ;;  %v654_v1 = vrot.slane %v617_v51, 6  ;;  %v2232_v32 = vmul.f32 %v1892_v5, %v429_v12 }
  0x6a   : > { %727 = vadd.xlane.f32.xlu0 %v726_v23  ;;  %v704_v53 = vadd.f32 %v662_v48, %v599_v0  ;;  %v544_v34 = vsel %vm405_vm1, %v541_v11, %v543_v10  ;;  %v559_v15 = vrot.slane %v2225_v55, 7  ;;  %v478_v60 = vmul.f32 %v1873_v41, %v2092_v43 }
  0x6b   : > { %730 = vadd.xlane.f32.xlu1 %v729_v31  ;;  %v594_v62 = vadd.f32 %v544_v34, %v474_v25  ;;  %v655_v56 = vsel %vm643_vm4, %v652_v33, %v654_v1  ;;  %v666_v12 = vrot.slane %v2232_v32, 6  ;;  %v551_v23 = vsel %vm405_vm1, %v549_v61, %v550_v9 }
  0x6c   : > { %v750_v40 = vsel %vm716_vm3, %v704_v53, 0.0  ;;  %v560_v11 = vsel %vm405_vm1, %v558_v16, %v559_v15  ;;  %v598_v17 = vadd.f32 %v551_v23, %v478_v60  ;;  %v660_v43 = vsel %vm643_vm4, %v658_v35, %v659_v37 }
  0x6d   : > { %v699_v26 = vadd.f32 %v655_v56, %v594_v62  ;;  %v603_v31 = vadd.f32 %v560_v11, %v483_v18  ;;  %v667_v33 = vsel %vm643_vm4, %v665_v8, %v666_v12  ;;  %v459_v24 = vsel %vm405_vm1, %v2015_v30, 0.0 }
  0x6e   : > { %751 = vadd.xlane.f32.xlu0 %v750_v40  ;;  %v703_v61 = vadd.f32 %v660_v43, %v598_v17  ;;  %v499_v9 = vmul.f32 %v1875_v44, %v2025_v38  ;;  %v500_v16 = vmul.f32 %v1875_v44, %v459_v24  ;;  %v1589_v50 = vunpack.c.h.bf16 %v1884_v59 }
  0x6f   : > { %760 = vadd.xlane.f32.xlu1 %v759_v27  ;;  %v708_v35 = vadd.f32 %v667_v33, %v603_v31  ;;  %v476_v37 = vmul.f32 %v1873_v41, %v459_v24  ;;  %v618_v25 = vmul.f32 %v1892_v5, %v2025_v38  ;;  %v475_v8 = vmul.f32 %v1873_v41, %v2025_v38 }
  0x70   : > { %v735_v30 = vsel %vm716_vm3, %v699_v26, 0.0  ;;  %v545_v57 = vrot.slane %v499_v9, 7  ;;  %v547_v39 = vrot.slane %v500_v16, 7  ;;  %v371_v49 = vadd.f32 %v1904_v19, %v1919_v29 }
  0x71   : > { %v762_v51 = vsel %vm716_vm3, %v708_v35, 0.0  ;;  %v656_v59 = vrot.slane %v618_v25, 6  ;;  %v2671_v0 = vunpack.c.h.bf16 %v1882_v58  ;;  %v811_v53 = vmul.f32 %v1879_v46, %v459_v24 }
  0x72   : > { %763 = vadd.xlane.f32.xlu0 %v762_v51  ;;  %v548_v27 = vsel %vm405_vm1, %v545_v57, %v547_v39  ;;  %v546_v48 = vsel %vm405_vm1, %v543_v10, %v545_v57  ;;  %v387_v38 = vmax.f32 %v371_v49, 0.0  ;;  %v747_v56 = vsel %vm716_vm3, %v703_v61, 0.0 }
  0x73   : > { %v346_v18 = vmul.f32 %v2671_v0, %v1890_v2  ;;  %736 = vadd.xlane.f32.xlu1 %v735_v30  ;;  %v596_v34 = vadd.f32 %v548_v27, %v476_v37  ;;  %v595_v60 = vadd.f32 %v546_v48, %v475_v8  ;;  %v657_v29 = vsel %vm643_vm4, %v654_v1, %v656_v59 }
  0x74   : > { %v2281_v23 = vrot.slane %v387_v38, 7  ;;  %v858_v58 = vrot.slane %v811_v53, 7  ;;  %v350_v40 = vmul.f32 %v1589_v50, %v1890_v2  ;;  %v787_v43 = vmul.f32 %v1877_v45, %v459_v24 }
  0x75   : > { %v368_v62 = vadd.f32 %v1904_v19, %v346_v18  ;;  %v701_v11 = vadd.f32 %v656_v59, %v596_v34  ;;  %v700_v17 = vadd.f32 %v657_v29, %v595_v60  ;;  %v2672_v1 = vrot.slane %v2035_v36, 7 }
  0x76   : > { %v431_v26 = vsel %vm405_vm1, %v2168_v47, %v2281_v23  ;;  %v372_v2 = vadd.f32 %v1904_v19, %v350_v40 }
  0x77   : > { %v384_v10 = vmax.f32 %v368_v62, 0.0  ;;  %v859_v31 = vsel %vm405_vm1, %v2672_v1, %v858_v58  ;;  %748 = vadd.xlane.f32.xlu1 %v747_v56  ;;  %v741_v33 = vsel %vm262_vm0, %v701_v11, 0.0  ;;  %v2293_v61 = vmul.f32 %v1875_v44, %v431_v26 }
  0x78   : > { %742 = vadd.xlane.f32.xlu0 %v741_v33  ;;  %v738_v9 = vsel %vm716_vm3, %v700_v17, 0.0  ;;  %v484_v24 = vmul.f32 %v1873_v41, %v431_v26  ;;  %v2299_v16 = vmul.f32 %v1892_v5, %v431_v26  ;;  %v907_v50 = vadd.f32 %v859_v31, %v787_v43 }
  0x79   : > { %v425_v47 = vrot.slane %v384_v10, 7  ;;  %v561_v36 = vrot.slane %v2293_v61, 7  ;;  %v2307_v19 = vmul.f32 %v1879_v46, %v431_v26  ;;  %v388_v39 = vmax.f32 %v372_v2, 0.0 }
  0x7a   : > { %v668_v35 = vrot.slane %v2299_v16, 6  ;;  %v795_v58 = vmul.f32 %v1877_v45, %v431_v26 }
  0x7b   : > { %v426_v37 = vsel %vm405_vm1, %v2130_v6, %v425_v47  ;;  %v460_v25 = vsel %vm405_vm1, %v425_v47, 0.0  ;;  %739 = vadd.xlane.f32.xlu1 %v738_v9  ;;  %v562_v8 = vsel %vm405_vm1, %v559_v15, %v561_v36  ;;  %v872_v53 = vrot.slane %v2307_v19, 7 }
  0x7c   : > { %v504_v30 = vmul.f32 %v1875_v44, %v426_v37  ;;  %v622_v57 = vmul.f32 %v1892_v5, %v426_v37  ;;  %v604_v49 = vadd.f32 %v562_v8, %v484_v24  ;;  %v669_v6 = vsel %vm643_vm4, %v666_v12, %v668_v35 }
  0x7d   : > { %v480_v51 = vmul.f32 %v1873_v41, %v426_v37  ;;  %v815_v59 = vmul.f32 %v1879_v46, %v426_v37  ;;  %v791_v15 = vmul.f32 %v1877_v45, %v426_v37  ;;  %v505_v18 = vmul.f32 %v1875_v44, %v460_v25 }
  0x7e   : > { %v554_v0 = vrot.slane %v504_v30, 7  ;;  %v663_v55 = vrot.slane %v622_v57, 6  ;;  %v709_v27 = vadd.f32 %v669_v6, %v604_v49  ;;  %v481_v38 = vmul.f32 %v1873_v41, %v460_v25 }
  0x7f   : > { %v865_v48 = vrot.slane %v815_v59, 7  ;;  %v556_v34 = vrot.slane %v505_v18, 7  ;;  %v816_v60 = vmul.f32 %v1879_v46, %v460_v25  ;;  %v873_v7 = vsel %vm405_vm1, %v870_v52, %v872_v53 }
  0x80   : > { %v555_v32 = vsel %vm405_vm1, %v552_v42, %v554_v0  ;;  %v664_v12 = vsel %vm643_vm4, %v661_v4, %v663_v55  ;;  %v765_v29 = vsel %vm716_vm3, %v709_v27, 0.0  ;;  %v792_v17 = vmul.f32 %v1877_v45, %v460_v25 }
  0x81   : > { %v600_v62 = vadd.f32 %v555_v32, %v480_v51  ;;  %v866_v56 = vsel %vm405_vm1, %v863_v3, %v865_v48  ;;  %766 = vadd.xlane.f32.xlu0 %v765_v29  ;;  %v557_v42 = vsel %vm405_vm1, %v554_v0, %v556_v34  ;;  %v867_v4 = vrot.slane %v816_v60, 7 }
  0x82   : > { %v911_v54 = vadd.f32 %v866_v56, %v791_v15  ;;  %v601_v11 = vadd.f32 %v557_v42, %v481_v38  ;;  %v432_v10 = vrot.slane %v388_v39, 7  ;;  %v945_v3 = vsel %vm262_vm0, %v907_v50, 0.0 }
  0x83   : > { %v705_v40 = vadd.f32 %v664_v12, %v600_v62  ;;  %v868_v43 = vsel %vm405_vm1, %v865_v48, %v867_v4  ;;  %v915_v31 = vadd.f32 %v873_v7, %v795_v58 }
  0x84   : > { %v957_v28 = vsel %vm716_vm3, %v911_v54, 0.0  ;;  %v706_v1 = vadd.f32 %v663_v55, %v601_v11  ;;  %v433_v63 = vsel %vm405_vm1, %v2281_v23, %v432_v10  ;;  %v461_v9 = vsel %vm405_vm1, %v432_v10, 0.0 }
  0x85   : > { %v753_v26 = vsel %vm716_vm3, %v705_v40, 0.0  ;;  %958 = vadd.xlane.f32.xlu0 %v957_v28  ;;  %v485_v52 = vmul.f32 %v1873_v41, %v433_v63  ;;  %v509_v33 = vmul.f32 %v1875_v44, %v433_v63  ;;  %v626_v2 = vmul.f32 %v1892_v5, %v433_v63 }
  0x86   : > { %754 = vadd.xlane.f32.xlu1 %v753_v26  ;;  %v756_v24 = vsel %vm262_vm0, %v706_v1, 0.0  ;;  %v912_v47 = vadd.f32 %v868_v43, %v792_v17  ;;  %v486_v50 = vmul.f32 %v1873_v41, %v461_v9  ;;  %v510_v37 = vmul.f32 %v1875_v44, %v461_v9 }
  0x87   : > { %v563_v25 = vrot.slane %v509_v33, 7  ;;  %v670_v19 = vrot.slane %v626_v2, 6  ;;  %v820_v23 = vmul.f32 %v1879_v46, %v433_v63  ;;  %v821_v30 = vmul.f32 %v1879_v46, %v461_v9 }
  0x88   : > { %v565_v8 = vrot.slane %v510_v37, 7  ;;  %v969_v5 = vsel %vm716_vm3, %v915_v31, 0.0  ;;  %v960_v39 = vsel %vm262_vm0, %v912_v47, 0.0  ;;  %v796_v46 = vmul.f32 %v1877_v45, %v433_v63 }
  0x89   : > { %757 = vadd.xlane.f32.xlu0 %v756_v24  ;;  %v564_v57 = vsel %vm405_vm1, %v561_v36, %v563_v25  ;;  %v671_v41 = vsel %vm643_vm4, %v668_v35, %v670_v19  ;;  %v874_v44 = vrot.slane %v820_v23, 7  ;;  %v876_v0 = vrot.slane %v821_v30, 7 }
  0x8a   : > { %946 = vadd.xlane.f32.xlu1 %v945_v3  ;;  %v605_v49 = vadd.f32 %v564_v57, %v485_v52  ;;  %v566_v6 = vsel %vm405_vm1, %v563_v25, %v565_v8  ;;  %v797_v35 = vmul.f32 %v1877_v45, %v461_v9 }
  0x8b   : > { %v606_v51 = vadd.f32 %v566_v6, %v486_v50  ;;  %v875_v59 = vsel %vm405_vm1, %v872_v53, %v874_v44  ;;  %v877_v18 = vsel %vm405_vm1, %v874_v44, %v876_v0  ;;  %v1554_v53 = vld [vmem:[#allocation2] ss:$0 sm:$0xff] }
  0x8c   : > { %v710_v55 = vadd.f32 %v671_v41, %v605_v49  ;;  %v916_v36 = vadd.f32 %v875_v59, %v796_v46  ;;  %v917_v48 = vadd.f32 %v877_v18, %v797_v35 }
  0x8d   : > { %961 = vadd.xlane.f32.xlu0 %v960_v39  ;;  %v711_v61 = vadd.f32 %v670_v19, %v606_v51 }
  0x8e   : > { %970 = vadd.xlane.f32.xlu1 %v969_v5  ;;  %v768_v16 = vsel %vm716_vm3, %v710_v55, 0.0  ;;  %v972_v27 = vsel %vm716_vm3, %v916_v36, 0.0  ;;  %v975_v38 = vsel %vm262_vm0, %v917_v48, 0.0 }
  0x8f   : > { %v771_v15 = vsel %vm262_vm0, %v711_v61, 0.0 }
  0x91   : > { %772 = vadd.xlane.f32.xlu0 %v771_v15 }
  0x92   : > { %769 = vadd.xlane.f32.xlu1 %v768_v16 }
  0x96   : > { %973 = vadd.xlane.f32.xlu1 %v972_v27 }
  0x9a   : > { %976 = vadd.xlane.f32.xlu1 %v975_v38 }
  0xa7   : > { %985 = vperm.xlu0 %1607, %v1554_v53  }
  0xcb   : > { %v2376_v32 = vpop.xlane.xlu0 %934 }
  0xcc   : > { %v2380_v45 = vpop.xlane.xlu1 %919 }
  0xcf   : > { %v2378_v12 = vpop.xlane.xlu0 %949 }
  0xd2   : > { %v2386_v29 = vpop.xlane.xlu1 %922 }
  0xd3   : > { %v2382_v34 = vpop.xlane.xlu0 %964 }
  0xd6   : > { %v2390_v56 = vpop.xlane.xlu1 %925 }
  0xd7   : > { %v2384_v60 = vpop.xlane.xlu0 %928 }
  0xdb   : > { %v2388_v62 = vpop.xlane.xlu0 %943  ;;  %v2392_v42 = vpop.xlane.xlu1 %937 }
  0xdf   : > { %v715_v58 = vpop.xlane.xlu0 %714  ;;  %v2394_v4 = vpop.xlane.xlu1 %940 }
  0xe3   : > { %v746_v54 = vpop.xlane.xlu0 %745 }
  0xe4   : > { %v2396_v17 = vpop.xlane.xlu1 %952 }
  0xe7   : > { %v719_v7 = vpop.xlane.xlu0 %718 }
  0xe8   : > { %v2398_v28 = vpop.xlane.xlu1 %931 }
  0xeb   : > { %v722_v40 = vpop.xlane.xlu0 %721 }
  0xee   : > { %v2400_v43 = vpop.xlane.xlu1 %955 }
  0xef   : > { %v734_v11 = vpop.xlane.xlu0 %733 }
  0xf3   : > { %v725_v10 = vpop.xlane.xlu0 %724 }
  0xf4   : > { %v2402_v1 = vpop.xlane.xlu1 %967 }
  0xf7   : > { %v728_v3 = vpop.xlane.xlu0 %727 }
  0xf8   : > { %v731_v63 = vpop.xlane.xlu1 %730 }
  0xfb   : > { %v752_v26 = vpop.xlane.xlu0 %751 }
  0xfc   : > { %v761_v33 = vpop.xlane.xlu1 %760 }
  0xff   : > { %v764_v31 = vpop.xlane.xlu0 %763 }
 0x100   : > { %v737_v24 = vpop.xlane.xlu1 %736 }
 0x104   : > { %v749_v50 = vpop.xlane.xlu1 %748 }
 0x105   : > { %v743_v52 = vpop.xlane.xlu0 %742 }
 0x108   : > { %v740_v25 = vpop.xlane.xlu1 %739 }
 0x10e   : > { %v767_v2 = vpop.xlane.xlu0 %766 }
 0x112   : > { %v2404_v9 = vpop.xlane.xlu0 %958 }
 0x113   : > { %v755_v23 = vpop.xlane.xlu1 %754 }
 0x116   : > { %v758_v47 = vpop.xlane.xlu0 %757 }
 0x117   : > { %v2415_v39 = vpop.xlane.xlu1 %946 }
 0x11a   : > { %v2406_v37 = vpop.xlane.xlu0 %961 }
 0x11b   : > { %v2423_v53 = vpop.xlane.xlu1 %970 }
 0x11e   : > { %v773_v19 = vpop.xlane.xlu0 %772 }
 0x126   : > { %v2408_v8 = vpop.permute.xlu0 %985 }
 0x127   : > { %v988_v30 = vadd.f32 %v2408_v8, %v715_v58  ;;  %v989_v5 = vadd.f32 %v2408_v8, %v719_v7  ;;  %v990_v57 = vadd.f32 %v2408_v8, %v722_v40  ;;  %v991_v41 = vadd.f32 %v2408_v8, %v725_v10 }
 0x128   : > { %v992_v44 = vadd.f32 %v2408_v8, %v728_v3  ;;  %v993_v49 = vadd.f32 %v2408_v8, %v731_v63  ;;  %v994_v6 = vadd.f32 %v2408_v8, %v734_v11  ;;  %v995_v0 = vadd.f32 %v2408_v8, %v737_v24 }
 0x129   : > { %v1008_v46 = vsub.f32 0.0, %v988_v30  ;;  %v1009_v51 = vsub.f32 0.0, %v989_v5  ;;  %v1010_v59 = vsub.f32 0.0, %v990_v57  ;;  %v1011_v55 = vsub.f32 0.0, %v991_v41 }
 0x12a   : > { %v996_v61 = vadd.f32 %v2408_v8, %v740_v25  ;;  %v1012_v16 = vsub.f32 0.0, %v992_v44  ;;  %v997_v36 = vadd.f32 %v2408_v8, %v743_v52  ;;  %v1013_v35 = vsub.f32 0.0, %v993_v49  ;;  %v770_v49 = vpop.xlane.xlu1 %769 }
 0x12b   : > { %v1014_v15 = vsub.f32 0.0, %v994_v6  ;;  %v998_v18 = vadd.f32 %v2408_v8, %v746_v54  ;;  %v1028_v27 = vmul.f32 1.442695, %v1008_v46  ;;  %v1030_v48 = vmul.f32 1.442695, %v1009_v51 }
 0x12c   : > { %v1032_v38 = vmul.f32 1.442695, %v1010_v59  ;;  %v999_v58 = vadd.f32 %v2408_v8, %v749_v50  ;;  %v1015_v7 = vsub.f32 0.0, %v995_v0  ;;  %v1034_v40 = vmul.f32 1.442695, %v1011_v55 }
 0x12d   : > { %v1000_v11 = vadd.f32 %v2408_v8, %v752_v26  ;;  %v1016_v10 = vsub.f32 0.0, %v996_v61  ;;  %1610 = vpow2.f32 %v1028_v27  ;;  %v1036_v3 = vmul.f32 1.442695, %v1012_v16 }
 0x12e   : > { %v1001_v63 = vadd.f32 %v2408_v8, %v755_v23  ;;  %v1017_v52 = vsub.f32 0.0, %v997_v36  ;;  %1612 = vpow2.f32 %v1030_v48  ;;  %v1038_v24 = vmul.f32 1.442695, %v1013_v35 }
 0x12f   : > { %v1002_v54 = vadd.f32 %v2408_v8, %v758_v47  ;;  %v1018_v25 = vsub.f32 0.0, %v998_v18  ;;  %1614 = vpow2.f32 %v1032_v38  ;;  %v1040_v30 = vmul.f32 1.442695, %v1014_v15 }
 0x130   : > { %v1003_v5 = vadd.f32 %v2408_v8, %v761_v33  ;;  %v1019_v50 = vsub.f32 0.0, %v999_v58  ;;  %1616 = vpow2.f32 %v1034_v40  ;;  %v1042_v57 = vmul.f32 1.442695, %v1015_v7 }
 0x131   : > { %v1004_v26 = vadd.f32 %v2408_v8, %v764_v31  ;;  %v1020_v41 = vsub.f32 0.0, %v1000_v11  ;;  %1618 = vpow2.f32 %v1036_v3  ;;  %v1044_v44 = vmul.f32 1.442695, %v1016_v10 }
 0x132   : > { %v1005_v23 = vadd.f32 %v2408_v8, %v767_v2  ;;  %v1021_v6 = vsub.f32 0.0, %v1001_v63  ;;  %1620 = vpow2.f32 %v1038_v24  ;;  %v1046_v46 = vmul.f32 1.442695, %v1017_v52  ;;  %v974_v63 = vpop.xlane.xlu1 %973 }
 0x133   : > { %v1006_v47 = vadd.f32 %v2408_v8, %v770_v49  ;;  %v1022_v51 = vsub.f32 0.0, %v1002_v54  ;;  %1622 = vpow2.f32 %v1040_v30  ;;  %v1048_v59 = vmul.f32 1.442695, %v1018_v25 }
 0x134   : > { %v1007_v33 = vadd.f32 %v2408_v8, %v773_v19  ;;  %v1023_v0 = vsub.f32 0.0, %v1003_v5  ;;  %1624 = vpow2.f32 %v1042_v57  ;;  %v1050_v55 = vmul.f32 1.442695, %v1019_v50 }
 0x135   : > { %v1024_v31 = vsub.f32 0.0, %v1004_v26  ;;  %1626 = vpow2.f32 %v1044_v44  ;;  %v1052_v61 = vmul.f32 1.442695, %v1020_v41  ;;  %v1025_v16 = vsub.f32 0.0, %v1005_v23 }
 0x136   : > { %1628 = vpow2.f32 %v1046_v46  ;;  %v1054_v36 = vmul.f32 1.442695, %v1021_v6  ;;  %v1026_v35 = vsub.f32 0.0, %v1006_v47  ;;  %v1056_v15 = vmul.f32 1.442695, %v1022_v51  ;;  %v977_v47 = vpop.xlane.xlu1 %976 }
 0x137   : > { %v1611_v2 = vpop.eup %1610  ;;  %1630 = vpow2.f32 %v1048_v59  ;;  %v1027_v27 = vsub.f32 0.0, %v1007_v33  ;;  %v1058_v48 = vmul.f32 1.442695, %v1023_v0  ;;  %v1060_v19 = vmul.f32 1.442695, %v1024_v31 }
 0x138   : > { %v1613_v18 = vpop.eup %1612  ;;  %1632 = vpow2.f32 %v1050_v55  ;;  %v1062_v7 = vmul.f32 1.442695, %v1025_v16  ;;  %v1064_v11 = vmul.f32 1.442695, %v1026_v35  ;;  %v2436_v10 = vadd.f32 %v2408_v8, %v2380_v45 }
 0x139   : > { %v1615_v38 = vpop.eup %1614  ;;  %1634 = vpow2.f32 %v1052_v61  ;;  %v1066_v52 = vmul.f32 1.442695, %v1027_v27  ;;  %v2440_v24 = vadd.f32 %v2408_v8, %v2386_v29  ;;  %v2444_v54 = vadd.f32 %v2408_v8, %v2390_v56 }
 0x13a   : > { %v1617_v58 = vpop.eup %1616  ;;  %1636 = vpow2.f32 %v1054_v36  ;;  %v1068_v30 = vadd.f32 1.0, %v1611_v2  ;;  %v2448_v5 = vadd.f32 %v2408_v8, %v2384_v60  ;;  %v2452_v45 = vadd.f32 %v2408_v8, %v2398_v28 }
 0x13b   : > { %v1619_v40 = vpop.eup %1618  ;;  %1638 = vpow2.f32 %v1056_v15  ;;  %v1069_v57 = vadd.f32 1.0, %v1613_v18  ;;  %v2456_v29 = vadd.f32 %v2408_v8, %v2376_v32  ;;  %v2460_v56 = vadd.f32 %v2408_v8, %v2392_v42 }
 0x13c   : > { %v1621_v3 = vpop.eup %1620  ;;  %1640 = vpow2.f32 %v1058_v48  ;;  %v1070_v41 = vadd.f32 1.0, %v1615_v38  ;;  %v2464_v60 = vadd.f32 %v2408_v8, %v2394_v4  ;;  %v2468_v28 = vadd.f32 %v2408_v8, %v2388_v62 }
 0x13d   : > { %v1623_v25 = vpop.eup %1622  ;;  %1642 = vpow2.f32 %v1060_v19  ;;  %v1071_v49 = vadd.f32 1.0, %v1617_v58  ;;  %v2472_v32 = vadd.f32 %v2408_v8, %v2415_v39  ;;  %v2476_v42 = vadd.f32 %v2408_v8, %v2378_v12 }
 0x13e   : > { %v1625_v50 = vpop.eup %1624  ;;  %1644 = vpow2.f32 %v1062_v7  ;;  %v1072_v6 = vadd.f32 1.0, %v1619_v40  ;;  %v2480_v4 = vadd.f32 %v2408_v8, %v2396_v17  ;;  %v2484_v62 = vadd.f32 %v2408_v8, %v2400_v43 }
 0x13f   : > { %v1627_v26 = vpop.eup %1626  ;;  %1646 = vpow2.f32 %v1064_v11  ;;  %v1073_v51 = vadd.f32 1.0, %v1621_v3  ;;  %v2488_v39 = vadd.f32 %v2408_v8, %v2404_v9  ;;  %v2492_v12 = vadd.f32 %v2408_v8, %v2406_v37 }
 0x140   : > { %v1629_v44 = vpop.eup %1628  ;;  %1648 = vpow2.f32 %v1066_v52  ;;  %v1074_v33 = vadd.f32 1.0, %v1623_v25  ;;  %v2496_v17 = vadd.f32 %v2408_v8, %v2382_v34  ;;  %v2500_v43 = vadd.f32 %v2408_v8, %v2402_v1 }
 0x141   : > { %v1631_v23 = vpop.eup %1630  ;;  %1650 = vrcp.f32 %v1068_v30  ;;  %v1075_v55 = vadd.f32 1.0, %v1625_v50  ;;  %v2504_v9 = vadd.f32 %v2408_v8, %v2423_v53  ;;  %v2507_v37 = vadd.f32 %v2408_v8, %v974_v63 }
 0x142   : > { %v1633_v46 = vpop.eup %1632  ;;  %1652 = vrcp.f32 %v1069_v57  ;;  %v1076_v61 = vadd.f32 1.0, %v1627_v26  ;;  %v2510_v34 = vadd.f32 %v2408_v8, %v977_v47  ;;  %v1264_v1 = vsub.f32 0.0, %v2436_v10 }
 0x143   : > { %v1635_v59 = vpop.eup %1634  ;;  %1654 = vrcp.f32 %v1070_v41  ;;  %v1077_v36 = vadd.f32 1.0, %v1629_v44  ;;  %v1265_v2 = vsub.f32 0.0, %v2440_v24  ;;  %v1266_v53 = vsub.f32 0.0, %v2444_v54 }
 0x144   : > { %v1637_v0 = vpop.eup %1636  ;;  %1656 = vrcp.f32 %v1071_v49  ;;  %v1078_v15 = vadd.f32 1.0, %v1631_v23  ;;  %v1267_v18 = vsub.f32 0.0, %v2448_v5  ;;  %v1268_v27 = vsub.f32 0.0, %v2452_v45 }
 0x145   : > { %v1639_v31 = vpop.eup %1638  ;;  %1658 = vrcp.f32 %v1072_v6  ;;  %v1079_v48 = vadd.f32 1.0, %v1633_v46  ;;  %v1269_v38 = vsub.f32 0.0, %v2456_v29  ;;  %v1270_v19 = vsub.f32 0.0, %v2460_v56 }
 0x146   : > { %v1641_v16 = vpop.eup %1640  ;;  %1660 = vrcp.f32 %v1073_v51  ;;  %v1080_v7 = vadd.f32 1.0, %v1635_v59  ;;  %v1271_v40 = vsub.f32 0.0, %v2464_v60  ;;  %v1272_v11 = vsub.f32 0.0, %v2468_v28 }
 0x147   : > { %v1643_v35 = vpop.eup %1642  ;;  %1662 = vrcp.f32 %v1074_v33  ;;  %v1081_v63 = vadd.f32 1.0, %v1637_v0  ;;  %v1273_v52 = vsub.f32 0.0, %v2472_v32  ;;  %v1274_v25 = vsub.f32 0.0, %v2476_v42 }
 0x148   : > { %v1645_v8 = vpop.eup %1644  ;;  %1664 = vrcp.f32 %v1075_v55  ;;  %v1082_v50 = vadd.f32 1.0, %v1639_v31  ;;  %v1275_v57 = vsub.f32 0.0, %v2480_v4  ;;  %v1276_v26 = vsub.f32 0.0, %v2484_v62 }
 0x149   : > { %v1647_v58 = vpop.eup %1646  ;;  %1666 = vrcp.f32 %v1076_v61  ;;  %v1083_v44 = vadd.f32 1.0, %v1641_v16  ;;  %v1277_v23 = vsub.f32 0.0, %v2488_v39  ;;  %v1084_v46 = vadd.f32 1.0, %v1643_v35 }
 0x14a   : > { %v1649_v3 = vpop.eup %1648  ;;  %1668 = vrcp.f32 %v1077_v36  ;;  %v1278_v51 = vsub.f32 0.0, %v2492_v12  ;;  %v1085_v33 = vadd.f32 1.0, %v1645_v8  ;;  %v1279_v55 = vsub.f32 0.0, %v2496_v17 }
 0x14b   : > { %v1651_v30 = vpop.eup %1650  ;;  %1670 = vrcp.f32 %v1078_v15  ;;  %v1086_v61 = vadd.f32 1.0, %v1647_v58  ;;  %v1087_v15 = vadd.f32 1.0, %v1649_v3  ;;  %v1288_v10 = vmul.f32 1.442695, %v1266_v53 }
 0x14c   : > { %v1653_v41 = vpop.eup %1652  ;;  %1672 = vrcp.f32 %v1079_v48  ;;  %v1134_v49 = vrot.slane %v1651_v30, %v1841_v13  ;;  %v1284_v30 = vmul.f32 1.442695, %v1264_v1  ;;  %v1290_v24 = vmul.f32 1.442695, %v1267_v18 }
 0x14d   : > { %v1655_v6 = vpop.eup %1654  ;;  %1674 = vrcp.f32 %v1080_v7  ;;  %v1139_v47 = vrot.slane %v1653_v41, %v1844_v14  ;;  %v1292_v54 = vmul.f32 1.442695, %v1268_v27  ;;  %v1294_v5 = vmul.f32 1.442695, %v1269_v38 }
 0x14e   : > { %v1657_v59 = vpop.eup %1656  ;;  %1676 = vrcp.f32 %v1081_v63  ;;  %v1146_v0 = vrot.slane %v1655_v6, %v1848_v20  ;;  %v1298_v29 = vmul.f32 1.442695, %v1271_v40  ;;  %v1300_v56 = vmul.f32 1.442695, %v1272_v11 }
 0x14f   : > { %v1659_v31 = vpop.eup %1658  ;;  %1678 = vrcp.f32 %v1082_v50  ;;  %v1141_v16 = vsel %vm1140_vm5, %v1139_v47, %v1134_v49  ;;  %v1153_v36 = vrot.slane %v1657_v59, %v1851_v21  ;;  %v1302_v60 = vmul.f32 1.442695, %v1273_v52 }
 0x150   : > { %v1661_v35 = vpop.eup %1660  ;;  %1680 = vrcp.f32 %v1083_v44  ;;  %v1148_v8 = vsel %vm1147_vm6, %v1146_v0, %v1141_v16  ;;  %v1160_v48 = vrot.slane %v1659_v31, %v1854_v22  ;;  %v1286_v44 = vmul.f32 1.442695, %v1265_v2 }
 0x151   : > { %v1663_v7 = vpop.eup %1662  ;;  %1682 = vrcp.f32 %v1084_v46  ;;  %v1155_v58 = vsel %vm1154_vm7, %v1153_v36, %v1148_v8  ;;  %v1166_v63 = vrot.slane %v1661_v35, %v1841_v13  ;;  %v1280_v46 = vsub.f32 0.0, %v2500_v43 }
 0x152   : > { %v1665_v50 = vpop.eup %1664  ;;  %1684 = vrcp.f32 %v1085_v33  ;;  %v1162_v41 = vsel %vm1161_vm8, %v1160_v48, %v1155_v58  ;;  %v1170_v3 = vrot.slane %v1663_v7, %v1844_v14  ;;  %v1296_v35 = vmul.f32 1.442695, %v1270_v19 }
 0x153   : > { %v1667_v49 = vpop.eup %1666  ;;  %1686 = vrcp.f32 %v1086_v61  ;;  %v1175_v6 = vrot.slane %v1665_v50, %v1848_v20  ;;  %1240 = vst.msk [vmem:[%s2537_s18 - $0x2] sm:$0x4] %vm1239_vm9, %v1162_v41  ;;  %v1304_v28 = vmul.f32 1.442695, %v1274_v25  ;;  %v1306_v41 = vmul.f32 1.442695, %v1275_v57 }
 0x154   : > { %v1669_v1 = vpop.eup %1668  ;;  %1688 = vrcp.f32 %v1087_v15  ;;  %v1171_v47 = vsel %vm1140_vm5, %v1170_v3, %v1166_v63  ;;  %v1180_v59 = vrot.slane %v1667_v49, %v1851_v21  ;;  %v1281_v15 = vsub.f32 0.0, %v2504_v9 }
 0x155   : > { %v1671_v2 = vpop.eup %1670  ;;  %v1176_v33 = vsel %vm1147_vm6, %v1175_v6, %v1171_v47  ;;  %v1185_v0 = vrot.slane %v1669_v1, %v1854_v22  ;;  %1690 = vpow2.f32 %v1284_v30  ;;  %v1282_v3 = vsub.f32 0.0, %v2507_v37 }
 0x156   : > { %v1673_v53 = vpop.eup %1672  ;;  %v1181_v31 = vsel %vm1154_vm7, %v1180_v59, %v1176_v33  ;;  %v1190_v61 = vrot.slane %v1671_v2, %v1841_v13  ;;  %1692 = vpow2.f32 %v1286_v44  ;;  %v1308_v42 = vmul.f32 1.442695, %v1276_v26 }
 0x157   : > { %v1675_v18 = vpop.eup %1674  ;;  %v1186_v16 = vsel %vm1161_vm8, %v1185_v0, %v1181_v31  ;;  %v1194_v36 = vrot.slane %v1673_v53, %v1844_v14  ;;  %1694 = vpow2.f32 %v1288_v10  ;;  %v1310_v4 = vmul.f32 1.442695, %v1277_v23 }
 0x158   : > { %v1677_v45 = vpop.eup %1676  ;;  %v1199_v27 = vrot.slane %v1675_v18, %v1848_v20  ;;  %1241 = vst.msk [vmem:[%s2537_s18] sm:$0x4] %vm1239_vm9, %v1186_v16  ;;  %1696 = vpow2.f32 %v1290_v24  ;;  %v1312_v62 = vmul.f32 1.442695, %v1278_v51  ;;  %v1283_v1 = vsub.f32 0.0, %v2510_v34 }
 0x159   : > { %v1679_v38 = vpop.eup %1678  ;;  %v1195_v8 = vsel %vm1140_vm5, %v1194_v36, %v1190_v61  ;;  %v1204_v48 = vrot.slane %v1677_v45, %v1851_v21  ;;  %1698 = vpow2.f32 %v1292_v54  ;;  %v1314_v39 = vmul.f32 1.442695, %v1279_v55 }
 0x15a   : > { %v1681_v19 = vpop.eup %1680  ;;  %v1200_v7 = vsel %vm1147_vm6, %v1199_v27, %v1195_v8  ;;  %v1209_v58 = vrot.slane %v1679_v38, %v1854_v22  ;;  %1700 = vpow2.f32 %v1294_v5  ;;  %v1316_v59 = vmul.f32 1.442695, %v1280_v46 }
 0x15b   : > { %v1683_v9 = vpop.eup %1682  ;;  %v1205_v40 = vsel %vm1154_vm7, %v1204_v48, %v1200_v7  ;;  %v1214_v63 = vrot.slane %v1681_v19, %v1841_v13  ;;  %1702 = vpow2.f32 %v1296_v35  ;;  %v1318_v12 = vmul.f32 1.442695, %v1281_v15 }
 0x15c   : > { %v1685_v11 = vpop.eup %1684  ;;  %v1210_v30 = vsel %vm1161_vm8, %v1209_v58, %v1205_v40  ;;  %v1218_v50 = vrot.slane %v1683_v9, %v1844_v14  ;;  %1704 = vpow2.f32 %v1298_v29  ;;  %v1320_v2 = vmul.f32 1.442695, %v1282_v3 }
 0x15d   : > { %v1687_v32 = vpop.eup %1686  ;;  %v1223_v52 = vrot.slane %v1685_v11, %v1848_v20  ;;  %1242 = vst.msk [vmem:[%s2537_s18 + $0x2] sm:$0x4] %vm1239_vm9, %v1210_v30  ;;  %1706 = vpow2.f32 %v1300_v56  ;;  %v1322_v33 = vmul.f32 1.442695, %v1283_v1 }
 0x15e   : > { %v1689_v25 = vpop.eup %1688  ;;  %v1219_v44 = vsel %vm1140_vm5, %v1218_v50, %v1214_v63  ;;  %v1228_v49 = vrot.slane %v1687_v32, %v1851_v21  ;;  %1708 = vpow2.f32 %v1302_v60 }
 0x15f   : > { %v1691_v57 = vpop.eup %1690  ;;  %v1224_v6 = vsel %vm1147_vm6, %v1223_v52, %v1219_v44  ;;  %v1233_v10 = vrot.slane %v1689_v25, %v1854_v22  ;;  %1710 = vpow2.f32 %v1304_v28 }
 0x160   : > { %v1693_v37 = vpop.eup %1692  ;;  %v1229_v26 = vsel %vm1154_vm7, %v1228_v49, %v1224_v6  ;;  %1712 = vpow2.f32 %v1306_v41  ;;  %v1324_v55 = vadd.f32 1.0, %v1691_v57 }
 0x161   : > { %v1695_v23 = vpop.eup %1694  ;;  %v1234_v47 = vsel %vm1161_vm8, %v1233_v10, %v1229_v26  ;;  %1714 = vpow2.f32 %v1308_v42  ;;  %v1325_v54 = vadd.f32 1.0, %v1693_v37 }
 0x162   : > { %v1697_v24 = vpop.eup %1696  ;;  %1243 = vst.msk [vmem:[%s2537_s18 + $0x4] sm:$0x4] %vm1239_vm9, %v1234_v47  ;;  %1716 = vpow2.f32 %v1310_v4  ;;  %v1326_v43 = vadd.f32 1.0, %v1695_v23 }
 0x163   : > { %v1699_v51 = vpop.eup %1698  ;;  %1718 = vpow2.f32 %v1312_v62  ;;  %v1327_v31 = vadd.f32 1.0, %v1697_v24 }
 0x164   : > { %v1701_v34 = vpop.eup %1700  ;;  %1720 = vpow2.f32 %v1314_v39  ;;  %v1328_v5 = vadd.f32 1.0, %v1699_v51 }
 0x165   : > { %v1703_v17 = vpop.eup %1702  ;;  %1722 = vpow2.f32 %v1316_v59  ;;  %v1329_v16 = vadd.f32 1.0, %v1701_v34 }
 0x166   : > { %v1705_v0 = vpop.eup %1704  ;;  %1724 = vpow2.f32 %v1318_v12  ;;  %v1330_v35 = vadd.f32 1.0, %v1703_v17 }
 0x167   : > { %v1707_v53 = vpop.eup %1706  ;;  %1726 = vpow2.f32 %v1320_v2  ;;  %v1331_v27 = vadd.f32 1.0, %v1705_v0 }
 0x168   : > { %v1709_v46 = vpop.eup %1708  ;;  %1728 = vpow2.f32 %v1322_v33  ;;  %v1332_v29 = vadd.f32 1.0, %v1707_v53 }
 0x169   : > { %v1711_v61 = vpop.eup %1710  ;;  %1730 = vrcp.f32 %v1324_v55  ;;  %v1333_v8 = vadd.f32 1.0, %v1709_v46 }
 0x16a   : > { %v1713_v18 = vpop.eup %1712  ;;  %1732 = vrcp.f32 %v1325_v54  ;;  %v1334_v56 = vadd.f32 1.0, %v1711_v61 }
 0x16b   : > { %v1715_v36 = vpop.eup %1714  ;;  %1734 = vrcp.f32 %v1326_v43  ;;  %v1335_v7 = vadd.f32 1.0, %v1713_v18 }
 0x16c   : > { %v1717_v45 = vpop.eup %1716  ;;  %1736 = vrcp.f32 %v1327_v31  ;;  %v1336_v60 = vadd.f32 1.0, %v1715_v36 }
 0x16d   : > { %v1719_v15 = vpop.eup %1718  ;;  %1738 = vrcp.f32 %v1328_v5  ;;  %v1337_v40 = vadd.f32 1.0, %v1717_v45 }
 0x16e   : > { %v1721_v38 = vpop.eup %1720  ;;  %1740 = vrcp.f32 %v1329_v16  ;;  %v1338_v28 = vadd.f32 1.0, %v1719_v15 }
 0x16f   : > { %v1723_v48 = vpop.eup %1722  ;;  %1742 = vrcp.f32 %v1330_v35  ;;  %v1339_v30 = vadd.f32 1.0, %v1721_v38 }
 0x170   : > { %v1725_v19 = vpop.eup %1724  ;;  %1744 = vrcp.f32 %v1331_v27  ;;  %v1340_v32 = vadd.f32 1.0, %v1723_v48 }
 0x171   : > { %v1727_v58 = vpop.eup %1726  ;;  %1746 = vrcp.f32 %v1332_v29  ;;  %v1341_v42 = vadd.f32 1.0, %v1725_v19 }
 0x172   : > { %v1729_v9 = vpop.eup %1728  ;;  %1748 = vrcp.f32 %v1333_v8  ;;  %v1342_v49 = vadd.f32 1.0, %v1727_v58 }
 0x173   : > { %v1731_v63 = vpop.eup %1730  ;;  %1750 = vrcp.f32 %v1334_v56  ;;  %v1343_v10 = vadd.f32 1.0, %v1729_v9 }
 0x174   : > { %v1733_v11 = vpop.eup %1732  ;;  %1752 = vrcp.f32 %v1335_v7  ;;  %v1387_v50 = vrot.slane %v1731_v63, %v1841_v13 }
 0x175   : > { %v1735_v41 = vpop.eup %1734  ;;  %1754 = vrcp.f32 %v1336_v60  ;;  %v1391_v52 = vrot.slane %v1733_v11, %v1844_v14 }
 0x176   : > { %v1737_v3 = vpop.eup %1736  ;;  %1756 = vrcp.f32 %v1337_v40  ;;  %v1396_v25 = vrot.slane %v1735_v41, %v1848_v20 }
 0x177   : > { %v1739_v44 = vpop.eup %1738  ;;  %1758 = vrcp.f32 %v1338_v28  ;;  %v1392_v4 = vsel %vm1140_vm5, %v1391_v52, %v1387_v50  ;;  %v1401_v57 = vrot.slane %v1737_v3, %v1851_v21 }
 0x178   : > { %v1741_v6 = vpop.eup %1740  ;;  %1760 = vrcp.f32 %v1339_v30  ;;  %v1397_v62 = vsel %vm1147_vm6, %v1396_v25, %v1392_v4  ;;  %v1406_v37 = vrot.slane %v1739_v44, %v1854_v22 }
 0x179   : > { %v1743_v26 = vpop.eup %1742  ;;  %1762 = vrcp.f32 %v1340_v32  ;;  %v1402_v1 = vsel %vm1154_vm7, %v1401_v57, %v1397_v62  ;;  %v1411_v39 = vrot.slane %v1741_v6, %v1841_v13 }
 0x17a   : > { %v1745_v23 = vpop.eup %1744  ;;  %1764 = vrcp.f32 %v1341_v42  ;;  %v1407_v47 = vsel %vm1161_vm8, %v1406_v37, %v1402_v1  ;;  %v1415_v59 = vrot.slane %v1743_v26, %v1844_v14 }
 0x17b   : > { %v1747_v24 = vpop.eup %1746  ;;  %1766 = vrcp.f32 %v1342_v49  ;;  %v1420_v12 = vrot.slane %v1745_v23, %v1848_v20  ;;  %1484 = vst.msk [vmem:[%s2537_s18 - $0x1] sm:$0x4] %vm1239_vm9, %v1407_v47 }
 0x17c   : > { %v1749_v51 = vpop.eup %1748  ;;  %1768 = vrcp.f32 %v1343_v10  ;;  %v1416_v2 = vsel %vm1140_vm5, %v1415_v59, %v1411_v39  ;;  %v1425_v34 = vrot.slane %v1747_v24, %v1851_v21 }
 0x17d   : > { %v1751_v33 = vpop.eup %1750  ;;  %v1421_v17 = vsel %vm1147_vm6, %v1420_v12, %v1416_v2  ;;  %v1430_v55 = vrot.slane %v1749_v51, %v1854_v22 }
 0x17e   : > { %v1753_v0 = vpop.eup %1752  ;;  %v1426_v54 = vsel %vm1154_vm7, %v1425_v34, %v1421_v17  ;;  %v1435_v53 = vrot.slane %v1751_v33, %v1841_v13 }
 0x17f   : > { %v1755_v43 = vpop.eup %1754  ;;  %v1431_v46 = vsel %vm1161_vm8, %v1430_v55, %v1426_v54  ;;  %v1439_v31 = vrot.slane %v1753_v0, %v1844_v14 }
 0x180   : > { %v1757_v61 = vpop.eup %1756  ;;  %v1444_v5 = vrot.slane %v1755_v43, %v1848_v20  ;;  %1485 = vst.msk [vmem:[%s2537_s18 + $0x1] sm:$0x4] %vm1239_vm9, %v1431_v46 }
 0x181   : > { %v1759_v18 = vpop.eup %1758  ;;  %v1440_v16 = vsel %vm1140_vm5, %v1439_v31, %v1435_v53  ;;  %v1449_v36 = vrot.slane %v1757_v61, %v1851_v21 }
 0x182   : > { %v1761_v35 = vpop.eup %1760  ;;  %v1445_v45 = vsel %vm1147_vm6, %v1444_v5, %v1440_v16  ;;  %v1454_v27 = vrot.slane %v1759_v18, %v1854_v22 }
 0x183   : > { %v1763_v15 = vpop.eup %1762  ;;  %v1450_v29 = vsel %vm1154_vm7, %v1449_v36, %v1445_v45  ;;  %v1459_v38 = vrot.slane %v1761_v35, %v1841_v13 }
 0x184   : > { %v1765_v8 = vpop.eup %1764  ;;  %v1455_v48 = vsel %vm1161_vm8, %v1454_v27, %v1450_v29  ;;  %v1463_v56 = vrot.slane %v1763_v15, %v1844_v14 }
 0x185   : > { %v1767_v19 = vpop.eup %1766  ;;  %v1468_v7 = vrot.slane %v1765_v8, %v1848_v20  ;;  %1486 = vst.msk [vmem:[%s2537_s18 + $0x3] sm:$0x4] %vm1239_vm9, %v1455_v48 }
 0x186   : > { %v1769_v58 = vpop.eup %1768  ;;  %v1464_v60 = vsel %vm1140_vm5, %v1463_v56, %v1459_v38  ;;  %v1473_v9 = vrot.slane %v1767_v19, %v1851_v21 }
 0x187   : > { %v1469_v40 = vsel %vm1147_vm6, %v1468_v7, %v1464_v60  ;;  %v1478_v63 = vrot.slane %v1769_v58, %v1854_v22 }
 0x188   : > { %v1474_v13 = vsel %vm1154_vm7, %v1473_v9, %v1469_v40 }
 0x189   : > { %v1479_v28 = vsel %vm1161_vm8, %v1478_v63, %v1474_v13 }
 0x18a   : > { %1487 = vst.msk [vmem:[%s2537_s18 + $0x5] sm:$0x4] %vm1239_vm9, %v1479_v28 }
 0x18b PF: > { %s18_s23 = sadd.s32 1, %s1776_s23  }
 0x18c   : > { %p15_p4 = scmp.ge.s32.totalorder %s18_s23, 4  }
 0x18e   :  { %17 = sbr.rel (!%p15_p4) target bundleno = 3 (0x3), region = 74 }

</bundles_post_ra>
